<compile_context>
chip_gen: v6e
topology: v6e:2x2x1
jax: 0.10.0
libtpu: 0.0.40
codegen_flags: <defaults>
</compile_context>

<pallas_src>
import math
from functools import partial

import jax
import jax.numpy as jnp
from jax import lax
from jax.experimental import pallas as pl
from jax.experimental.pallas import tpu as pltpu

# -------------------- config (scaled-down T5) --------------------
VOCAB = 128
D_MODEL = 32
N_HEADS = 4
D_KV = 8             # inner dim = N_HEADS * D_KV = 32
D_FF = 64
REL_BUCKETS = 32
REL_MAX_DIST = 128
EPS = 1e-6
NEG = -1e9
INNER = N_HEADS * D_KV

_VMEM = pl.BlockSpec(memory_space=pltpu.MemorySpace.VMEM)


# -------------------- single fused T5-forward-to-loss kernel --------------------
def _t5_fused_kernel(
    # activations / indices
    x0_ref, y0_ref, mask_ref, pos_enc_ref, pos_dec_ref, labels_ref,
    # encoder layer 0 weights (+ encoder final LN)
    e_ln_sa_ref, e_wq_ref, e_wkv_ref, e_wo_ref, e_ln_ff_ref, e_wi_ref, e_wf_ref,
    enc_ln_ref,
    # decoder layer 0 weights (+ decoder final LN) + tied embedding (transposed)
    d_ln_sa_ref, d_sq_ref, d_skv_ref, d_so_ref,
    d_ln_ca_ref, d_cq_ref, d_ckv_ref, d_co_ref,
    d_ln_ff_ref, d_wi_ref, d_wf_ref,
    dec_ln_ref, emb_t_ref,
    # output
    loss_ref,
    *, n_heads, d_kv, eps, scale):

    f32 = jnp.float32
    bf16 = jnp.bfloat16
    inner = n_heads * d_kv

    def rms(x, w):
        # T5LayerNorm: RMS norm (no mean subtraction), f32.
        var = jnp.mean(x * x, axis=-1, keepdims=True)
        return x * lax.rsqrt(var + eps) * w

    def attn(x, kv, lnq_w, lnkv_w, wq, wkv, wo, bias_list):
        # out = x + Wo( softmax( (RMS(x)Wq)(RMS(kv)Wk)^T + bias ) (RMS(kv)Wv) )
        B, Lq, D = x.shape
        Lk = kv.shape[1]
        hq = rms(x, lnq_w).reshape(B * Lq, D).astype(bf16)
        hkv = rms(kv, lnkv_w).reshape(B * Lk, D).astype(bf16)
        # fused projections: one bf16 matmul for Q, one for [K | V], f32 accumulation
        q = jnp.dot(hq, wq, preferred_element_type=f32)        # (B*Lq, inner)
        kvp = jnp.dot(hkv, wkv, preferred_element_type=f32)    # (B*Lk, 2*inner)
        k, v = kvp[:, :inner], kvp[:, inner:]

        ctxs = []
        for h in range(n_heads):                               # statically unrolled
            sl = slice(h * d_kv, (h + 1) * d_kv)
            qh = q[:, sl].reshape(B, Lq, d_kv)
            kh = k[:, sl].reshape(B, Lk, d_kv)
            vh = v[:, sl].reshape(B, Lk, d_kv)
            # T5 attention: NO 1/sqrt(d) scaling; additive (position + mask) bias.
            s = jnp.einsum('bqd,bkd->bqk', qh, kh, preferred_element_type=f32)
            s = s + bias_list[h]
            s = s - jnp.max(s, axis=-1, keepdims=True)
            p = jnp.exp(s)
            p = p * pl.reciprocal(jnp.sum(p, axis=-1, keepdims=True), approx=True)
            ctx = jnp.einsum('bqk,bkd->bqd', p, vh, preferred_element_type=f32)
            ctxs.append(ctx.reshape(B * Lq, d_kv))
        # single output projection for all heads
        ctx_all = jnp.concatenate(ctxs, axis=-1).astype(bf16)  # (B*Lq, inner)
        out = jnp.dot(ctx_all, wo, preferred_element_type=f32)
        return x + out.reshape(B, Lq, D)

    def ffn(x, ln_w, wi, wf):
        # out = x + ReLU(RMS(x)@wi)@wf ; the (B*L, D_FF) intermediate stays in VMEM/vregs
        B, L, D = x.shape
        h = rms(x, ln_w).reshape(B * L, D).astype(bf16)
        ff = jnp.maximum(jnp.dot(h, wi, preferred_element_type=f32), 0.0)
        ff = jnp.dot(ff.astype(bf16), wf, preferred_element_type=f32)
        return x + ff.reshape(B, L, D)

    x0 = x0_ref[...]                                           # (B, Ls, D) f32
    y0 = y0_ref[...]                                           # (B, Lt, D) f32
    B, Ls, _ = x0.shape
    Lt = y0.shape[1]

    # ---- additive biases, built once per block, hoisted out of the head loop ----
    pad_bias = (1.0 - mask_ref[...])[:, None, :] * NEG         # (B, 1, Ls) f32
    pos_enc = pos_enc_ref[...]                                 # (H, Ls, Ls)
    enc_bias = [pad_bias + pos_enc[h][None] for h in range(n_heads)]     # (B, Ls, Ls)

    row = lax.broadcasted_iota(jnp.int32, (Lt, Lt), 0)
    col = lax.broadcasted_iota(jnp.int32, (Lt, Lt), 1)
    causal = jnp.where(col <= row, 0.0, NEG)                   # (Lt, Lt) f32
    pos_dec = pos_dec_ref[...]                                 # (H, Lt, Lt)
    dec_bias = [(causal + pos_dec[h])[None] for h in range(n_heads)]     # (1, Lt, Lt)
    cross_bias = [pad_bias] * n_heads                          # no pos bias in cross-attn

    # ---------------- encoder (1 layer) ----------------
    e_ln_sa = e_ln_sa_ref[...]
    x = attn(x0, x0, e_ln_sa, e_ln_sa,
             e_wq_ref[...], e_wkv_ref[...], e_wo_ref[...], enc_bias)
    x = ffn(x, e_ln_ff_ref[...], e_wi_ref[...], e_wf_ref[...])
    # encoder final LayerNorm is folded into the cross-attention KV normalization below.

    # ---------------- decoder (1 layer) ----------------
    d_ln_sa = d_ln_sa_ref[...]
    y = attn(y0, y0, d_ln_sa, d_ln_sa,
             d_sq_ref[...], d_skv_ref[...], d_so_ref[...], dec_bias)
    y = attn(y, x, d_ln_ca_ref[...], enc_ln_ref[...],
             d_cq_ref[...], d_ckv_ref[...], d_co_ref[...], cross_bias)
    y = ffn(y, d_ln_ff_ref[...], d_wi_ref[...], d_wf_ref[...])

    # -------- decoder final RMSNorm + tied LM head (pre-transposed) + masked CE --------
    # tied LM head: T5 scales hidden states by d_model**-0.5 when embeddings are tied
    h = (rms(y, dec_ln_ref[...]) * scale).reshape(B * Lt, D_MODEL).astype(bf16)
    logits = jnp.dot(h, emb_t_ref[...], preferred_element_type=f32)      # (N, V), lane-dense
    labels = labels_ref[...]                                             # (N, 1) int32
    m = jnp.max(logits, axis=-1, keepdims=True)
    lse = jnp.log(jnp.sum(jnp.exp(logits - m), axis=-1, keepdims=True)) + m
    colv = lax.broadcasted_iota(jnp.int32, logits.shape, 1)
    onehot = (colv == labels).astype(f32)
    picked = jnp.sum(logits * onehot, axis=-1, keepdims=True)
    valid = (labels != -100).astype(f32)                                 # ignore_index=-100
    per_tok = (lse - picked) * valid
    # single scalar divide: kept exact (approx reciprocal would only add noise here)
    loss = jnp.sum(per_tok) / jnp.maximum(jnp.sum(valid), 1.0)
    loss_ref[...] = jnp.reshape(loss, (1, 1))


# -------------------- relative position bias (hoisted outside jit) --------------------
def _relative_position_bucket(relative_position, bidirectional,
                              num_buckets=REL_BUCKETS, max_distance=REL_MAX_DIST):
    relative_buckets = jnp.zeros_like(relative_position)
    if bidirectional:
        num_buckets //= 2
        relative_buckets = relative_buckets + (relative_position > 0).astype(jnp.int32) * num_buckets
        relative_position = jnp.abs(relative_position)
    else:
        relative_position = -jnp.minimum(relative_position, 0)
    max_exact = num_buckets // 2
    is_small = relative_position < max_exact
    rp_large = max_exact + (
        jnp.log(jnp.maximum(relative_position, 1).astype(jnp.float32) / max_exact)
        / math.log(max_distance / max_exact)
        * (num_buckets - max_exact)
    ).astype(jnp.int32)
    rp_large = jnp.minimum(rp_large, num_buckets - 1)
    return relative_buckets + jnp.where(is_small, relative_position, rp_large)


def compute_position_bias(rel_emb, q_len, k_len, bidirectional):
    ctx = jnp.arange(q_len)[:, None]
    mem = jnp.arange(k_len)[None, :]
    buckets = _relative_position_bucket(mem - ctx, bidirectional)
    vals = jnp.take(rel_emb, buckets, axis=0)                 # (q_len, k_len, H)
    return jnp.transpose(vals, (2, 0, 1)).astype(jnp.float32)  # (H, q_len, k_len)


# -------------------- T5 forward -> loss (ONE pallas_call) --------------------
def t5_loss(params, input_ids, attention_mask, labels, pos_bias_enc, pos_bias_dec):
    B, Ls = input_ids.shape
    Lt = labels.shape[1]

    emb = params["shared"]
    x0 = emb[input_ids]                                        # (B, Ls, D) encoder embeds
    # decoder inputs = labels shifted right (start token = pad id 0), -100 -> 0
    dec_ids = jnp.concatenate([jnp.zeros((B, 1), labels.dtype), labels[:, :-1]], axis=1)
    dec_ids = jnp.where(dec_ids == -100, 0, dec_ids)
    y0 = emb[dec_ids]                                          # (B, Lt, D) decoder embeds

    bf = lambda w: w.astype(jnp.bfloat16)                      # MXU bf16 feed (half DMA)
    r1 = lambda w: w.reshape(1, -1)                            # LN weights as (1, D)
    pe, pd = params["enc0"], params["dec0"]

    args = (
        x0, y0, attention_mask.astype(jnp.float32),
        pos_bias_enc, pos_bias_dec,
        labels.reshape(B * Lt, 1).astype(jnp.int32),
        # encoder
        r1(pe["ln_sa"]), bf(pe["q"]), bf(pe["kv"]), bf(pe["o"]),
        r1(pe["ln_ff"]), bf(pe["wi"]), bf(pe["wo"]),
        r1(params["enc_final_ln"]),
        # decoder
        r1(pd["ln_sa"]), bf(pd["sq"]), bf(pd["skv"]), bf(pd["so"]),
        r1(pd["ln_ca"]), bf(pd["cq"]), bf(pd["ckv"]), bf(pd["co"]),
        r1(pd["ln_ff"]), bf(pd["wi"]), bf(pd["wo"]),
        r1(params["dec_final_ln"]),
        bf(emb.T),                                             # tied LM head, transposed outside
    )

    out = pl.pallas_call(
        partial(_t5_fused_kernel, n_heads=N_HEADS, d_kv=D_KV, eps=EPS,
                scale=D_MODEL ** -0.5),
        out_shape=jax.ShapeDtypeStruct((1, 1), jnp.float32),
        in_specs=[_VMEM] * len(args),
        out_specs=_VMEM,
    )(*args)
    return out[0, 0]


# -------------------- deterministic param init --------------------
def init_params(key):
    keys = iter(jax.random.split(key, 64))

    def w(shape, scale=0.05):
        return (scale * jax.random.normal(next(keys), shape)).astype(jnp.float32)

    ones = lambda: jnp.ones((D_MODEL,), jnp.float32)
    return {
        "shared": w((VOCAB, D_MODEL), 1.0),
        "enc_rel_bias": w((REL_BUCKETS, N_HEADS)),
        "dec_rel_bias": w((REL_BUCKETS, N_HEADS)),
        "enc_final_ln": ones(),
        "dec_final_ln": ones(),
        "enc0": {
            "ln_sa": ones(), "q": w((D_MODEL, INNER)), "kv": w((D_MODEL, 2 * INNER)),
            "o": w((INNER, D_MODEL)),
            "ln_ff": ones(), "wi": w((D_MODEL, D_FF)), "wo": w((D_FF, D_MODEL)),
        },
        "dec0": {
            "ln_sa": ones(), "sq": w((D_MODEL, INNER)), "skv": w((D_MODEL, 2 * INNER)),
            "so": w((INNER, D_MODEL)),
            "ln_ca": ones(), "cq": w((D_MODEL, INNER)), "ckv": w((D_MODEL, 2 * INNER)),
            "co": w((INNER, D_MODEL)),
            "ln_ff": ones(), "wi": w((D_MODEL, D_FF)), "wo": w((D_FF, D_MODEL)),
        },
    }


if __name__ == "__main__":
    key = jax.random.PRNGKey(0)
    pkey, ikey, lkey = jax.random.split(key, 3)
    params = init_params(pkey)

    B, Ls, Lt = 2, 8, 8
    input_ids = jax.random.randint(ikey, (B, Ls), 1, VOCAB, dtype=jnp.int32)
    labels = jax.random.randint(lkey, (B, Lt), 1, VOCAB, dtype=jnp.int32)
    attention_mask = jnp.ones((B, Ls), jnp.int32)

    # Hoisted: relative-position bias depends only on static lengths + bias tables.
    pos_bias_enc = compute_position_bias(params["enc_rel_bias"], Ls, Ls, True)
    pos_bias_dec = compute_position_bias(params["dec_rel_bias"], Lt, Lt, False)

    loss = jax.jit(t5_loss)(params, input_ids, attention_mask, labels,
                            pos_bias_enc, pos_bias_dec)
    loss = jax.block_until_ready(loss)
    assert loss.shape == () and bool(jnp.isfinite(loss))
    print("KERNEL_OK")
</pallas_src>

<mosaic_0001>
module attributes {stable_mosaic.version = 11 : i64} {
  func.func @_t5_fused_kernel(%arg0: memref<2x8x32xf32, #tpu.memory_space<vmem>>, %arg1: memref<2x8x32xf32, #tpu.memory_space<vmem>>, %arg2: memref<2x8xf32, #tpu.memory_space<vmem>>, %arg3: memref<4x8x8xf32, #tpu.memory_space<vmem>>, %arg4: memref<4x8x8xf32, #tpu.memory_space<vmem>>, %arg5: memref<16x1xi32, #tpu.memory_space<vmem>>, %arg6: memref<1x32xf32, #tpu.memory_space<vmem>>, %arg7: memref<32x32xbf16, #tpu.memory_space<vmem>>, %arg8: memref<32x64xbf16, #tpu.memory_space<vmem>>, %arg9: memref<32x32xbf16, #tpu.memory_space<vmem>>, %arg10: memref<1x32xf32, #tpu.memory_space<vmem>>, %arg11: memref<32x64xbf16, #tpu.memory_space<vmem>>, %arg12: memref<64x32xbf16, #tpu.memory_space<vmem>>, %arg13: memref<1x32xf32, #tpu.memory_space<vmem>>, %arg14: memref<1x32xf32, #tpu.memory_space<vmem>>, %arg15: memref<32x32xbf16, #tpu.memory_space<vmem>>, %arg16: memref<32x64xbf16, #tpu.memory_space<vmem>>, %arg17: memref<32x32xbf16, #tpu.memory_space<vmem>>, %arg18: memref<1x32xf32, #tpu.memory_space<vmem>>, %arg19: memref<32x32xbf16, #tpu.memory_space<vmem>>, %arg20: memref<32x64xbf16, #tpu.memory_space<vmem>>, %arg21: memref<32x32xbf16, #tpu.memory_space<vmem>>, %arg22: memref<1x32xf32, #tpu.memory_space<vmem>>, %arg23: memref<32x64xbf16, #tpu.memory_space<vmem>>, %arg24: memref<64x32xbf16, #tpu.memory_space<vmem>>, %arg25: memref<1x32xf32, #tpu.memory_space<vmem>>, %arg26: memref<32x128xbf16, #tpu.memory_space<vmem>>, %arg27: memref<1x1xf32, #tpu.memory_space<vmem>>) attributes {dimension_semantics = [], scalar_prefetch = 0 : i64, scratch_operands = 0 : i64, tpu.core_type = #tpu.core_type<tc>} {
    %c0 = arith.constant 0 : index
    %c0_0 = arith.constant 0 : index
    %c0_1 = arith.constant 0 : index
    %0 = vector.load %arg0[%c0, %c0_0, %c0_1] : memref<2x8x32xf32, #tpu.memory_space<vmem>>, vector<2x8x32xf32>
    %c0_2 = arith.constant 0 : index
    %c0_3 = arith.constant 0 : index
    %c0_4 = arith.constant 0 : index
    %1 = vector.load %arg1[%c0_2, %c0_3, %c0_4] : memref<2x8x32xf32, #tpu.memory_space<vmem>>, vector<2x8x32xf32>
    %c0_5 = arith.constant 0 : index
    %c0_6 = arith.constant 0 : index
    %2 = vector.load %arg2[%c0_5, %c0_6] : memref<2x8xf32, #tpu.memory_space<vmem>>, vector<2x8xf32>
    %cst = arith.constant 1.000000e+00 : f32
    %3 = vector.broadcast %cst : f32 to vector<2x8xf32>
    %4 = arith.subf %3, %2 : vector<2x8xf32>
    %5 = vector.shape_cast %4 : vector<2x8xf32> to vector<2x1x8xf32>
    %cst_7 = arith.constant -1.000000e+09 : f32
    %6 = vector.broadcast %cst_7 : f32 to vector<2x1x8xf32>
    %7 = arith.mulf %5, %6 : vector<2x1x8xf32>
    %c0_8 = arith.constant 0 : index
    %c0_9 = arith.constant 0 : index
    %c0_10 = arith.constant 0 : index
    %8 = vector.load %arg3[%c0_8, %c0_9, %c0_10] : memref<4x8x8xf32, #tpu.memory_space<vmem>>, vector<4x8x8xf32>
    %9 = vector.extract_strided_slice %8 {offsets = [0, 0, 0], sizes = [1, 8, 8], strides = [1, 1, 1]} : vector<4x8x8xf32> to vector<1x8x8xf32>
    %10 = vector.shape_cast %9 : vector<1x8x8xf32> to vector<8x8xf32>
    %11 = vector.shape_cast %10 : vector<8x8xf32> to vector<1x8x8xf32>
    %12 = vector.broadcast %7 : vector<2x1x8xf32> to vector<2x8x8xf32>
    %13 = vector.broadcast %11 : vector<1x8x8xf32> to vector<2x8x8xf32>
    %14 = arith.addf %12, %13 : vector<2x8x8xf32>
    %15 = vector.extract_strided_slice %8 {offsets = [1, 0, 0], sizes = [1, 8, 8], strides = [1, 1, 1]} : vector<4x8x8xf32> to vector<1x8x8xf32>
    %16 = vector.shape_cast %15 : vector<1x8x8xf32> to vector<8x8xf32>
    %17 = vector.shape_cast %16 : vector<8x8xf32> to vector<1x8x8xf32>
    %18 = vector.broadcast %7 : vector<2x1x8xf32> to vector<2x8x8xf32>
    %19 = vector.broadcast %17 : vector<1x8x8xf32> to vector<2x8x8xf32>
    %20 = arith.addf %18, %19 : vector<2x8x8xf32>
    %21 = vector.extract_strided_slice %8 {offsets = [2, 0, 0], sizes = [1, 8, 8], strides = [1, 1, 1]} : vector<4x8x8xf32> to vector<1x8x8xf32>
    %22 = vector.shape_cast %21 : vector<1x8x8xf32> to vector<8x8xf32>
    %23 = vector.shape_cast %22 : vector<8x8xf32> to vector<1x8x8xf32>
    %24 = vector.broadcast %7 : vector<2x1x8xf32> to vector<2x8x8xf32>
    %25 = vector.broadcast %23 : vector<1x8x8xf32> to vector<2x8x8xf32>
    %26 = arith.addf %24, %25 : vector<2x8x8xf32>
    %27 = vector.extract_strided_slice %8 {offsets = [3, 0, 0], sizes = [1, 8, 8], strides = [1, 1, 1]} : vector<4x8x8xf32> to vector<1x8x8xf32>
    %28 = vector.shape_cast %27 : vector<1x8x8xf32> to vector<8x8xf32>
    %29 = vector.shape_cast %28 : vector<8x8xf32> to vector<1x8x8xf32>
    %30 = vector.broadcast %7 : vector<2x1x8xf32> to vector<2x8x8xf32>
    %31 = vector.broadcast %29 : vector<1x8x8xf32> to vector<2x8x8xf32>
    %32 = arith.addf %30, %31 : vector<2x8x8xf32>
    %33 = tpu.iota {dimensions = array<i32: 0>} : vector<8x8xi32>
    %34 = tpu.iota {dimensions = array<i32: 1>} : vector<8x8xi32>
    %35 = arith.cmpi sle, %34, %33 : vector<8x8xi32>
    %cst_11 = arith.constant 0.000000e+00 : f32
    %cst_12 = arith.constant -1.000000e+09 : f32
    %36 = vector.broadcast %cst_11 : f32 to vector<8x8xf32>
    %37 = vector.broadcast %cst_12 : f32 to vector<8x8xf32>
    %38 = arith.select %35, %36, %37 : vector<8x8xi1>, vector<8x8xf32>
    %c0_13 = arith.constant 0 : index
    %c0_14 = arith.constant 0 : index
    %c0_15 = arith.constant 0 : index
    %39 = vector.load %arg4[%c0_13, %c0_14, %c0_15] : memref<4x8x8xf32, #tpu.memory_space<vmem>>, vector<4x8x8xf32>
    %40 = vector.extract_strided_slice %39 {offsets = [0, 0, 0], sizes = [1, 8, 8], strides = [1, 1, 1]} : vector<4x8x8xf32> to vector<1x8x8xf32>
    %41 = vector.shape_cast %40 : vector<1x8x8xf32> to vector<8x8xf32>
    %42 = arith.addf %38, %41 : vector<8x8xf32>
    %43 = vector.shape_cast %42 : vector<8x8xf32> to vector<1x8x8xf32>
    %44 = vector.extract_strided_slice %39 {offsets = [1, 0, 0], sizes = [1, 8, 8], strides = [1, 1, 1]} : vector<4x8x8xf32> to vector<1x8x8xf32>
    %45 = vector.shape_cast %44 : vector<1x8x8xf32> to vector<8x8xf32>
    %46 = arith.addf %38, %45 : vector<8x8xf32>
    %47 = vector.shape_cast %46 : vector<8x8xf32> to vector<1x8x8xf32>
    %48 = vector.extract_strided_slice %39 {offsets = [2, 0, 0], sizes = [1, 8, 8], strides = [1, 1, 1]} : vector<4x8x8xf32> to vector<1x8x8xf32>
    %49 = vector.shape_cast %48 : vector<1x8x8xf32> to vector<8x8xf32>
    %50 = arith.addf %38, %49 : vector<8x8xf32>
    %51 = vector.shape_cast %50 : vector<8x8xf32> to vector<1x8x8xf32>
    %52 = vector.extract_strided_slice %39 {offsets = [3, 0, 0], sizes = [1, 8, 8], strides = [1, 1, 1]} : vector<4x8x8xf32> to vector<1x8x8xf32>
    %53 = vector.shape_cast %52 : vector<1x8x8xf32> to vector<8x8xf32>
    %54 = arith.addf %38, %53 : vector<8x8xf32>
    %55 = vector.shape_cast %54 : vector<8x8xf32> to vector<1x8x8xf32>
    %c0_16 = arith.constant 0 : index
    %c0_17 = arith.constant 0 : index
    %56 = vector.load %arg6[%c0_16, %c0_17] : memref<1x32xf32, #tpu.memory_space<vmem>>, vector<1x32xf32>
    %c0_18 = arith.constant 0 : index
    %c0_19 = arith.constant 0 : index
    %57 = vector.load %arg7[%c0_18, %c0_19] : memref<32x32xbf16, #tpu.memory_space<vmem>>, vector<32x32xbf16>
    %c0_20 = arith.constant 0 : index
    %c0_21 = arith.constant 0 : index
    %58 = vector.load %arg8[%c0_20, %c0_21] : memref<32x64xbf16, #tpu.memory_space<vmem>>, vector<32x64xbf16>
    %c0_22 = arith.constant 0 : index
    %c0_23 = arith.constant 0 : index
    %59 = vector.load %arg9[%c0_22, %c0_23] : memref<32x32xbf16, #tpu.memory_space<vmem>>, vector<32x32xbf16>
    %60 = arith.mulf %0, %0 : vector<2x8x32xf32>
    %cst_24 = arith.constant dense<0.000000e+00> : vector<2x8xf32>
    %61 = vector.multi_reduction <add>, %60, %cst_24 [2] : vector<2x8x32xf32> to vector<2x8xf32>
    %62 = vector.shape_cast %61 : vector<2x8xf32> to vector<2x8x1xf32>
    %cst_25 = arith.constant 3.200000e+01 : f32
    %63 = vector.broadcast %cst_25 : f32 to vector<2x8x1xf32>
    %64 = arith.divf %62, %63 : vector<2x8x1xf32>
    %cst_26 = arith.constant 9.99999997E-7 : f32
    %65 = vector.broadcast %cst_26 : f32 to vector<2x8x1xf32>
    %66 = arith.addf %64, %65 : vector<2x8x1xf32>
    %67 = math.rsqrt %66 : vector<2x8x1xf32>
    %68 = vector.broadcast %67 : vector<2x8x1xf32> to vector<2x8x32xf32>
    %69 = arith.mulf %0, %68 : vector<2x8x32xf32>
    %70 = vector.shape_cast %56 : vector<1x32xf32> to vector<1x1x32xf32>
    %71 = vector.broadcast %70 : vector<1x1x32xf32> to vector<2x8x32xf32>
    %72 = arith.mulf %69, %71 : vector<2x8x32xf32>
    %73 = vector.shape_cast %72 : vector<2x8x32xf32> to vector<16x32xf32>
    %74 = arith.truncf %73 : vector<16x32xf32> to vector<16x32xbf16>
    %75 = arith.mulf %0, %0 : vector<2x8x32xf32>
    %cst_27 = arith.constant dense<0.000000e+00> : vector<2x8xf32>
    %76 = vector.multi_reduction <add>, %75, %cst_27 [2] : vector<2x8x32xf32> to vector<2x8xf32>
    %77 = vector.shape_cast %76 : vector<2x8xf32> to vector<2x8x1xf32>
    %cst_28 = arith.constant 3.200000e+01 : f32
    %78 = vector.broadcast %cst_28 : f32 to vector<2x8x1xf32>
    %79 = arith.divf %77, %78 : vector<2x8x1xf32>
    %cst_29 = arith.constant 9.99999997E-7 : f32
    %80 = vector.broadcast %cst_29 : f32 to vector<2x8x1xf32>
    %81 = arith.addf %79, %80 : vector<2x8x1xf32>
    %82 = math.rsqrt %81 : vector<2x8x1xf32>
    %83 = vector.broadcast %82 : vector<2x8x1xf32> to vector<2x8x32xf32>
    %84 = arith.mulf %0, %83 : vector<2x8x32xf32>
    %85 = vector.shape_cast %56 : vector<1x32xf32> to vector<1x1x32xf32>
    %86 = vector.broadcast %85 : vector<1x1x32xf32> to vector<2x8x32xf32>
    %87 = arith.mulf %84, %86 : vector<2x8x32xf32>
    %88 = vector.shape_cast %87 : vector<2x8x32xf32> to vector<16x32xf32>
    %89 = arith.truncf %88 : vector<16x32xf32> to vector<16x32xbf16>
    %cst_30 = arith.constant dense<0.000000e+00> : vector<16x32xf32>
    %90 = tpu.matmul %74, %57, %cst_30 {dimension_numbers = #tpu.dot_dimension_numbers<[1], [0], [0], [1], [0, 0, 1, 1], [], []>} : vector<16x32xbf16>, vector<32x32xbf16>, vector<16x32xf32> -> vector<16x32xf32>
    %cst_31 = arith.constant dense<0.000000e+00> : vector<16x64xf32>
    %91 = tpu.matmul %89, %58, %cst_31 {dimension_numbers = #tpu.dot_dimension_numbers<[1], [0], [0], [1], [0, 0, 1, 1], [], []>} : vector<16x32xbf16>, vector<32x64xbf16>, vector<16x64xf32> -> vector<16x64xf32>
    %92 = vector.extract_strided_slice %91 {offsets = [0, 0], sizes = [16, 32], strides = [1, 1]} : vector<16x64xf32> to vector<16x32xf32>
    %93 = vector.extract_strided_slice %91 {offsets = [0, 32], sizes = [16, 32], strides = [1, 1]} : vector<16x64xf32> to vector<16x32xf32>
    %94 = vector.extract_strided_slice %90 {offsets = [0, 0], sizes = [16, 8], strides = [1, 1]} : vector<16x32xf32> to vector<16x8xf32>
    %95 = vector.shape_cast %94 : vector<16x8xf32> to vector<2x8x8xf32>
    %96 = vector.extract_strided_slice %92 {offsets = [0, 0], sizes = [16, 8], strides = [1, 1]} : vector<16x32xf32> to vector<16x8xf32>
    %97 = vector.shape_cast %96 : vector<16x8xf32> to vector<2x8x8xf32>
    %98 = vector.extract_strided_slice %93 {offsets = [0, 0], sizes = [16, 8], strides = [1, 1]} : vector<16x32xf32> to vector<16x8xf32>
    %99 = vector.shape_cast %98 : vector<16x8xf32> to vector<2x8x8xf32>
    "tpu.trace_start"() <{level = 10 : i32, message = "bqd,bkd->bqk"}> : () -> ()
    %cst_32 = arith.constant dense<0.000000e+00> : vector<2x8x8xf32>
    %100 = tpu.matmul %95, %97, %cst_32 {dimension_numbers = #tpu.dot_dimension_numbers<[2], [2], [1], [1], [0, 0, 0, 1, 1, 1], [0], [0]>} : vector<2x8x8xf32>, vector<2x8x8xf32>, vector<2x8x8xf32> -> vector<2x8x8xf32>
    "tpu.trace_stop"() : () -> ()
    %101 = arith.addf %100, %14 : vector<2x8x8xf32>
    %cst_33 = arith.constant dense<0xFF800000> : vector<2x8xf32>
    %102 = vector.multi_reduction <maximumf>, %101, %cst_33 [2] : vector<2x8x8xf32> to vector<2x8xf32>
    %103 = vector.shape_cast %102 : vector<2x8xf32> to vector<2x8x1xf32>
    %104 = vector.broadcast %103 : vector<2x8x1xf32> to vector<2x8x8xf32>
    %105 = arith.subf %101, %104 : vector<2x8x8xf32>
    %106 = math.exp %105 : vector<2x8x8xf32>
    %cst_34 = arith.constant dense<0.000000e+00> : vector<2x8xf32>
    %107 = vector.multi_reduction <add>, %106, %cst_34 [2] : vector<2x8x8xf32> to vector<2x8xf32>
    %108 = vector.shape_cast %107 : vector<2x8xf32> to vector<2x8x1xf32>
    %109 = tpu.reciprocal %108 {approx = true} : vector<2x8x1xf32> -> vector<2x8x1xf32>
    %110 = vector.broadcast %109 : vector<2x8x1xf32> to vector<2x8x8xf32>
    %111 = arith.mulf %106, %110 : vector<2x8x8xf32>
    "tpu.trace_start"() <{level = 10 : i32, message = "bqk,bkd->bqd"}> : () -> ()
    %cst_35 = arith.constant dense<0.000000e+00> : vector<2x8x8xf32>
    %112 = tpu.matmul %111, %99, %cst_35 {dimension_numbers = #tpu.dot_dimension_numbers<[2], [1], [1], [2], [0, 0, 0, 1, 1, 2], [0], [0]>} : vector<2x8x8xf32>, vector<2x8x8xf32>, vector<2x8x8xf32> -> vector<2x8x8xf32>
    "tpu.trace_stop"() : () -> ()
    %113 = vector.shape_cast %112 : vector<2x8x8xf32> to vector<16x8xf32>
    %114 = vector.extract_strided_slice %90 {offsets = [0, 8], sizes = [16, 8], strides = [1, 1]} : vector<16x32xf32> to vector<16x8xf32>
    %115 = vector.shape_cast %114 : vector<16x8xf32> to vector<2x8x8xf32>
    %116 = vector.extract_strided_slice %92 {offsets = [0, 8], sizes = [16, 8], strides = [1, 1]} : vector<16x32xf32> to vector<16x8xf32>
    %117 = vector.shape_cast %116 : vector<16x8xf32> to vector<2x8x8xf32>
    %118 = vector.extract_strided_slice %93 {offsets = [0, 8], sizes = [16, 8], strides = [1, 1]} : vector<16x32xf32> to vector<16x8xf32>
    %119 = vector.shape_cast %118 : vector<16x8xf32> to vector<2x8x8xf32>
    "tpu.trace_start"() <{level = 10 : i32, message = "bqd,bkd->bqk"}> : () -> ()
    %cst_36 = arith.constant dense<0.000000e+00> : vector<2x8x8xf32>
    %120 = tpu.matmul %115, %117, %cst_36 {dimension_numbers = #tpu.dot_dimension_numbers<[2], [2], [1], [1], [0, 0, 0, 1, 1, 1], [0], [0]>} : vector<2x8x8xf32>, vector<2x8x8xf32>, vector<2x8x8xf32> -> vector<2x8x8xf32>
    "tpu.trace_stop"() : () -> ()
    %121 = arith.addf %120, %20 : vector<2x8x8xf32>
    %cst_37 = arith.constant dense<0xFF800000> : vector<2x8xf32>
    %122 = vector.multi_reduction <maximumf>, %121, %cst_37 [2] : vector<2x8x8xf32> to vector<2x8xf32>
    %123 = vector.shape_cast %122 : vector<2x8xf32> to vector<2x8x1xf32>
    %124 = vector.broadcast %123 : vector<2x8x1xf32> to vector<2x8x8xf32>
    %125 = arith.subf %121, %124 : vector<2x8x8xf32>
    %126 = math.exp %125 : vector<2x8x8xf32>
    %cst_38 = arith.constant dense<0.000000e+00> : vector<2x8xf32>
    %127 = vector.multi_reduction <add>, %126, %cst_38 [2] : vector<2x8x8xf32> to vector<2x8xf32>
    %128 = vector.shape_cast %127 : vector<2x8xf32> to vector<2x8x1xf32>
    %129 = tpu.reciprocal %128 {approx = true} : vector<2x8x1xf32> -> vector<2x8x1xf32>
    %130 = vector.broadcast %129 : vector<2x8x1xf32> to vector<2x8x8xf32>
    %131 = arith.mulf %126, %130 : vector<2x8x8xf32>
    "tpu.trace_start"() <{level = 10 : i32, message = "bqk,bkd->bqd"}> : () -> ()
    %cst_39 = arith.constant dense<0.000000e+00> : vector<2x8x8xf32>
    %132 = tpu.matmul %131, %119, %cst_39 {dimension_numbers = #tpu.dot_dimension_numbers<[2], [1], [1], [2], [0, 0, 0, 1, 1, 2], [0], [0]>} : vector<2x8x8xf32>, vector<2x8x8xf32>, vector<2x8x8xf32> -> vector<2x8x8xf32>
    "tpu.trace_stop"() : () -> ()
    %133 = vector.shape_cast %132 : vector<2x8x8xf32> to vector<16x8xf32>
    %134 = vector.extract_strided_slice %90 {offsets = [0, 16], sizes = [16, 8], strides = [1, 1]} : vector<16x32xf32> to vector<16x8xf32>
    %135 = vector.shape_cast %134 : vector<16x8xf32> to vector<2x8x8xf32>
    %136 = vector.extract_strided_slice %92 {offsets = [0, 16], sizes = [16, 8], strides = [1, 1]} : vector<16x32xf32> to vector<16x8xf32>
    %137 = vector.shape_cast %136 : vector<16x8xf32> to vector<2x8x8xf32>
    %138 = vector.extract_strided_slice %93 {offsets = [0, 16], sizes = [16, 8], strides = [1, 1]} : vector<16x32xf32> to vector<16x8xf32>
    %139 = vector.shape_cast %138 : vector<16x8xf32> to vector<2x8x8xf32>
    "tpu.trace_start"() <{level = 10 : i32, message = "bqd,bkd->bqk"}> : () -> ()
    %cst_40 = arith.constant dense<0.000000e+00> : vector<2x8x8xf32>
    %140 = tpu.matmul %135, %137, %cst_40 {dimension_numbers = #tpu.dot_dimension_numbers<[2], [2], [1], [1], [0, 0, 0, 1, 1, 1], [0], [0]>} : vector<2x8x8xf32>, vector<2x8x8xf32>, vector<2x8x8xf32> -> vector<2x8x8xf32>
    "tpu.trace_stop"() : () -> ()
    %141 = arith.addf %140, %26 : vector<2x8x8xf32>
    %cst_41 = arith.constant dense<0xFF800000> : vector<2x8xf32>
    %142 = vector.multi_reduction <maximumf>, %141, %cst_41 [2] : vector<2x8x8xf32> to vector<2x8xf32>
    %143 = vector.shape_cast %142 : vector<2x8xf32> to vector<2x8x1xf32>
    %144 = vector.broadcast %143 : vector<2x8x1xf32> to vector<2x8x8xf32>
    %145 = arith.subf %141, %144 : vector<2x8x8xf32>
    %146 = math.exp %145 : vector<2x8x8xf32>
    %cst_42 = arith.constant dense<0.000000e+00> : vector<2x8xf32>
    %147 = vector.multi_reduction <add>, %146, %cst_42 [2] : vector<2x8x8xf32> to vector<2x8xf32>
    %148 = vector.shape_cast %147 : vector<2x8xf32> to vector<2x8x1xf32>
    %149 = tpu.reciprocal %148 {approx = true} : vector<2x8x1xf32> -> vector<2x8x1xf32>
    %150 = vector.broadcast %149 : vector<2x8x1xf32> to vector<2x8x8xf32>
    %151 = arith.mulf %146, %150 : vector<2x8x8xf32>
    "tpu.trace_start"() <{level = 10 : i32, message = "bqk,bkd->bqd"}> : () -> ()
    %cst_43 = arith.constant dense<0.000000e+00> : vector<2x8x8xf32>
    %152 = tpu.matmul %151, %139, %cst_43 {dimension_numbers = #tpu.dot_dimension_numbers<[2], [1], [1], [2], [0, 0, 0, 1, 1, 2], [0], [0]>} : vector<2x8x8xf32>, vector<2x8x8xf32>, vector<2x8x8xf32> -> vector<2x8x8xf32>
    "tpu.trace_stop"() : () -> ()
    %153 = vector.shape_cast %152 : vector<2x8x8xf32> to vector<16x8xf32>
    %154 = vector.extract_strided_slice %90 {offsets = [0, 24], sizes = [16, 8], strides = [1, 1]} : vector<16x32xf32> to vector<16x8xf32>
    %155 = vector.shape_cast %154 : vector<16x8xf32> to vector<2x8x8xf32>
    %156 = vector.extract_strided_slice %92 {offsets = [0, 24], sizes = [16, 8], strides = [1, 1]} : vector<16x32xf32> to vector<16x8xf32>
    %157 = vector.shape_cast %156 : vector<16x8xf32> to vector<2x8x8xf32>
    %158 = vector.extract_strided_slice %93 {offsets = [0, 24], sizes = [16, 8], strides = [1, 1]} : vector<16x32xf32> to vector<16x8xf32>
    %159 = vector.shape_cast %158 : vector<16x8xf32> to vector<2x8x8xf32>
    "tpu.trace_start"() <{level = 10 : i32, message = "bqd,bkd->bqk"}> : () -> ()
    %cst_44 = arith.constant dense<0.000000e+00> : vector<2x8x8xf32>
    %160 = tpu.matmul %155, %157, %cst_44 {dimension_numbers = #tpu.dot_dimension_numbers<[2], [2], [1], [1], [0, 0, 0, 1, 1, 1], [0], [0]>} : vector<2x8x8xf32>, vector<2x8x8xf32>, vector<2x8x8xf32> -> vector<2x8x8xf32>
    "tpu.trace_stop"() : () -> ()
    %161 = arith.addf %160, %32 : vector<2x8x8xf32>
    %cst_45 = arith.constant dense<0xFF800000> : vector<2x8xf32>
    %162 = vector.multi_reduction <maximumf>, %161, %cst_45 [2] : vector<2x8x8xf32> to vector<2x8xf32>
    %163 = vector.shape_cast %162 : vector<2x8xf32> to vector<2x8x1xf32>
    %164 = vector.broadcast %163 : vector<2x8x1xf32> to vector<2x8x8xf32>
    %165 = arith.subf %161, %164 : vector<2x8x8xf32>
    %166 = math.exp %165 : vector<2x8x8xf32>
    %cst_46 = arith.constant dense<0.000000e+00> : vector<2x8xf32>
    %167 = vector.multi_reduction <add>, %166, %cst_46 [2] : vector<2x8x8xf32> to vector<2x8xf32>
    %168 = vector.shape_cast %167 : vector<2x8xf32> to vector<2x8x1xf32>
    %169 = tpu.reciprocal %168 {approx = true} : vector<2x8x1xf32> -> vector<2x8x1xf32>
    %170 = vector.broadcast %169 : vector<2x8x1xf32> to vector<2x8x8xf32>
    %171 = arith.mulf %166, %170 : vector<2x8x8xf32>
    "tpu.trace_start"() <{level = 10 : i32, message = "bqk,bkd->bqd"}> : () -> ()
    %cst_47 = arith.constant dense<0.000000e+00> : vector<2x8x8xf32>
    %172 = tpu.matmul %171, %159, %cst_47 {dimension_numbers = #tpu.dot_dimension_numbers<[2], [1], [1], [2], [0, 0, 0, 1, 1, 2], [0], [0]>} : vector<2x8x8xf32>, vector<2x8x8xf32>, vector<2x8x8xf32> -> vector<2x8x8xf32>
    "tpu.trace_stop"() : () -> ()
    %173 = vector.shape_cast %172 : vector<2x8x8xf32> to vector<16x8xf32>
    %174 = tpu.concatenate %113, %133, %153, %173 in 1 : vector<16x8xf32>, vector<16x8xf32>, vector<16x8xf32>, vector<16x8xf32> -> vector<16x32xf32>
    %175 = arith.truncf %174 : vector<16x32xf32> to vector<16x32xbf16>
    %cst_48 = arith.constant dense<0.000000e+00> : vector<16x32xf32>
    %176 = tpu.matmul %175, %59, %cst_48 {dimension_numbers = #tpu.dot_dimension_numbers<[1], [0], [0], [1], [0, 0, 1, 1], [], []>} : vector<16x32xbf16>, vector<32x32xbf16>, vector<16x32xf32> -> vector<16x32xf32>
    %177 = vector.shape_cast %176 : vector<16x32xf32> to vector<2x8x32xf32>
    %178 = arith.addf %0, %177 : vector<2x8x32xf32>
    %c0_49 = arith.constant 0 : index
    %c0_50 = arith.constant 0 : index
    %179 = vector.load %arg10[%c0_49, %c0_50] : memref<1x32xf32, #tpu.memory_space<vmem>>, vector<1x32xf32>
    %c0_51 = arith.constant 0 : index
    %c0_52 = arith.constant 0 : index
    %180 = vector.load %arg11[%c0_51, %c0_52] : memref<32x64xbf16, #tpu.memory_space<vmem>>, vector<32x64xbf16>
    %c0_53 = arith.constant 0 : index
    %c0_54 = arith.constant 0 : index
    %181 = vector.load %arg12[%c0_53, %c0_54] : memref<64x32xbf16, #tpu.memory_space<vmem>>, vector<64x32xbf16>
    %182 = arith.mulf %178, %178 : vector<2x8x32xf32>
    %cst_55 = arith.constant dense<0.000000e+00> : vector<2x8xf32>
    %183 = vector.multi_reduction <add>, %182, %cst_55 [2] : vector<2x8x32xf32> to vector<2x8xf32>
    %184 = vector.shape_cast %183 : vector<2x8xf32> to vector<2x8x1xf32>
    %cst_56 = arith.constant 3.200000e+01 : f32
    %185 = vector.broadcast %cst_56 : f32 to vector<2x8x1xf32>
    %186 = arith.divf %184, %185 : vector<2x8x1xf32>
    %cst_57 = arith.constant 9.99999997E-7 : f32
    %187 = vector.broadcast %cst_57 : f32 to vector<2x8x1xf32>
    %188 = arith.addf %186, %187 : vector<2x8x1xf32>
    %189 = math.rsqrt %188 : vector<2x8x1xf32>
    %190 = vector.broadcast %189 : vector<2x8x1xf32> to vector<2x8x32xf32>
    %191 = arith.mulf %178, %190 : vector<2x8x32xf32>
    %192 = vector.shape_cast %179 : vector<1x32xf32> to vector<1x1x32xf32>
    %193 = vector.broadcast %192 : vector<1x1x32xf32> to vector<2x8x32xf32>
    %194 = arith.mulf %191, %193 : vector<2x8x32xf32>
    %195 = vector.shape_cast %194 : vector<2x8x32xf32> to vector<16x32xf32>
    %196 = arith.truncf %195 : vector<16x32xf32> to vector<16x32xbf16>
    %cst_58 = arith.constant dense<0.000000e+00> : vector<16x64xf32>
    %197 = tpu.matmul %196, %180, %cst_58 {dimension_numbers = #tpu.dot_dimension_numbers<[1], [0], [0], [1], [0, 0, 1, 1], [], []>} : vector<16x32xbf16>, vector<32x64xbf16>, vector<16x64xf32> -> vector<16x64xf32>
    %cst_59 = arith.constant 0.000000e+00 : f32
    %198 = vector.broadcast %cst_59 : f32 to vector<16x64xf32>
    %199 = arith.maximumf %197, %198 : vector<16x64xf32>
    %200 = arith.truncf %199 : vector<16x64xf32> to vector<16x64xbf16>
    %cst_60 = arith.constant dense<0.000000e+00> : vector<16x32xf32>
    %201 = tpu.matmul %200, %181, %cst_60 {dimension_numbers = #tpu.dot_dimension_numbers<[1], [0], [0], [1], [0, 0, 1, 1], [], []>} : vector<16x64xbf16>, vector<64x32xbf16>, vector<16x32xf32> -> vector<16x32xf32>
    %202 = vector.shape_cast %201 : vector<16x32xf32> to vector<2x8x32xf32>
    %203 = arith.addf %178, %202 : vector<2x8x32xf32>
    %c0_61 = arith.constant 0 : index
    %c0_62 = arith.constant 0 : index
    %204 = vector.load %arg14[%c0_61, %c0_62] : memref<1x32xf32, #tpu.memory_space<vmem>>, vector<1x32xf32>
    %c0_63 = arith.constant 0 : index
    %c0_64 = arith.constant 0 : index
    %205 = vector.load %arg15[%c0_63, %c0_64] : memref<32x32xbf16, #tpu.memory_space<vmem>>, vector<32x32xbf16>
    %c0_65 = arith.constant 0 : index
    %c0_66 = arith.constant 0 : index
    %206 = vector.load %arg16[%c0_65, %c0_66] : memref<32x64xbf16, #tpu.memory_space<vmem>>, vector<32x64xbf16>
    %c0_67 = arith.constant 0 : index
    %c0_68 = arith.constant 0 : index
    %207 = vector.load %arg17[%c0_67, %c0_68] : memref<32x32xbf16, #tpu.memory_space<vmem>>, vector<32x32xbf16>
    %208 = arith.mulf %1, %1 : vector<2x8x32xf32>
    %cst_69 = arith.constant dense<0.000000e+00> : vector<2x8xf32>
    %209 = vector.multi_reduction <add>, %208, %cst_69 [2] : vector<2x8x32xf32> to vector<2x8xf32>
    %210 = vector.shape_cast %209 : vector<2x8xf32> to vector<2x8x1xf32>
    %cst_70 = arith.constant 3.200000e+01 : f32
    %211 = vector.broadcast %cst_70 : f32 to vector<2x8x1xf32>
    %212 = arith.divf %210, %211 : vector<2x8x1xf32>
    %cst_71 = arith.constant 9.99999997E-7 : f32
    %213 = vector.broadcast %cst_71 : f32 to vector<2x8x1xf32>
    %214 = arith.addf %212, %213 : vector<2x8x1xf32>
    %215 = math.rsqrt %214 : vector<2x8x1xf32>
    %216 = vector.broadcast %215 : vector<2x8x1xf32> to vector<2x8x32xf32>
    %217 = arith.mulf %1, %216 : vector<2x8x32xf32>
    %218 = vector.shape_cast %204 : vector<1x32xf32> to vector<1x1x32xf32>
    %219 = vector.broadcast %218 : vector<1x1x32xf32> to vector<2x8x32xf32>
    %220 = arith.mulf %217, %219 : vector<2x8x32xf32>
    %221 = vector.shape_cast %220 : vector<2x8x32xf32> to vector<16x32xf32>
    %222 = arith.truncf %221 : vector<16x32xf32> to vector<16x32xbf16>
    %223 = arith.mulf %1, %1 : vector<2x8x32xf32>
    %cst_72 = arith.constant dense<0.000000e+00> : vector<2x8xf32>
    %224 = vector.multi_reduction <add>, %223, %cst_72 [2] : vector<2x8x32xf32> to vector<2x8xf32>
    %225 = vector.shape_cast %224 : vector<2x8xf32> to vector<2x8x1xf32>
    %cst_73 = arith.constant 3.200000e+01 : f32
    %226 = vector.broadcast %cst_73 : f32 to vector<2x8x1xf32>
    %227 = arith.divf %225, %226 : vector<2x8x1xf32>
    %cst_74 = arith.constant 9.99999997E-7 : f32
    %228 = vector.broadcast %cst_74 : f32 to vector<2x8x1xf32>
    %229 = arith.addf %227, %228 : vector<2x8x1xf32>
    %230 = math.rsqrt %229 : vector<2x8x1xf32>
    %231 = vector.broadcast %230 : vector<2x8x1xf32> to vector<2x8x32xf32>
    %232 = arith.mulf %1, %231 : vector<2x8x32xf32>
    %233 = vector.shape_cast %204 : vector<1x32xf32> to vector<1x1x32xf32>
    %234 = vector.broadcast %233 : vector<1x1x32xf32> to vector<2x8x32xf32>
    %235 = arith.mulf %232, %234 : vector<2x8x32xf32>
    %236 = vector.shape_cast %235 : vector<2x8x32xf32> to vector<16x32xf32>
    %237 = arith.truncf %236 : vector<16x32xf32> to vector<16x32xbf16>
    %cst_75 = arith.constant dense<0.000000e+00> : vector<16x32xf32>
    %238 = tpu.matmul %222, %205, %cst_75 {dimension_numbers = #tpu.dot_dimension_numbers<[1], [0], [0], [1], [0, 0, 1, 1], [], []>} : vector<16x32xbf16>, vector<32x32xbf16>, vector<16x32xf32> -> vector<16x32xf32>
    %cst_76 = arith.constant dense<0.000000e+00> : vector<16x64xf32>
    %239 = tpu.matmul %237, %206, %cst_76 {dimension_numbers = #tpu.dot_dimension_numbers<[1], [0], [0], [1], [0, 0, 1, 1], [], []>} : vector<16x32xbf16>, vector<32x64xbf16>, vector<16x64xf32> -> vector<16x64xf32>
    %240 = vector.extract_strided_slice %239 {offsets = [0, 0], sizes = [16, 32], strides = [1, 1]} : vector<16x64xf32> to vector<16x32xf32>
    %241 = vector.extract_strided_slice %239 {offsets = [0, 32], sizes = [16, 32], strides = [1, 1]} : vector<16x64xf32> to vector<16x32xf32>
    %242 = vector.extract_strided_slice %238 {offsets = [0, 0], sizes = [16, 8], strides = [1, 1]} : vector<16x32xf32> to vector<16x8xf32>
    %243 = vector.shape_cast %242 : vector<16x8xf32> to vector<2x8x8xf32>
    %244 = vector.extract_strided_slice %240 {offsets = [0, 0], sizes = [16, 8], strides = [1, 1]} : vector<16x32xf32> to vector<16x8xf32>
    %245 = vector.shape_cast %244 : vector<16x8xf32> to vector<2x8x8xf32>
    %246 = vector.extract_strided_slice %241 {offsets = [0, 0], sizes = [16, 8], strides = [1, 1]} : vector<16x32xf32> to vector<16x8xf32>
    %247 = vector.shape_cast %246 : vector<16x8xf32> to vector<2x8x8xf32>
    "tpu.trace_start"() <{level = 10 : i32, message = "bqd,bkd->bqk"}> : () -> ()
    %cst_77 = arith.constant dense<0.000000e+00> : vector<2x8x8xf32>
    %248 = tpu.matmul %243, %245, %cst_77 {dimension_numbers = #tpu.dot_dimension_numbers<[2], [2], [1], [1], [0, 0, 0, 1, 1, 1], [0], [0]>} : vector<2x8x8xf32>, vector<2x8x8xf32>, vector<2x8x8xf32> -> vector<2x8x8xf32>
    "tpu.trace_stop"() : () -> ()
    %249 = vector.broadcast %43 : vector<1x8x8xf32> to vector<2x8x8xf32>
    %250 = arith.addf %248, %249 : vector<2x8x8xf32>
    %cst_78 = arith.constant dense<0xFF800000> : vector<2x8xf32>
    %251 = vector.multi_reduction <maximumf>, %250, %cst_78 [2] : vector<2x8x8xf32> to vector<2x8xf32>
    %252 = vector.shape_cast %251 : vector<2x8xf32> to vector<2x8x1xf32>
    %253 = vector.broadcast %252 : vector<2x8x1xf32> to vector<2x8x8xf32>
    %254 = arith.subf %250, %253 : vector<2x8x8xf32>
    %255 = math.exp %254 : vector<2x8x8xf32>
    %cst_79 = arith.constant dense<0.000000e+00> : vector<2x8xf32>
    %256 = vector.multi_reduction <add>, %255, %cst_79 [2] : vector<2x8x8xf32> to vector<2x8xf32>
    %257 = vector.shape_cast %256 : vector<2x8xf32> to vector<2x8x1xf32>
    %258 = tpu.reciprocal %257 {approx = true} : vector<2x8x1xf32> -> vector<2x8x1xf32>
    %259 = vector.broadcast %258 : vector<2x8x1xf32> to vector<2x8x8xf32>
    %260 = arith.mulf %255, %259 : vector<2x8x8xf32>
    "tpu.trace_start"() <{level = 10 : i32, message = "bqk,bkd->bqd"}> : () -> ()
    %cst_80 = arith.constant dense<0.000000e+00> : vector<2x8x8xf32>
    %261 = tpu.matmul %260, %247, %cst_80 {dimension_numbers = #tpu.dot_dimension_numbers<[2], [1], [1], [2], [0, 0, 0, 1, 1, 2], [0], [0]>} : vector<2x8x8xf32>, vector<2x8x8xf32>, vector<2x8x8xf32> -> vector<2x8x8xf32>
    "tpu.trace_stop"() : () -> ()
    %262 = vector.shape_cast %261 : vector<2x8x8xf32> to vector<16x8xf32>
    %263 = vector.extract_strided_slice %238 {offsets = [0, 8], sizes = [16, 8], strides = [1, 1]} : vector<16x32xf32> to vector<16x8xf32>
    %264 = vector.shape_cast %263 : vector<16x8xf32> to vector<2x8x8xf32>
    %265 = vector.extract_strided_slice %240 {offsets = [0, 8], sizes = [16, 8], strides = [1, 1]} : vector<16x32xf32> to vector<16x8xf32>
    %266 = vector.shape_cast %265 : vector<16x8xf32> to vector<2x8x8xf32>
    %267 = vector.extract_strided_slice %241 {offsets = [0, 8], sizes = [16, 8], strides = [1, 1]} : vector<16x32xf32> to vector<16x8xf32>
    %268 = vector.shape_cast %267 : vector<16x8xf32> to vector<2x8x8xf32>
    "tpu.trace_start"() <{level = 10 : i32, message = "bqd,bkd->bqk"}> : () -> ()
    %cst_81 = arith.constant dense<0.000000e+00> : vector<2x8x8xf32>
    %269 = tpu.matmul %264, %266, %cst_81 {dimension_numbers = #tpu.dot_dimension_numbers<[2], [2], [1], [1], [0, 0, 0, 1, 1, 1], [0], [0]>} : vector<2x8x8xf32>, vector<2x8x8xf32>, vector<2x8x8xf32> -> vector<2x8x8xf32>
    "tpu.trace_stop"() : () -> ()
    %270 = vector.broadcast %47 : vector<1x8x8xf32> to vector<2x8x8xf32>
    %271 = arith.addf %269, %270 : vector<2x8x8xf32>
    %cst_82 = arith.constant dense<0xFF800000> : vector<2x8xf32>
    %272 = vector.multi_reduction <maximumf>, %271, %cst_82 [2] : vector<2x8x8xf32> to vector<2x8xf32>
    %273 = vector.shape_cast %272 : vector<2x8xf32> to vector<2x8x1xf32>
    %274 = vector.broadcast %273 : vector<2x8x1xf32> to vector<2x8x8xf32>
    %275 = arith.subf %271, %274 : vector<2x8x8xf32>
    %276 = math.exp %275 : vector<2x8x8xf32>
    %cst_83 = arith.constant dense<0.000000e+00> : vector<2x8xf32>
    %277 = vector.multi_reduction <add>, %276, %cst_83 [2] : vector<2x8x8xf32> to vector<2x8xf32>
    %278 = vector.shape_cast %277 : vector<2x8xf32> to vector<2x8x1xf32>
    %279 = tpu.reciprocal %278 {approx = true} : vector<2x8x1xf32> -> vector<2x8x1xf32>
    %280 = vector.broadcast %279 : vector<2x8x1xf32> to vector<2x8x8xf32>
    %281 = arith.mulf %276, %280 : vector<2x8x8xf32>
    "tpu.trace_start"() <{level = 10 : i32, message = "bqk,bkd->bqd"}> : () -> ()
    %cst_84 = arith.constant dense<0.000000e+00> : vector<2x8x8xf32>
    %282 = tpu.matmul %281, %268, %cst_84 {dimension_numbers = #tpu.dot_dimension_numbers<[2], [1], [1], [2], [0, 0, 0, 1, 1, 2], [0], [0]>} : vector<2x8x8xf32>, vector<2x8x8xf32>, vector<2x8x8xf32> -> vector<2x8x8xf32>
    "tpu.trace_stop"() : () -> ()
    %283 = vector.shape_cast %282 : vector<2x8x8xf32> to vector<16x8xf32>
    %284 = vector.extract_strided_slice %238 {offsets = [0, 16], sizes = [16, 8], strides = [1, 1]} : vector<16x32xf32> to vector<16x8xf32>
    %285 = vector.shape_cast %284 : vector<16x8xf32> to vector<2x8x8xf32>
    %286 = vector.extract_strided_slice %240 {offsets = [0, 16], sizes = [16, 8], strides = [1, 1]} : vector<16x32xf32> to vector<16x8xf32>
    %287 = vector.shape_cast %286 : vector<16x8xf32> to vector<2x8x8xf32>
    %288 = vector.extract_strided_slice %241 {offsets = [0, 16], sizes = [16, 8], strides = [1, 1]} : vector<16x32xf32> to vector<16x8xf32>
    %289 = vector.shape_cast %288 : vector<16x8xf32> to vector<2x8x8xf32>
    "tpu.trace_start"() <{level = 10 : i32, message = "bqd,bkd->bqk"}> : () -> ()
    %cst_85 = arith.constant dense<0.000000e+00> : vector<2x8x8xf32>
    %290 = tpu.matmul %285, %287, %cst_85 {dimension_numbers = #tpu.dot_dimension_numbers<[2], [2], [1], [1], [0, 0, 0, 1, 1, 1], [0], [0]>} : vector<2x8x8xf32>, vector<2x8x8xf32>, vector<2x8x8xf32> -> vector<2x8x8xf32>
    "tpu.trace_stop"() : () -> ()
    %291 = vector.broadcast %51 : vector<1x8x8xf32> to vector<2x8x8xf32>
    %292 = arith.addf %290, %291 : vector<2x8x8xf32>
    %cst_86 = arith.constant dense<0xFF800000> : vector<2x8xf32>
    %293 = vector.multi_reduction <maximumf>, %292, %cst_86 [2] : vector<2x8x8xf32> to vector<2x8xf32>
    %294 = vector.shape_cast %293 : vector<2x8xf32> to vector<2x8x1xf32>
    %295 = vector.broadcast %294 : vector<2x8x1xf32> to vector<2x8x8xf32>
    %296 = arith.subf %292, %295 : vector<2x8x8xf32>
    %297 = math.exp %296 : vector<2x8x8xf32>
    %cst_87 = arith.constant dense<0.000000e+00> : vector<2x8xf32>
    %298 = vector.multi_reduction <add>, %297, %cst_87 [2] : vector<2x8x8xf32> to vector<2x8xf32>
    %299 = vector.shape_cast %298 : vector<2x8xf32> to vector<2x8x1xf32>
    %300 = tpu.reciprocal %299 {approx = true} : vector<2x8x1xf32> -> vector<2x8x1xf32>
    %301 = vector.broadcast %300 : vector<2x8x1xf32> to vector<2x8x8xf32>
    %302 = arith.mulf %297, %301 : vector<2x8x8xf32>
    "tpu.trace_start"() <{level = 10 : i32, message = "bqk,bkd->bqd"}> : () -> ()
    %cst_88 = arith.constant dense<0.000000e+00> : vector<2x8x8xf32>
    %303 = tpu.matmul %302, %289, %cst_88 {dimension_numbers = #tpu.dot_dimension_numbers<[2], [1], [1], [2], [0, 0, 0, 1, 1, 2], [0], [0]>} : vector<2x8x8xf32>, vector<2x8x8xf32>, vector<2x8x8xf32> -> vector<2x8x8xf32>
    "tpu.trace_stop"() : () -> ()
    %304 = vector.shape_cast %303 : vector<2x8x8xf32> to vector<16x8xf32>
    %305 = vector.extract_strided_slice %238 {offsets = [0, 24], sizes = [16, 8], strides = [1, 1]} : vector<16x32xf32> to vector<16x8xf32>
    %306 = vector.shape_cast %305 : vector<16x8xf32> to vector<2x8x8xf32>
    %307 = vector.extract_strided_slice %240 {offsets = [0, 24], sizes = [16, 8], strides = [1, 1]} : vector<16x32xf32> to vector<16x8xf32>
    %308 = vector.shape_cast %307 : vector<16x8xf32> to vector<2x8x8xf32>
    %309 = vector.extract_strided_slice %241 {offsets = [0, 24], sizes = [16, 8], strides = [1, 1]} : vector<16x32xf32> to vector<16x8xf32>
    %310 = vector.shape_cast %309 : vector<16x8xf32> to vector<2x8x8xf32>
    "tpu.trace_start"() <{level = 10 : i32, message = "bqd,bkd->bqk"}> : () -> ()
    %cst_89 = arith.constant dense<0.000000e+00> : vector<2x8x8xf32>
    %311 = tpu.matmul %306, %308, %cst_89 {dimension_numbers = #tpu.dot_dimension_numbers<[2], [2], [1], [1], [0, 0, 0, 1, 1, 1], [0], [0]>} : vector<2x8x8xf32>, vector<2x8x8xf32>, vector<2x8x8xf32> -> vector<2x8x8xf32>
    "tpu.trace_stop"() : () -> ()
    %312 = vector.broadcast %55 : vector<1x8x8xf32> to vector<2x8x8xf32>
    %313 = arith.addf %311, %312 : vector<2x8x8xf32>
    %cst_90 = arith.constant dense<0xFF800000> : vector<2x8xf32>
    %314 = vector.multi_reduction <maximumf>, %313, %cst_90 [2] : vector<2x8x8xf32> to vector<2x8xf32>
    %315 = vector.shape_cast %314 : vector<2x8xf32> to vector<2x8x1xf32>
    %316 = vector.broadcast %315 : vector<2x8x1xf32> to vector<2x8x8xf32>
    %317 = arith.subf %313, %316 : vector<2x8x8xf32>
    %318 = math.exp %317 : vector<2x8x8xf32>
    %cst_91 = arith.constant dense<0.000000e+00> : vector<2x8xf32>
    %319 = vector.multi_reduction <add>, %318, %cst_91 [2] : vector<2x8x8xf32> to vector<2x8xf32>
    %320 = vector.shape_cast %319 : vector<2x8xf32> to vector<2x8x1xf32>
    %321 = tpu.reciprocal %320 {approx = true} : vector<2x8x1xf32> -> vector<2x8x1xf32>
    %322 = vector.broadcast %321 : vector<2x8x1xf32> to vector<2x8x8xf32>
    %323 = arith.mulf %318, %322 : vector<2x8x8xf32>
    "tpu.trace_start"() <{level = 10 : i32, message = "bqk,bkd->bqd"}> : () -> ()
    %cst_92 = arith.constant dense<0.000000e+00> : vector<2x8x8xf32>
    %324 = tpu.matmul %323, %310, %cst_92 {dimension_numbers = #tpu.dot_dimension_numbers<[2], [1], [1], [2], [0, 0, 0, 1, 1, 2], [0], [0]>} : vector<2x8x8xf32>, vector<2x8x8xf32>, vector<2x8x8xf32> -> vector<2x8x8xf32>
    "tpu.trace_stop"() : () -> ()
    %325 = vector.shape_cast %324 : vector<2x8x8xf32> to vector<16x8xf32>
    %326 = tpu.concatenate %262, %283, %304, %325 in 1 : vector<16x8xf32>, vector<16x8xf32>, vector<16x8xf32>, vector<16x8xf32> -> vector<16x32xf32>
    %327 = arith.truncf %326 : vector<16x32xf32> to vector<16x32xbf16>
    %cst_93 = arith.constant dense<0.000000e+00> : vector<16x32xf32>
    %328 = tpu.matmul %327, %207, %cst_93 {dimension_numbers = #tpu.dot_dimension_numbers<[1], [0], [0], [1], [0, 0, 1, 1], [], []>} : vector<16x32xbf16>, vector<32x32xbf16>, vector<16x32xf32> -> vector<16x32xf32>
    %329 = vector.shape_cast %328 : vector<16x32xf32> to vector<2x8x32xf32>
    %330 = arith.addf %1, %329 : vector<2x8x32xf32>
    %c0_94 = arith.constant 0 : index
    %c0_95 = arith.constant 0 : index
    %331 = vector.load %arg18[%c0_94, %c0_95] : memref<1x32xf32, #tpu.memory_space<vmem>>, vector<1x32xf32>
    %c0_96 = arith.constant 0 : index
    %c0_97 = arith.constant 0 : index
    %332 = vector.load %arg13[%c0_96, %c0_97] : memref<1x32xf32, #tpu.memory_space<vmem>>, vector<1x32xf32>
    %c0_98 = arith.constant 0 : index
    %c0_99 = arith.constant 0 : index
    %333 = vector.load %arg19[%c0_98, %c0_99] : memref<32x32xbf16, #tpu.memory_space<vmem>>, vector<32x32xbf16>
    %c0_100 = arith.constant 0 : index
    %c0_101 = arith.constant 0 : index
    %334 = vector.load %arg20[%c0_100, %c0_101] : memref<32x64xbf16, #tpu.memory_space<vmem>>, vector<32x64xbf16>
    %c0_102 = arith.constant 0 : index
    %c0_103 = arith.constant 0 : index
    %335 = vector.load %arg21[%c0_102, %c0_103] : memref<32x32xbf16, #tpu.memory_space<vmem>>, vector<32x32xbf16>
    %336 = arith.mulf %330, %330 : vector<2x8x32xf32>
    %cst_104 = arith.constant dense<0.000000e+00> : vector<2x8xf32>
    %337 = vector.multi_reduction <add>, %336, %cst_104 [2] : vector<2x8x32xf32> to vector<2x8xf32>
    %338 = vector.shape_cast %337 : vector<2x8xf32> to vector<2x8x1xf32>
    %cst_105 = arith.constant 3.200000e+01 : f32
    %339 = vector.broadcast %cst_105 : f32 to vector<2x8x1xf32>
    %340 = arith.divf %338, %339 : vector<2x8x1xf32>
    %cst_106 = arith.constant 9.99999997E-7 : f32
    %341 = vector.broadcast %cst_106 : f32 to vector<2x8x1xf32>
    %342 = arith.addf %340, %341 : vector<2x8x1xf32>
    %343 = math.rsqrt %342 : vector<2x8x1xf32>
    %344 = vector.broadcast %343 : vector<2x8x1xf32> to vector<2x8x32xf32>
    %345 = arith.mulf %330, %344 : vector<2x8x32xf32>
    %346 = vector.shape_cast %331 : vector<1x32xf32> to vector<1x1x32xf32>
    %347 = vector.broadcast %346 : vector<1x1x32xf32> to vector<2x8x32xf32>
    %348 = arith.mulf %345, %347 : vector<2x8x32xf32>
    %349 = vector.shape_cast %348 : vector<2x8x32xf32> to vector<16x32xf32>
    %350 = arith.truncf %349 : vector<16x32xf32> to vector<16x32xbf16>
    %351 = arith.mulf %203, %203 : vector<2x8x32xf32>
    %cst_107 = arith.constant dense<0.000000e+00> : vector<2x8xf32>
    %352 = vector.multi_reduction <add>, %351, %cst_107 [2] : vector<2x8x32xf32> to vector<2x8xf32>
    %353 = vector.shape_cast %352 : vector<2x8xf32> to vector<2x8x1xf32>
    %cst_108 = arith.constant 3.200000e+01 : f32
    %354 = vector.broadcast %cst_108 : f32 to vector<2x8x1xf32>
    %355 = arith.divf %353, %354 : vector<2x8x1xf32>
    %cst_109 = arith.constant 9.99999997E-7 : f32
    %356 = vector.broadcast %cst_109 : f32 to vector<2x8x1xf32>
    %357 = arith.addf %355, %356 : vector<2x8x1xf32>
    %358 = math.rsqrt %357 : vector<2x8x1xf32>
    %359 = vector.broadcast %358 : vector<2x8x1xf32> to vector<2x8x32xf32>
    %360 = arith.mulf %203, %359 : vector<2x8x32xf32>
    %361 = vector.shape_cast %332 : vector<1x32xf32> to vector<1x1x32xf32>
    %362 = vector.broadcast %361 : vector<1x1x32xf32> to vector<2x8x32xf32>
    %363 = arith.mulf %360, %362 : vector<2x8x32xf32>
    %364 = vector.shape_cast %363 : vector<2x8x32xf32> to vector<16x32xf32>
    %365 = arith.truncf %364 : vector<16x32xf32> to vector<16x32xbf16>
    %cst_110 = arith.constant dense<0.000000e+00> : vector<16x32xf32>
    %366 = tpu.matmul %350, %333, %cst_110 {dimension_numbers = #tpu.dot_dimension_numbers<[1], [0], [0], [1], [0, 0, 1, 1], [], []>} : vector<16x32xbf16>, vector<32x32xbf16>, vector<16x32xf32> -> vector<16x32xf32>
    %cst_111 = arith.constant dense<0.000000e+00> : vector<16x64xf32>
    %367 = tpu.matmul %365, %334, %cst_111 {dimension_numbers = #tpu.dot_dimension_numbers<[1], [0], [0], [1], [0, 0, 1, 1], [], []>} : vector<16x32xbf16>, vector<32x64xbf16>, vector<16x64xf32> -> vector<16x64xf32>
    %368 = vector.extract_strided_slice %367 {offsets = [0, 0], sizes = [16, 32], strides = [1, 1]} : vector<16x64xf32> to vector<16x32xf32>
    %369 = vector.extract_strided_slice %367 {offsets = [0, 32], sizes = [16, 32], strides = [1, 1]} : vector<16x64xf32> to vector<16x32xf32>
    %370 = vector.extract_strided_slice %366 {offsets = [0, 0], sizes = [16, 8], strides = [1, 1]} : vector<16x32xf32> to vector<16x8xf32>
    %371 = vector.shape_cast %370 : vector<16x8xf32> to vector<2x8x8xf32>
    %372 = vector.extract_strided_slice %368 {offsets = [0, 0], sizes = [16, 8], strides = [1, 1]} : vector<16x32xf32> to vector<16x8xf32>
    %373 = vector.shape_cast %372 : vector<16x8xf32> to vector<2x8x8xf32>
    %374 = vector.extract_strided_slice %369 {offsets = [0, 0], sizes = [16, 8], strides = [1, 1]} : vector<16x32xf32> to vector<16x8xf32>
    %375 = vector.shape_cast %374 : vector<16x8xf32> to vector<2x8x8xf32>
    "tpu.trace_start"() <{level = 10 : i32, message = "bqd,bkd->bqk"}> : () -> ()
    %cst_112 = arith.constant dense<0.000000e+00> : vector<2x8x8xf32>
    %376 = tpu.matmul %371, %373, %cst_112 {dimension_numbers = #tpu.dot_dimension_numbers<[2], [2], [1], [1], [0, 0, 0, 1, 1, 1], [0], [0]>} : vector<2x8x8xf32>, vector<2x8x8xf32>, vector<2x8x8xf32> -> vector<2x8x8xf32>
    "tpu.trace_stop"() : () -> ()
    %377 = vector.broadcast %7 : vector<2x1x8xf32> to vector<2x8x8xf32>
    %378 = arith.addf %376, %377 : vector<2x8x8xf32>
    %cst_113 = arith.constant dense<0xFF800000> : vector<2x8xf32>
    %379 = vector.multi_reduction <maximumf>, %378, %cst_113 [2] : vector<2x8x8xf32> to vector<2x8xf32>
    %380 = vector.shape_cast %379 : vector<2x8xf32> to vector<2x8x1xf32>
    %381 = vector.broadcast %380 : vector<2x8x1xf32> to vector<2x8x8xf32>
    %382 = arith.subf %378, %381 : vector<2x8x8xf32>
    %383 = math.exp %382 : vector<2x8x8xf32>
    %cst_114 = arith.constant dense<0.000000e+00> : vector<2x8xf32>
    %384 = vector.multi_reduction <add>, %383, %cst_114 [2] : vector<2x8x8xf32> to vector<2x8xf32>
    %385 = vector.shape_cast %384 : vector<2x8xf32> to vector<2x8x1xf32>
    %386 = tpu.reciprocal %385 {approx = true} : vector<2x8x1xf32> -> vector<2x8x1xf32>
    %387 = vector.broadcast %386 : vector<2x8x1xf32> to vector<2x8x8xf32>
    %388 = arith.mulf %383, %387 : vector<2x8x8xf32>
    "tpu.trace_start"() <{level = 10 : i32, message = "bqk,bkd->bqd"}> : () -> ()
    %cst_115 = arith.constant dense<0.000000e+00> : vector<2x8x8xf32>
    %389 = tpu.matmul %388, %375, %cst_115 {dimension_numbers = #tpu.dot_dimension_numbers<[2], [1], [1], [2], [0, 0, 0, 1, 1, 2], [0], [0]>} : vector<2x8x8xf32>, vector<2x8x8xf32>, vector<2x8x8xf32> -> vector<2x8x8xf32>
    "tpu.trace_stop"() : () -> ()
    %390 = vector.shape_cast %389 : vector<2x8x8xf32> to vector<16x8xf32>
    %391 = vector.extract_strided_slice %366 {offsets = [0, 8], sizes = [16, 8], strides = [1, 1]} : vector<16x32xf32> to vector<16x8xf32>
    %392 = vector.shape_cast %391 : vector<16x8xf32> to vector<2x8x8xf32>
    %393 = vector.extract_strided_slice %368 {offsets = [0, 8], sizes = [16, 8], strides = [1, 1]} : vector<16x32xf32> to vector<16x8xf32>
    %394 = vector.shape_cast %393 : vector<16x8xf32> to vector<2x8x8xf32>
    %395 = vector.extract_strided_slice %369 {offsets = [0, 8], sizes = [16, 8], strides = [1, 1]} : vector<16x32xf32> to vector<16x8xf32>
    %396 = vector.shape_cast %395 : vector<16x8xf32> to vector<2x8x8xf32>
    "tpu.trace_start"() <{level = 10 : i32, message = "bqd,bkd->bqk"}> : () -> ()
    %cst_116 = arith.constant dense<0.000000e+00> : vector<2x8x8xf32>
    %397 = tpu.matmul %392, %394, %cst_116 {dimension_numbers = #tpu.dot_dimension_numbers<[2], [2], [1], [1], [0, 0, 0, 1, 1, 1], [0], [0]>} : vector<2x8x8xf32>, vector<2x8x8xf32>, vector<2x8x8xf32> -> vector<2x8x8xf32>
    "tpu.trace_stop"() : () -> ()
    %398 = vector.broadcast %7 : vector<2x1x8xf32> to vector<2x8x8xf32>
    %399 = arith.addf %397, %398 : vector<2x8x8xf32>
    %cst_117 = arith.constant dense<0xFF800000> : vector<2x8xf32>
    %400 = vector.multi_reduction <maximumf>, %399, %cst_117 [2] : vector<2x8x8xf32> to vector<2x8xf32>
    %401 = vector.shape_cast %400 : vector<2x8xf32> to vector<2x8x1xf32>
    %402 = vector.broadcast %401 : vector<2x8x1xf32> to vector<2x8x8xf32>
    %403 = arith.subf %399, %402 : vector<2x8x8xf32>
    %404 = math.exp %403 : vector<2x8x8xf32>
    %cst_118 = arith.constant dense<0.000000e+00> : vector<2x8xf32>
    %405 = vector.multi_reduction <add>, %404, %cst_118 [2] : vector<2x8x8xf32> to vector<2x8xf32>
    %406 = vector.shape_cast %405 : vector<2x8xf32> to vector<2x8x1xf32>
    %407 = tpu.reciprocal %406 {approx = true} : vector<2x8x1xf32> -> vector<2x8x1xf32>
    %408 = vector.broadcast %407 : vector<2x8x1xf32> to vector<2x8x8xf32>
    %409 = arith.mulf %404, %408 : vector<2x8x8xf32>
    "tpu.trace_start"() <{level = 10 : i32, message = "bqk,bkd->bqd"}> : () -> ()
    %cst_119 = arith.constant dense<0.000000e+00> : vector<2x8x8xf32>
    %410 = tpu.matmul %409, %396, %cst_119 {dimension_numbers = #tpu.dot_dimension_numbers<[2], [1], [1], [2], [0, 0, 0, 1, 1, 2], [0], [0]>} : vector<2x8x8xf32>, vector<2x8x8xf32>, vector<2x8x8xf32> -> vector<2x8x8xf32>
    "tpu.trace_stop"() : () -> ()
    %411 = vector.shape_cast %410 : vector<2x8x8xf32> to vector<16x8xf32>
    %412 = vector.extract_strided_slice %366 {offsets = [0, 16], sizes = [16, 8], strides = [1, 1]} : vector<16x32xf32> to vector<16x8xf32>
    %413 = vector.shape_cast %412 : vector<16x8xf32> to vector<2x8x8xf32>
    %414 = vector.extract_strided_slice %368 {offsets = [0, 16], sizes = [16, 8], strides = [1, 1]} : vector<16x32xf32> to vector<16x8xf32>
    %415 = vector.shape_cast %414 : vector<16x8xf32> to vector<2x8x8xf32>
    %416 = vector.extract_strided_slice %369 {offsets = [0, 16], sizes = [16, 8], strides = [1, 1]} : vector<16x32xf32> to vector<16x8xf32>
    %417 = vector.shape_cast %416 : vector<16x8xf32> to vector<2x8x8xf32>
    "tpu.trace_start"() <{level = 10 : i32, message = "bqd,bkd->bqk"}> : () -> ()
    %cst_120 = arith.constant dense<0.000000e+00> : vector<2x8x8xf32>
    %418 = tpu.matmul %413, %415, %cst_120 {dimension_numbers = #tpu.dot_dimension_numbers<[2], [2], [1], [1], [0, 0, 0, 1, 1, 1], [0], [0]>} : vector<2x8x8xf32>, vector<2x8x8xf32>, vector<2x8x8xf32> -> vector<2x8x8xf32>
    "tpu.trace_stop"() : () -> ()
    %419 = vector.broadcast %7 : vector<2x1x8xf32> to vector<2x8x8xf32>
    %420 = arith.addf %418, %419 : vector<2x8x8xf32>
    %cst_121 = arith.constant dense<0xFF800000> : vector<2x8xf32>
    %421 = vector.multi_reduction <maximumf>, %420, %cst_121 [2] : vector<2x8x8xf32> to vector<2x8xf32>
    %422 = vector.shape_cast %421 : vector<2x8xf32> to vector<2x8x1xf32>
    %423 = vector.broadcast %422 : vector<2x8x1xf32> to vector<2x8x8xf32>
    %424 = arith.subf %420, %423 : vector<2x8x8xf32>
    %425 = math.exp %424 : vector<2x8x8xf32>
    %cst_122 = arith.constant dense<0.000000e+00> : vector<2x8xf32>
    %426 = vector.multi_reduction <add>, %425, %cst_122 [2] : vector<2x8x8xf32> to vector<2x8xf32>
    %427 = vector.shape_cast %426 : vector<2x8xf32> to vector<2x8x1xf32>
    %428 = tpu.reciprocal %427 {approx = true} : vector<2x8x1xf32> -> vector<2x8x1xf32>
    %429 = vector.broadcast %428 : vector<2x8x1xf32> to vector<2x8x8xf32>
    %430 = arith.mulf %425, %429 : vector<2x8x8xf32>
    "tpu.trace_start"() <{level = 10 : i32, message = "bqk,bkd->bqd"}> : () -> ()
    %cst_123 = arith.constant dense<0.000000e+00> : vector<2x8x8xf32>
    %431 = tpu.matmul %430, %417, %cst_123 {dimension_numbers = #tpu.dot_dimension_numbers<[2], [1], [1], [2], [0, 0, 0, 1, 1, 2], [0], [0]>} : vector<2x8x8xf32>, vector<2x8x8xf32>, vector<2x8x8xf32> -> vector<2x8x8xf32>
    "tpu.trace_stop"() : () -> ()
    %432 = vector.shape_cast %431 : vector<2x8x8xf32> to vector<16x8xf32>
    %433 = vector.extract_strided_slice %366 {offsets = [0, 24], sizes = [16, 8], strides = [1, 1]} : vector<16x32xf32> to vector<16x8xf32>
    %434 = vector.shape_cast %433 : vector<16x8xf32> to vector<2x8x8xf32>
    %435 = vector.extract_strided_slice %368 {offsets = [0, 24], sizes = [16, 8], strides = [1, 1]} : vector<16x32xf32> to vector<16x8xf32>
    %436 = vector.shape_cast %435 : vector<16x8xf32> to vector<2x8x8xf32>
    %437 = vector.extract_strided_slice %369 {offsets = [0, 24], sizes = [16, 8], strides = [1, 1]} : vector<16x32xf32> to vector<16x8xf32>
    %438 = vector.shape_cast %437 : vector<16x8xf32> to vector<2x8x8xf32>
    "tpu.trace_start"() <{level = 10 : i32, message = "bqd,bkd->bqk"}> : () -> ()
    %cst_124 = arith.constant dense<0.000000e+00> : vector<2x8x8xf32>
    %439 = tpu.matmul %434, %436, %cst_124 {dimension_numbers = #tpu.dot_dimension_numbers<[2], [2], [1], [1], [0, 0, 0, 1, 1, 1], [0], [0]>} : vector<2x8x8xf32>, vector<2x8x8xf32>, vector<2x8x8xf32> -> vector<2x8x8xf32>
    "tpu.trace_stop"() : () -> ()
    %440 = vector.broadcast %7 : vector<2x1x8xf32> to vector<2x8x8xf32>
    %441 = arith.addf %439, %440 : vector<2x8x8xf32>
    %cst_125 = arith.constant dense<0xFF800000> : vector<2x8xf32>
    %442 = vector.multi_reduction <maximumf>, %441, %cst_125 [2] : vector<2x8x8xf32> to vector<2x8xf32>
    %443 = vector.shape_cast %442 : vector<2x8xf32> to vector<2x8x1xf32>
    %444 = vector.broadcast %443 : vector<2x8x1xf32> to vector<2x8x8xf32>
    %445 = arith.subf %441, %444 : vector<2x8x8xf32>
    %446 = math.exp %445 : vector<2x8x8xf32>
    %cst_126 = arith.constant dense<0.000000e+00> : vector<2x8xf32>
    %447 = vector.multi_reduction <add>, %446, %cst_126 [2] : vector<2x8x8xf32> to vector<2x8xf32>
    %448 = vector.shape_cast %447 : vector<2x8xf32> to vector<2x8x1xf32>
    %449 = tpu.reciprocal %448 {approx = true} : vector<2x8x1xf32> -> vector<2x8x1xf32>
    %450 = vector.broadcast %449 : vector<2x8x1xf32> to vector<2x8x8xf32>
    %451 = arith.mulf %446, %450 : vector<2x8x8xf32>
    "tpu.trace_start"() <{level = 10 : i32, message = "bqk,bkd->bqd"}> : () -> ()
    %cst_127 = arith.constant dense<0.000000e+00> : vector<2x8x8xf32>
    %452 = tpu.matmul %451, %438, %cst_127 {dimension_numbers = #tpu.dot_dimension_numbers<[2], [1], [1], [2], [0, 0, 0, 1, 1, 2], [0], [0]>} : vector<2x8x8xf32>, vector<2x8x8xf32>, vector<2x8x8xf32> -> vector<2x8x8xf32>
    "tpu.trace_stop"() : () -> ()
    %453 = vector.shape_cast %452 : vector<2x8x8xf32> to vector<16x8xf32>
    %454 = tpu.concatenate %390, %411, %432, %453 in 1 : vector<16x8xf32>, vector<16x8xf32>, vector<16x8xf32>, vector<16x8xf32> -> vector<16x32xf32>
    %455 = arith.truncf %454 : vector<16x32xf32> to vector<16x32xbf16>
    %cst_128 = arith.constant dense<0.000000e+00> : vector<16x32xf32>
    %456 = tpu.matmul %455, %335, %cst_128 {dimension_numbers = #tpu.dot_dimension_numbers<[1], [0], [0], [1], [0, 0, 1, 1], [], []>} : vector<16x32xbf16>, vector<32x32xbf16>, vector<16x32xf32> -> vector<16x32xf32>
    %457 = vector.shape_cast %456 : vector<16x32xf32> to vector<2x8x32xf32>
    %458 = arith.addf %330, %457 : vector<2x8x32xf32>
    %c0_129 = arith.constant 0 : index
    %c0_130 = arith.constant 0 : index
    %459 = vector.load %arg22[%c0_129, %c0_130] : memref<1x32xf32, #tpu.memory_space<vmem>>, vector<1x32xf32>
    %c0_131 = arith.constant 0 : index
    %c0_132 = arith.constant 0 : index
    %460 = vector.load %arg23[%c0_131, %c0_132] : memref<32x64xbf16, #tpu.memory_space<vmem>>, vector<32x64xbf16>
    %c0_133 = arith.constant 0 : index
    %c0_134 = arith.constant 0 : index
    %461 = vector.load %arg24[%c0_133, %c0_134] : memref<64x32xbf16, #tpu.memory_space<vmem>>, vector<64x32xbf16>
    %462 = arith.mulf %458, %458 : vector<2x8x32xf32>
    %cst_135 = arith.constant dense<0.000000e+00> : vector<2x8xf32>
    %463 = vector.multi_reduction <add>, %462, %cst_135 [2] : vector<2x8x32xf32> to vector<2x8xf32>
    %464 = vector.shape_cast %463 : vector<2x8xf32> to vector<2x8x1xf32>
    %cst_136 = arith.constant 3.200000e+01 : f32
    %465 = vector.broadcast %cst_136 : f32 to vector<2x8x1xf32>
    %466 = arith.divf %464, %465 : vector<2x8x1xf32>
    %cst_137 = arith.constant 9.99999997E-7 : f32
    %467 = vector.broadcast %cst_137 : f32 to vector<2x8x1xf32>
    %468 = arith.addf %466, %467 : vector<2x8x1xf32>
    %469 = math.rsqrt %468 : vector<2x8x1xf32>
    %470 = vector.broadcast %469 : vector<2x8x1xf32> to vector<2x8x32xf32>
    %471 = arith.mulf %458, %470 : vector<2x8x32xf32>
    %472 = vector.shape_cast %459 : vector<1x32xf32> to vector<1x1x32xf32>
    %473 = vector.broadcast %472 : vector<1x1x32xf32> to vector<2x8x32xf32>
    %474 = arith.mulf %471, %473 : vector<2x8x32xf32>
    %475 = vector.shape_cast %474 : vector<2x8x32xf32> to vector<16x32xf32>
    %476 = arith.truncf %475 : vector<16x32xf32> to vector<16x32xbf16>
    %cst_138 = arith.constant dense<0.000000e+00> : vector<16x64xf32>
    %477 = tpu.matmul %476, %460, %cst_138 {dimension_numbers = #tpu.dot_dimension_numbers<[1], [0], [0], [1], [0, 0, 1, 1], [], []>} : vector<16x32xbf16>, vector<32x64xbf16>, vector<16x64xf32> -> vector<16x64xf32>
    %cst_139 = arith.constant 0.000000e+00 : f32
    %478 = vector.broadcast %cst_139 : f32 to vector<16x64xf32>
    %479 = arith.maximumf %477, %478 : vector<16x64xf32>
    %480 = arith.truncf %479 : vector<16x64xf32> to vector<16x64xbf16>
    %cst_140 = arith.constant dense<0.000000e+00> : vector<16x32xf32>
    %481 = tpu.matmul %480, %461, %cst_140 {dimension_numbers = #tpu.dot_dimension_numbers<[1], [0], [0], [1], [0, 0, 1, 1], [], []>} : vector<16x64xbf16>, vector<64x32xbf16>, vector<16x32xf32> -> vector<16x32xf32>
    %482 = vector.shape_cast %481 : vector<16x32xf32> to vector<2x8x32xf32>
    %483 = arith.addf %458, %482 : vector<2x8x32xf32>
    %c0_141 = arith.constant 0 : index
    %c0_142 = arith.constant 0 : index
    %484 = vector.load %arg25[%c0_141, %c0_142] : memref<1x32xf32, #tpu.memory_space<vmem>>, vector<1x32xf32>
    %485 = arith.mulf %483, %483 : vector<2x8x32xf32>
    %cst_143 = arith.constant dense<0.000000e+00> : vector<2x8xf32>
    %486 = vector.multi_reduction <add>, %485, %cst_143 [2] : vector<2x8x32xf32> to vector<2x8xf32>
    %487 = vector.shape_cast %486 : vector<2x8xf32> to vector<2x8x1xf32>
    %cst_144 = arith.constant 3.200000e+01 : f32
    %488 = vector.broadcast %cst_144 : f32 to vector<2x8x1xf32>
    %489 = arith.divf %487, %488 : vector<2x8x1xf32>
    %cst_145 = arith.constant 9.99999997E-7 : f32
    %490 = vector.broadcast %cst_145 : f32 to vector<2x8x1xf32>
    %491 = arith.addf %489, %490 : vector<2x8x1xf32>
    %492 = math.rsqrt %491 : vector<2x8x1xf32>
    %493 = vector.broadcast %492 : vector<2x8x1xf32> to vector<2x8x32xf32>
    %494 = arith.mulf %483, %493 : vector<2x8x32xf32>
    %495 = vector.shape_cast %484 : vector<1x32xf32> to vector<1x1x32xf32>
    %496 = vector.broadcast %495 : vector<1x1x32xf32> to vector<2x8x32xf32>
    %497 = arith.mulf %494, %496 : vector<2x8x32xf32>
    %cst_146 = arith.constant 0.176776692 : f32
    %498 = vector.broadcast %cst_146 : f32 to vector<2x8x32xf32>
    %499 = arith.mulf %497, %498 : vector<2x8x32xf32>
    %500 = vector.shape_cast %499 : vector<2x8x32xf32> to vector<16x32xf32>
    %501 = arith.truncf %500 : vector<16x32xf32> to vector<16x32xbf16>
    %c0_147 = arith.constant 0 : index
    %c0_148 = arith.constant 0 : index
    %502 = vector.load %arg26[%c0_147, %c0_148] : memref<32x128xbf16, #tpu.memory_space<vmem>>, vector<32x128xbf16>
    %cst_149 = arith.constant dense<0.000000e+00> : vector<16x128xf32>
    %503 = tpu.matmul %501, %502, %cst_149 {dimension_numbers = #tpu.dot_dimension_numbers<[1], [0], [0], [1], [0, 0, 1, 1], [], []>} : vector<16x32xbf16>, vector<32x128xbf16>, vector<16x128xf32> -> vector<16x128xf32>
    %c0_150 = arith.constant 0 : index
    %c0_151 = arith.constant 0 : index
    %504 = vector.load %arg5[%c0_150, %c0_151] : memref<16x1xi32, #tpu.memory_space<vmem>>, vector<16x1xi32>
    %cst_152 = arith.constant dense<0xFF800000> : vector<16xf32>
    %505 = vector.multi_reduction <maximumf>, %503, %cst_152 [1] : vector<16x128xf32> to vector<16xf32>
    %506 = vector.shape_cast %505 : vector<16xf32> to vector<16x1xf32>
    %507 = vector.broadcast %506 : vector<16x1xf32> to vector<16x128xf32>
    %508 = arith.subf %503, %507 : vector<16x128xf32>
    %509 = math.exp %508 : vector<16x128xf32>
    %cst_153 = arith.constant dense<0.000000e+00> : vector<16xf32>
    %510 = vector.multi_reduction <add>, %509, %cst_153 [1] : vector<16x128xf32> to vector<16xf32>
    %511 = vector.shape_cast %510 : vector<16xf32> to vector<16x1xf32>
    %512 = math.log %511 : vector<16x1xf32>
    %513 = arith.addf %512, %506 : vector<16x1xf32>
    %514 = tpu.iota {dimensions = array<i32: 1>} : vector<16x128xi32>
    %515 = vector.broadcast %504 : vector<16x1xi32> to vector<16x128xi32>
    %516 = arith.cmpi eq, %514, %515 : vector<16x128xi32>
    %517 = arith.extui %516 : vector<16x128xi1> to vector<16x128xi32>
    %518 = arith.sitofp %517 : vector<16x128xi32> to vector<16x128xf32>
    %519 = arith.mulf %503, %518 : vector<16x128xf32>
    %cst_154 = arith.constant dense<0.000000e+00> : vector<16xf32>
    %520 = vector.multi_reduction <add>, %519, %cst_154 [1] : vector<16x128xf32> to vector<16xf32>
    %521 = vector.shape_cast %520 : vector<16xf32> to vector<16x1xf32>
    %c-100_i32 = arith.constant -100 : i32
    %522 = vector.broadcast %c-100_i32 : i32 to vector<16x1xi32>
    %523 = arith.cmpi ne, %504, %522 : vector<16x1xi32>
    %524 = arith.extui %523 : vector<16x1xi1> to vector<16x1xi32>
    %525 = arith.sitofp %524 : vector<16x1xi32> to vector<16x1xf32>
    %526 = arith.subf %513, %521 : vector<16x1xf32>
    %527 = arith.mulf %526, %525 : vector<16x1xf32>
    %528 = vector.shape_cast %527 : vector<16x1xf32> to vector<1x16x1xf32>
    %cst_155 = arith.constant dense<0.000000e+00> : vector<1xf32>
    %529 = vector.multi_reduction <add>, %528, %cst_155 [1, 2] : vector<1x16x1xf32> to vector<1xf32>
    %530 = vector.shape_cast %529 : vector<1xf32> to vector<1x1x1xf32>
    %531 = vector.extract %530[0, 0, 0] : f32 from vector<1x1x1xf32>
    %532 = vector.shape_cast %525 : vector<16x1xf32> to vector<1x16x1xf32>
    %cst_156 = arith.constant dense<0.000000e+00> : vector<1xf32>
    %533 = vector.multi_reduction <add>, %532, %cst_156 [1, 2] : vector<1x16x1xf32> to vector<1xf32>
    %534 = vector.shape_cast %533 : vector<1xf32> to vector<1x1x1xf32>
    %535 = vector.extract %534[0, 0, 0] : f32 from vector<1x1x1xf32>
    %cst_157 = arith.constant 1.000000e+00 : f32
    %536 = arith.maximumf %535, %cst_157 : f32
    %537 = arith.divf %531, %536 : f32
    %538 = vector.broadcast %537 : f32 to vector<1x1xf32>
    %c0_158 = arith.constant 0 : index
    %c0_159 = arith.constant 0 : index
    %539 = vector.load %arg27[%c0_158, %c0_159] : memref<1x1xf32, #tpu.memory_space<vmem>>, vector<1x1xf32>
    tpu.vector_store %arg27[%c0_158, %c0_159], %538 {strides = array<i32>} : memref<1x1xf32, #tpu.memory_space<vmem>>, vector<1x1xf32>,
    return
  }
}

</mosaic_0001>

<bundles_post_ra>
// kernel: t5_loss.1
= control target key start
LH: loop header
LB: loop body
LE: loop exit
PB: predicated region body
PF: predicated region fallthrough
CT: control target
= control target key end

     0   :  { %s7261_s0 = inlined_call_operand.vmem [shape: f32[2,8,32], index: 0, kind: input, shape index: {}]   ;;  %s7262_s1 = inlined_call_operand.vmem [shape: f32[2,8,32], index: 1, kind: input, shape index: {}]   ;;  %s7263_s2 = inlined_call_operand.vmem [shape: f32[2,8], index: 2, kind: input, shape index: {}]   ;;  %s7264_s3 = inlined_call_operand.vmem [shape: f32[4,8,8], index: 3, kind: input, shape index: {}]   ;;  %s7265_s4 = inlined_call_operand.vmem [shape: f32[4,8,8], index: 4, kind: input, shape index: {}]   ;;  %s7266_s5 = inlined_call_operand.vmem [shape: s32[16,1], index: 5, kind: input, shape index: {}]   ;;  %s7267_s6 = inlined_call_operand.vmem [shape: f32[1,32], index: 6, kind: input, shape index: {}]   ;;  %s7268_s7 = inlined_call_operand.vmem [shape: bf16[32,32], index: 7, kind: input, shape index: {}]   ;;  %s7269_s8 = inlined_call_operand.vmem [shape: bf16[32,64], index: 8, kind: input, shape index: {}]   ;;  %s7270_s9 = inlined_call_operand.vmem [shape: bf16[32,32], index: 9, kind: input, shape index: {}]   ;;  %s7271_s10 = inlined_call_operand.vmem [shape: f32[1,32], index: 10, kind: input, shape index: {}]   ;;  %s7272_s11 = inlined_call_operand.vmem [shape: bf16[32,64], index: 11, kind: input, shape index: {}]   ;;  %s7273_s12 = inlined_call_operand.vmem [shape: bf16[64,32], index: 12, kind: input, shape index: {}]   ;;  %s7274_s13 = inlined_call_operand.vmem [shape: f32[1,32], index: 13, kind: input, shape index: {}]   ;;  %s7275_s14 = inlined_call_operand.vmem [shape: f32[1,32], index: 14, kind: input, shape index: {}]   ;;  %s7276_s15 = inlined_call_operand.vmem [shape: bf16[32,32], index: 15, kind: input, shape index: {}]   ;;  %s7277_s16 = inlined_call_operand.vmem [shape: bf16[32,64], index: 16, kind: input, shape index: {}]   ;;  %s7278_s17 = inlined_call_operand.vmem [shape: bf16[32,32], index: 17, kind: input, shape index: {}]   ;;  %s7279_s18 = inlined_call_operand.vmem [shape: f32[1,32], index: 18, kind: input, shape index: {}]   ;;  %s7280_s19 = inlined_call_operand.vmem [shape: bf16[32,32], index: 19, kind: input, shape index: {}]   ;;  %s7281_s20 = inlined_call_operand.vmem [shape: bf16[32,64], index: 20, kind: input, shape index: {}]   ;;  %s7282_s21 = inlined_call_operand.vmem [shape: bf16[32,32], index: 21, kind: input, shape index: {}]   ;;  %s7283_s22 = inlined_call_operand.vmem [shape: f32[1,32], index: 22, kind: input, shape index: {}]   ;;  %s7284_s23 = inlined_call_operand.vmem [shape: bf16[32,64], index: 23, kind: input, shape index: {}]   ;;  %s7285_s24 = inlined_call_operand.vmem [shape: bf16[64,32], index: 24, kind: input, shape index: {}]   ;;  %s7286_s25 = inlined_call_operand.vmem [shape: f32[1,32], index: 25, kind: input, shape index: {}]   ;;  %s7287_s26 = inlined_call_operand.vmem [shape: bf16[32,128], index: 26, kind: input, shape index: {}]   ;;  %s7288_s27 = inlined_call_operand.hbm [shape: f32[1,1], index: 27, kind: output, shape index: {}]  }
   0x1   :  { %7306 = sst [smem:[#allocation5_spill]] %s7261_s0 }
   0x2   :  { %7307 = sst [smem:[#allocation6_spill]] %s7262_s1 }
   0x3   :  { %7308 = sst [smem:[#allocation7_spill]] %s7263_s2 }
   0x4   :  { %7309 = sst [smem:[#allocation8_spill]] %s7264_s3 }
   0x5   :  { %7310 = sst [smem:[#allocation9_spill]] %s7265_s4 }
   0x6   :  { %7311 = sst [smem:[#allocation10_spill]] %s7266_s5 }
   0x7   :  { %7312 = sst [smem:[#allocation11_spill]] %s7267_s6 }
   0x8   :  { %7313 = sst [smem:[#allocation12_spill]] %s7268_s7 }
   0x9   :  { %7314 = sst [smem:[#allocation13_spill]] %s7269_s8 }
   0xa   :  { %7315 = sst [smem:[#allocation14_spill]] %s7270_s9 }
   0xb   :  { %7316 = sst [smem:[#allocation15_spill]] %s7271_s10 }
   0xc   :  { %7317 = sst [smem:[#allocation16_spill]] %s7272_s11 }
   0xd   :  { %s7318_s8 = sld [smem:[#allocation5_spill]]  ;;  %vm174_vm0 = vcmask 261120   ;;  %v6258_v8 = vmov 0.0  }
   0xe   :  { %s7319_s0 = sld [smem:[#allocation12_spill]]  ;;  %5640 = vmatprep.subr.bf16.mxu0 %v6258_v8  ;;  %5648 = vmatprep.subr.bf16.mxu1 %v6258_v8 }
   0xf   :  { %s7320_s1 = sld [smem:[#allocation13_spill]] }
  0x13   :  { %v6418_v0 = vld [vmem:[%s7318_s8] sm:$0xff]  ;;  %v6423_v1 = vld [vmem:[%s7318_s8 + $0x8] sm:$0xff] }
  0x14   :  { %v172_v2 = vmul.f32 %v6418_v0, %v6418_v0  ;;  %v173_v3 = vmul.f32 %v6423_v1, %v6423_v1  ;;  %v6070_v6 = vld [vmem:[%s7319_s0 + $0x8] sm:$0xff]   ;;  %v6072_v9 = vld [vmem:[%s7319_s0] sm:$0xff]  }
  0x15   :  { %v6071_v7 = vld [vmem:[%s7320_s1 + $0x8] sm:$0xff]   ;;  %5641 = vmatpush3.bf16.msra.mxu0 %v6070_v6  ;;  %v6073_v10 = vld [vmem:[%s7320_s1] sm:$0xff]  }
  0x16   :  { %v175_v4 = vsel %vm174_vm0, %v172_v2, 0.0  ;;  %v178_v5 = vsel %vm174_vm0, %v173_v3, 0.0  ;;  %5649 = vmatpush3.bf16.msra.mxu1 %v6071_v7 }
  0x17   :  { %176 = vadd.xlane.f32.xlu0 %v175_v4 }
  0x1b   :  { %179 = vadd.xlane.f32.xlu0 %v178_v5 }
  0x1c   :  { %32 = vsyncpa [#allocation3], 0  ;;  %5642 = vmatprep.subr.bf16.mxu0 %v6258_v8  ;;  %5650 = vmatprep.subr.bf16.mxu1 %v6258_v8  ;;  %vm6259_vm1 = vmmov 0   ;;  %s7321_s8 = sld [smem:[#allocation11_spill]]  ;;  %vm308_vm2 = vcmask 64512   ;;  %v98_v35 = vlaneseq  ;;  %s6261_s29 = smov 96  }
  0x1d   :  { %5644 = vmatprep.mubr.msk.bf16.mxu0 %vm6259_vm1, %v6258_v8  ;;  %5652 = vmatprep.mubr.msk.bf16.mxu1 %vm6259_vm1, %v6258_v8  ;;  %v6260_v33 = vmov 1966171168   ;;  %s7322_s5 = sld [smem:[#allocation7_spill]]  ;;  %s6262_s1 = smov 120   ;;  %vm1651_vm3 = vcmask 130048   ;;  %vm1654_vm4 = vcmask 195584  }
  0x1e   :  { %5643 = vmatpush3.bf16.msra.mxu0 %v6072_v9  ;;  %5651 = vmatpush3.bf16.msra.mxu1 %v6073_v10  ;;  %v96_v34 = vunpack.c.l.s4 %v6260_v33  ;;  %v6487_v37 = vshrl.u32 %v98_v35, 7  ;;  %s7323_s10 = sld [smem:[#allocation8_spill]]  ;;  %s6263_s2 = smov 88   ;;  %vm1837_vm5 = vcmask 523264   ;;  %vm5322_vm11 = vcmask 7168  }
  0x1f   :  { %5656 = vmatprep.subr.mxu1 %v6258_v8  ;;  %5666 = vmatprep.subr.mxu0 %v6258_v8  ;;  %s6264_s3 = smov 112   ;;  %s6266_s30 = smov 104   ;;  %vm5353_vm12 = vcmask 0  }
  0x20   :  { %v97_v36 = vunpack.c.0.s8 %v96_v34  ;;  %v129_v45 = vsub.s32 0, %v6487_v37  ;;  %s7304_s28 = smov 72   ;;  %s7302_s0 = smov 8  }
  0x21   :  { %s7324_s7 = sld [smem:[#allocation14_spill]]  ;;  %s7332_s4 = smov 24  }
  0x22   :  { %v5369_v20 = vld [vmem:[%s7321_s8] ss:$0 sm:$0xff]  ;;  %v100_v40 = vsub.s32 %v97_v36, %v6487_v37  ;;  %s6265_s8 = smov 80   ;;  %s7333_s6 = sld [smem:[#allocation10_spill]] }
  0x23   :  { %v92_v38 = vld [vmem:[%s7322_s5] sm:$0x3]  ;;  %s7298_s5 = smov 24  }
  0x24   :  { %v93_v39 = vsub.f32 1.0, %v92_v38  ;;  %v121_v49 = vld [vmem:[%s7323_s10] sm:$0xff] }
  0x26   :  { %v101_v41 = vrot.slane %v93_v39, %v100_v40 }
  0x28   :  { %v109_v42 = vrot.slane %v101_v41, %v100_v40  ;;  %v102_v43 = vcombine.high %v101_v41, %v101_v41 }
  0x2a   :  { %v119_v44 = vmul.f32 -1e+09, %v109_v42  ;;  %v116_v46 = vrot.slane %v102_v43, %v100_v40 }
  0x2c   :  { %v6494_v47 = vrot.slane %v119_v44, %v129_v45  ;;  %v120_v48 = vmul.f32 -1e+09, %v116_v46 }
  0x2e   :  { %v137_v50 = vadd.f32 %v6494_v47, %v121_v49  ;;  %v6500_v51 = vrot.slane %v120_v48, %v129_v45 }
  0x30   :  { %v138_v54 = vadd.f32 %v6500_v51, %v121_v49 }
  0xa0   :  { %v177_v11 = vpop.xlane.xlu0 %176 }
  0xa1   :  { %v182_v12 = vmul.f32 0.03125, %v177_v11 }
  0xa3   :  { %v184_v13 = vadd.f32 1e-06, %v182_v12 }
  0xa4   :  { %v180_v14 = vpop.xlane.xlu0 %179 }
  0xa5   :  { %6102 = vrsqrt.f32 %v184_v13  ;;  %v183_v15 = vmul.f32 0.03125, %v180_v14 }
  0xa7   :  { %v185_v16 = vadd.f32 1e-06, %v183_v15 }
  0xa9   :  { %6104 = vrsqrt.f32 %v185_v16 }
  0xb2   :  { %v6103_v17 = vpop.eup %6102 }
  0xb3   :  { %v188_v18 = vmul.f32 %v6103_v17, %v6418_v0 }
  0xb5   :  { %v196_v22 = vmul.f32 %v5369_v20, %v188_v18 }
  0xb6   :  { %v6105_v19 = vpop.eup %6104 }
  0xb7   :  { %v189_v21 = vmul.f32 %v6105_v19, %v6423_v1 }
  0xb9   :  { %v197_v23 = vmul.f32 %v5369_v20, %v189_v21 }
  0xbb   :  { %v198_v24 = vpack.c.bf16 %v197_v23, %v196_v22  ;;  %v122_v22 = vld [vmem:[%s7323_s10 + $0x8] sm:$0xff] }
  0xbc   :  { %v140_v33 = vadd.f32 %v6500_v51, %v122_v22 }
  0xbd   :  { %5645 = vmatmul.mubr.msk.bf16.vlgmr.msra.gmra.mxu0 %vm174_vm0, %v198_v24  ;;  %5653 = vmatmul.mubr.msk.bf16.vlgmr.msra.gmra.mxu1 %vm174_vm0, %v198_v24  ;;  %v139_v24 = vadd.f32 %v6494_v47, %v122_v22 }
  0xbe   :  { %5658 = vmatprep.mubr.msk.f32.mxu1 %vm6259_vm1, %v6258_v8  ;;  %5668 = vmatprep.mubr.msk.f32.mxu0 %vm6259_vm1, %v6258_v8 }
 0x17d   :  { %v6464_v25 = vpop.f32.mrf.mxu0  ;;  %v6466_v26 = vpop.f32.mrf.mxu1 }
 0x17e   :  { %5657 = vmatpush3.xpose.msk.msra.mxu1 %vm308_vm2, %v6466_v26 }
 0x17f   :  { %v5646_v27 = vpop.f32.mrf.mxu0  ;;  %v5654_v28 = vpop.f32.mrf.mxu1  ;;  %5661 = vmatprep.subr.mxu1 %v6258_v8 }
 0x181   :  { %v6471_v29 = vpop.f32.mrf.mxu0  ;;  %v6473_v30 = vpop.f32.mrf.mxu1  ;;  %5659 = vmatmul.mubr.msk.f32.vlgmr.msra.gmra.mxu1 %vm308_vm2, %v6464_v25 }
 0x182   :  { %5662 = vmatpush3.xpose.msk.msra.mxu1 %vm308_vm2, %v6473_v30  ;;  %5663 = vmatprep.mubr.msk.f32.mxu1 %vm6259_vm1, %v6258_v8 }
 0x183   :  { %v5647_v31 = vpop.f32.mrf.mxu0  ;;  %v5655_v32 = vpop.f32.mrf.mxu1  ;;  %5671 = vmatprep.subr.mxu1 %v6258_v8 }
 0x185   :  { %5664 = vmatmul.mubr.msk.f32.vlgmr.msra.gmra.mxu1 %vm308_vm2, %v6471_v29 }
 0x186   :  { %5673 = vmatprep.mubr.msk.f32.mxu1 %vm6259_vm1, %v6258_v8 }
 0x241   :  { %v381_v52 = vpop.f32.mrf.mxu1 }
 0x242   :  { %v382_v53 = vadd.f32 %v381_v52, %v137_v50 }
 0x243   :  { %v5660_v55 = vpop.f32.mrf.mxu1 }
 0x244   :  { %v461_v56 = vsel %vm308_vm2, %v382_v53, -inf }
 0x245   :  { %462 = vmax.xlane.f32.xlu1 %v461_v56  ;;  %v457_v57 = vpop.f32.mrf.mxu1 }
 0x246   :  { %v458_v58 = vadd.f32 %v457_v57, %v138_v54 }
 0x247   :  { %v5665_v59 = vpop.f32.mrf.mxu1 }
 0x248   :  { %v464_v60 = vsel %vm308_vm2, %v458_v58, -inf }
 0x249   :  { %465 = vmax.xlane.f32.xlu1 %v464_v60 }
 0x25a   :  { %559 = vrot.lane.b32.xlu1 %v6473_v30, %s6261_s29 }
 0x25e   :  { %637 = vrot.lane.b32.xlu1 %v6466_v26, %s6262_s1 }
 0x262   :  { %715 = vrot.lane.b32.xlu1 %v6473_v30, %s6262_s1 }
 0x2ce   :  { %v463_v61 = vpop.xlane.xlu1 %462 }
 0x2cf   :  { %v467_v62 = vsub.f32 %v382_v53, %v463_v61 }
 0x2d1   :  { %v469_v63 = vmul.f32 1.442695, %v467_v62 }
 0x2d2   :  { %v466_v2 = vpop.xlane.xlu1 %465 }
 0x2d3   :  { %6106 = vpow2.f32 %v469_v63  ;;  %v468_v3 = vsub.f32 %v458_v58, %v466_v2 }
 0x2d5   :  { %v471_v4 = vmul.f32 1.442695, %v468_v3 }
 0x2d6   :  { %v560_v5 = vpop.permute.xlu1 %559 }
 0x2d7   :  { %6108 = vpow2.f32 %v471_v4  ;;  %5672 = vmatpush3.msra.mxu1 %v560_v5  ;;  %v123_v5 = vld [vmem:[%s7323_s10 + $0x10] sm:$0xff] }
 0x2d8   :  { %5681 = vmatprep.subr.mxu1 %v6258_v8 }
 0x2da   :  { %v638_v11 = vpop.permute.xlu1 %637 }
 0x2de   :  { %v716_v12 = vpop.permute.xlu1 %715 }
 0x2e0   :  { %v6107_v6 = vpop.eup %6106 }
 0x2e1   :  { %v473_v7 = vsel %vm308_vm2, %v6107_v6, 0.0 }
 0x2e2   :  { %474 = vadd.xlane.f32.xlu0 %v473_v7  ;;  %v141_v7 = vadd.f32 %v6494_v47, %v123_v5 }
 0x2e4   :  { %v6109_v9 = vpop.eup %6108 }
 0x2e5   :  { %v476_v10 = vsel %vm308_vm2, %v6109_v9, 0.0 }
 0x2e6   :  { %477 = vadd.xlane.f32.xlu1 %v476_v10 }
 0x2f7   :  { %713 = vrot.lane.b32.xlu1 %v6471_v29, %s6262_s1 }
 0x2f8   :  { %483 = vrot.lane.b32.xlu0 %v6466_v26, %s6261_s29 }
 0x2fc   :  { %635 = vrot.lane.b32.xlu0 %v6464_v25, %s6262_s1 }
 0x36b   :  { %v475_v13 = vpop.xlane.xlu0 %474 }
 0x36c   :  { %6110 = vrcp.f32 %v475_v13 }
 0x36f   :  { %v484_v14 = vpop.permute.xlu0 %483  ;;  %v478_v15 = vpop.xlane.xlu1 %477 }
 0x370   :  { %6112 = vrcp.f32 %v478_v15  ;;  %5667 = vmatpush3.msra.mxu0 %v484_v14  ;;  %v142_v14 = vadd.f32 %v6500_v51, %v123_v5 }
 0x371   :  { %5676 = vmatprep.subr.mxu0 %v6258_v8 }
 0x373   :  { %v636_v20 = vpop.permute.xlu0 %635  ;;  %v714_v21 = vpop.permute.xlu1 %713 }
 0x379   :  { %v6111_v16 = vpop.eup %6110 }
 0x37a   :  { %v481_v17 = vmul.f32 %v6111_v16, %v6107_v6 }
 0x37c   :  { %5669 = vmatmul.mubr.msk.f32.vlgmr.msra.gmra.mxu0 %vm308_vm2, %v481_v17 }
 0x37d   :  { %v6113_v18 = vpop.eup %6112  ;;  %5677 = vmatpush3.xpose.msk.msra.mxu0 %vm308_vm2, %v638_v11  ;;  %5678 = vmatprep.mubr.msk.f32.mxu0 %vm6259_vm1, %v6258_v8 }
 0x37e   :  { %v482_v19 = vmul.f32 %v6113_v18, %v6109_v9  ;;  %5686 = vmatprep.subr.mxu0 %v6258_v8 }
 0x380   :  { %5674 = vmatmul.mubr.msk.f32.vlgmr.msra.gmra.mxu1 %vm308_vm2, %v482_v19  ;;  %5679 = vmatmul.mubr.msk.f32.vlgmr.msra.gmra.mxu0 %vm308_vm2, %v636_v20 }
 0x381   :  { %5682 = vmatpush3.xpose.msk.msra.mxu1 %vm308_vm2, %v716_v12  ;;  %5683 = vmatprep.mubr.msk.f32.mxu1 %vm6259_vm1, %v6258_v8 }
 0x382   :  { %5691 = vmatprep.subr.mxu1 %v6258_v8  ;;  %5688 = vmatprep.mubr.msk.f32.mxu0 %vm6259_vm1, %v6258_v8 }
 0x384   :  { %5684 = vmatmul.mubr.msk.f32.vlgmr.msra.gmra.mxu1 %vm308_vm2, %v714_v21 }
 0x385   :  { %5693 = vmatprep.mubr.msk.f32.mxu1 %vm6259_vm1, %v6258_v8 }
 0x43c   :  { %v6540_v23 = vpop.f32.mrf.mxu0 }
 0x43e   :  { %v5670_v27 = vpop.f32.mrf.mxu0 }
 0x440   :  { %v6543_v28 = vpop.f32.mrf.mxu1  ;;  %v709_v31 = vpop.f32.mrf.mxu0 }
 0x441   :  { %v710_v32 = vadd.f32 %v709_v31, %v139_v24 }
 0x442   :  { %v5675_v34 = vpop.f32.mrf.mxu1  ;;  %v5680_v36 = vpop.f32.mrf.mxu0 }
 0x443   :  { %v791_v38 = vsel %vm308_vm2, %v710_v32, -inf }
 0x444   :  { %v787_v39 = vpop.f32.mrf.mxu1  ;;  %792 = vmax.xlane.f32.xlu0 %v791_v38 }
 0x445   :  { %v788_v40 = vadd.f32 %v787_v39, %v140_v33 }
 0x446   :  { %v5685_v41 = vpop.f32.mrf.mxu1 }
 0x447   :  { %v794_v42 = vsel %vm308_vm2, %v788_v40, -inf }
 0x448   :  { %795 = vmax.xlane.f32.xlu1 %v794_v42 }
 0x459   :  { %889 = vrot.lane.b32.xlu1 %v6473_v30, %s6263_s2 }
 0x45d   :  { %967 = vrot.lane.b32.xlu1 %v6466_v26, %s6264_s3 }
 0x461   :  { %1045 = vrot.lane.b32.xlu1 %v6473_v30, %s6264_s3 }
 0x465   :  { %1043 = vrot.lane.b32.xlu1 %v6471_v29, %s6264_s3 }
 0x4cd   :  { %v793_v43 = vpop.xlane.xlu0 %792 }
 0x4ce   :  { %v797_v44 = vsub.f32 %v710_v32, %v793_v43 }
 0x4d0   :  { %v799_v45 = vmul.f32 1.442695, %v797_v44 }
 0x4d1   :  { %v796_v46 = vpop.xlane.xlu1 %795 }
 0x4d2   :  { %6114 = vpow2.f32 %v799_v45  ;;  %v798_v48 = vsub.f32 %v788_v40, %v796_v46 }
 0x4d4   :  { %v801_v49 = vmul.f32 1.442695, %v798_v48 }
 0x4d5   :  { %v890_v50 = vpop.permute.xlu1 %889 }
 0x4d6   :  { %6116 = vpow2.f32 %v801_v49  ;;  %5692 = vmatpush3.msra.mxu1 %v890_v50 }
 0x4d7   :  { %5701 = vmatprep.subr.mxu1 %v6258_v8 }
 0x4d9   :  { %v968_v59 = vpop.permute.xlu1 %967 }
 0x4dd   :  { %v1046_v63 = vpop.permute.xlu1 %1045 }
 0x4df   :  { %v6115_v52 = vpop.eup %6114 }
 0x4e0   :  { %v803_v53 = vsel %vm308_vm2, %v6115_v52, 0.0 }
 0x4e1   :  { %804 = vadd.xlane.f32.xlu0 %v803_v53  ;;  %v1044_v4 = vpop.permute.xlu1 %1043 }
 0x4e3   :  { %v6117_v54 = vpop.eup %6116 }
 0x4e4   :  { %v806_v55 = vsel %vm308_vm2, %v6117_v54, 0.0 }
 0x4e5   :  { %807 = vadd.xlane.f32.xlu0 %v806_v55 }
 0x4fb   :  { %813 = vrot.lane.b32.xlu0 %v6466_v26, %s6263_s2 }
 0x4ff   :  { %965 = vrot.lane.b32.xlu0 %v6464_v25, %s6264_s3 }
 0x56a   :  { %v805_v56 = vpop.xlane.xlu0 %804 }
 0x56b   :  { %6118 = vrcp.f32 %v805_v56 }
 0x56e   :  { %v808_v57 = vpop.xlane.xlu0 %807 }
 0x56f   :  { %6120 = vrcp.f32 %v808_v57 }
 0x572   :  { %v814_v58 = vpop.permute.xlu0 %813 }
 0x573   :  { %5687 = vmatpush3.msra.mxu0 %v814_v58 }
 0x574   :  { %5696 = vmatprep.subr.mxu0 %v6258_v8 }
 0x576   :  { %v966_v3 = vpop.permute.xlu0 %965 }
 0x578   :  { %v6119_v60 = vpop.eup %6118 }
 0x579   :  { %v811_v61 = vmul.f32 %v6119_v60, %v6115_v52  ;;  %v124_v52 = vld [vmem:[%s7323_s10 + $0x18] sm:$0xff]  ;;  %s7300_s10 = smov 16  }
 0x57b   :  { %5689 = vmatmul.mubr.msk.f32.vlgmr.msra.gmra.mxu0 %vm308_vm2, %v811_v61 }
 0x57c   :  { %v6121_v62 = vpop.eup %6120  ;;  %5697 = vmatpush3.xpose.msk.msra.mxu0 %vm308_vm2, %v968_v59  ;;  %5698 = vmatprep.mubr.msk.f32.mxu0 %vm6259_vm1, %v6258_v8  ;;  %v144_v59 = vadd.f32 %v6500_v51, %v124_v52 }
 0x57d   :  { %v812_v2 = vmul.f32 %v6121_v62, %v6117_v54  ;;  %5706 = vmatprep.subr.mxu0 %v6258_v8  ;;  %v143_v54 = vadd.f32 %v6494_v47, %v124_v52 }
 0x57f   :  { %5694 = vmatmul.mubr.msk.f32.vlgmr.msra.gmra.mxu1 %vm308_vm2, %v812_v2  ;;  %5699 = vmatmul.mubr.msk.f32.vlgmr.msra.gmra.mxu0 %vm308_vm2, %v966_v3 }
 0x580   :  { %5702 = vmatpush3.xpose.msk.msra.mxu1 %vm308_vm2, %v1046_v63  ;;  %5703 = vmatprep.mubr.msk.f32.mxu1 %vm6259_vm1, %v6258_v8 }
 0x581   :  { %5711 = vmatprep.subr.mxu1 %v6258_v8  ;;  %5708 = vmatprep.mubr.msk.f32.mxu0 %vm6259_vm1, %v6258_v8 }
 0x583   :  { %5704 = vmatmul.mubr.msk.f32.vlgmr.msra.gmra.mxu1 %vm308_vm2, %v1044_v4 }
 0x584   :  { %5713 = vmatprep.mubr.msk.f32.mxu1 %vm6259_vm1, %v6258_v8 }
 0x63b   :  { %v6583_v6 = vpop.f32.mrf.mxu0 }
 0x63d   :  { %v5690_v9 = vpop.f32.mrf.mxu0 }
 0x63f   :  { %v6586_v10 = vpop.f32.mrf.mxu1  ;;  %v1039_v11 = vpop.f32.mrf.mxu0 }
 0x640   :  { %v6023_v12 = vpack.i.bf16 %v6586_v10, %v6583_v6  ;;  %v1040_v13 = vadd.f32 %v1039_v11, %v141_v7 }
 0x641   :  { %v5695_v15 = vpop.f32.mrf.mxu1  ;;  %v5700_v16 = vpop.f32.mrf.mxu0 }
 0x642   :  { %v1121_v17 = vsel %vm308_vm2, %v1040_v13, -inf }
 0x643   :  { %v1117_v18 = vpop.f32.mrf.mxu1  ;;  %1122 = vmax.xlane.f32.xlu0 %v1121_v17 }
 0x644   :  { %v1118_v19 = vadd.f32 %v1117_v18, %v142_v14 }
 0x645   :  { %v5705_v20 = vpop.f32.mrf.mxu1 }
 0x646   :  { %v1124_v21 = vsel %vm308_vm2, %v1118_v19, -inf }
 0x647   :  { %1125 = vmax.xlane.f32.xlu1 %v1124_v21 }
 0x658   :  { %1219 = vrot.lane.b32.xlu1 %v6473_v30, %s6265_s8 }
 0x65c   :  { %1297 = vrot.lane.b32.xlu1 %v6466_v26, %s6266_s30 }
 0x660   :  { %1375 = vrot.lane.b32.xlu1 %v6473_v30, %s6266_s30 }
 0x664   :  { %1373 = vrot.lane.b32.xlu1 %v6471_v29, %s6266_s30 }
 0x6cc   :  { %v1123_v22 = vpop.xlane.xlu0 %1122 }
 0x6cd   :  { %v1127_v24 = vsub.f32 %v1040_v13, %v1123_v22 }
 0x6cf   :  { %v1129_v27 = vmul.f32 1.442695, %v1127_v24 }
 0x6d0   :  { %v1126_v31 = vpop.xlane.xlu1 %1125 }
 0x6d1   :  { %6122 = vpow2.f32 %v1129_v27  ;;  %v1128_v32 = vsub.f32 %v1118_v19, %v1126_v31  ;;  %v6075_v27 = vld [vmem:[%s7324_s7] sm:$0xff]  }
 0x6d3   :  { %v1131_v33 = vmul.f32 1.442695, %v1128_v32 }
 0x6d4   :  { %v1220_v34 = vpop.permute.xlu1 %1219 }
 0x6d5   :  { %6124 = vpow2.f32 %v1131_v33  ;;  %5712 = vmatpush3.msra.mxu1 %v1220_v34 }
 0x6d6   :  { %5721 = vmatprep.subr.mxu1 %v6258_v8 }
 0x6d8   :  { %v1298_v43 = vpop.permute.xlu1 %1297 }
 0x6dc   :  { %v1376_v48 = vpop.permute.xlu1 %1375 }
 0x6de   :  { %v6123_v36 = vpop.eup %6122 }
 0x6df   :  { %v1133_v38 = vsel %vm308_vm2, %v6123_v36, 0.0 }
 0x6e0   :  { %1134 = vadd.xlane.f32.xlu0 %v1133_v38  ;;  %v1374_v50 = vpop.permute.xlu1 %1373 }
 0x6e2   :  { %v6125_v39 = vpop.eup %6124 }
 0x6e3   :  { %v1136_v40 = vsel %vm308_vm2, %v6125_v39, 0.0 }
 0x6e4   :  { %1137 = vadd.xlane.f32.xlu0 %v1136_v40 }
 0x6fa   :  { %1143 = vrot.lane.b32.xlu0 %v6466_v26, %s6265_s8 }
 0x6fe   :  { %1295 = vrot.lane.b32.xlu0 %v6464_v25, %s6266_s30 }
 0x769   :  { %v1135_v29 = vpop.xlane.xlu0 %1134 }
 0x76a   :  { %6126 = vrcp.f32 %v1135_v29 }
 0x76d   :  { %v1138_v41 = vpop.xlane.xlu0 %1137 }
 0x76e   :  { %6128 = vrcp.f32 %v1138_v41 }
 0x771   :  { %v1144_v42 = vpop.permute.xlu0 %1143 }
 0x772   :  { %5707 = vmatpush3.msra.mxu0 %v1144_v42 }
 0x773   :  { %5716 = vmatprep.subr.mxu0 %v6258_v8 }
 0x775   :  { %v1296_v49 = vpop.permute.xlu0 %1295 }
 0x777   :  { %v6127_v44 = vpop.eup %6126 }
 0x778   :  { %v1141_v45 = vmul.f32 %v6127_v44, %v6123_v36 }
 0x77a   :  { %5709 = vmatmul.mubr.msk.f32.vlgmr.msra.gmra.mxu0 %vm308_vm2, %v1141_v45 }
 0x77b   :  { %v6129_v46 = vpop.eup %6128  ;;  %5717 = vmatpush3.xpose.msk.msra.mxu0 %vm308_vm2, %v1298_v43  ;;  %5718 = vmatprep.mubr.msk.f32.mxu0 %vm6259_vm1, %v6258_v8 }
 0x77c   :  { %v1142_v25 = vmul.f32 %v6129_v46, %v6125_v39  ;;  %5726 = vmatprep.subr.mxu0 %v6258_v8 }
 0x77e   :  { %5714 = vmatmul.mubr.msk.f32.vlgmr.msra.gmra.mxu1 %vm308_vm2, %v1142_v25  ;;  %5719 = vmatmul.mubr.msk.f32.vlgmr.msra.gmra.mxu0 %vm308_vm2, %v1296_v49 }
 0x77f   :  { %5722 = vmatpush3.xpose.msk.msra.mxu1 %vm308_vm2, %v1376_v48  ;;  %5723 = vmatprep.mubr.msk.f32.mxu1 %vm6259_vm1, %v6258_v8 }
 0x780   :  { %5731 = vmatprep.subr.mxu1 %v6258_v8  ;;  %5728 = vmatprep.mubr.msk.f32.mxu0 %vm6259_vm1, %v6258_v8 }
 0x782   :  { %5724 = vmatmul.mubr.msk.f32.vlgmr.msra.gmra.mxu1 %vm308_vm2, %v1374_v50 }
 0x783   :  { %5733 = vmatprep.mubr.msk.f32.mxu1 %vm6259_vm1, %v6258_v8 }
 0x83a   :  { %v1215_v53 = vpop.f32.mrf.mxu0 }
 0x83c   :  { %v5710_v55 = vpop.f32.mrf.mxu0 }
 0x83e   :  { %v1291_v56 = vpop.f32.mrf.mxu1  ;;  %v1369_v57 = vpop.f32.mrf.mxu0 }
 0x83f   :  { %v1370_v58 = vadd.f32 %v1369_v57, %v143_v54  ;;  %v6028_v5 = vpack.i.bf16 %v1291_v56, %v1215_v53 }
 0x840   :  { %v5715_v60 = vpop.f32.mrf.mxu1  ;;  %v5720_v61 = vpop.f32.mrf.mxu0 }
 0x841   :  { %v1451_v62 = vsel %vm308_vm2, %v1370_v58, -inf }
 0x842   :  { %v1447_v63 = vpop.f32.mrf.mxu1  ;;  %1452 = vmax.xlane.f32.xlu0 %v1451_v62 }
 0x843   :  { %v1448_v2 = vadd.f32 %v1447_v63, %v144_v59 }
 0x844   :  { %v5725_v3 = vpop.f32.mrf.mxu1 }
 0x845   :  { %v1454_v4 = vsel %vm308_vm2, %v1448_v2, -inf }
 0x846   :  { %1455 = vmax.xlane.f32.xlu1 %v1454_v4 }
 0x857   :  { %1549 = vrot.lane.b32.xlu1 %v6473_v30, %s7304_s28 }
 0x85b   :  { %6024 = vrot.lane.b32.xlu1 %v6023_v12, %s7302_s0 }
 0x85f   :  { %6029 = vrot.lane.b32.xlu1 %v6028_v5, %s7300_s10  ;;  %s7327_s10 = sld [smem:[#allocation15_spill]] }
 0x8cb   :  { %v1453_v7 = vpop.xlane.xlu0 %1452 }
 0x8cc   :  { %v1457_v9 = vsub.f32 %v1370_v58, %v1453_v7  ;;  %v6082_v7 = vld [vmem:[%s7273_s12 + $0x18] sm:$0xff]  }
 0x8ce   :  { %v1459_v11 = vmul.f32 1.442695, %v1457_v9  ;;  %v6083_v9 = vld [vmem:[%s7273_s12 + $0x10] sm:$0xff]  }
 0x8cf   :  { %v1456_v13 = vpop.xlane.xlu1 %1455 }
 0x8d0   :  { %6130 = vpow2.f32 %v1459_v11  ;;  %v1458_v14 = vsub.f32 %v1448_v2, %v1456_v13 }
 0x8d2   :  { %v1461_v15 = vmul.f32 1.442695, %v1458_v14 }
 0x8d3   :  { %v1550_v16 = vpop.permute.xlu1 %1549 }
 0x8d4   :  { %6132 = vpow2.f32 %v1461_v15  ;;  %5732 = vmatpush3.msra.mxu1 %v1550_v16 }
 0x8d5   :  { %5744 = vmatprep.subr.bf16.mxu1 %v6258_v8 }
 0x8d7   :  { %v6025_v38 = vpop.permute.xlu1 %6024 }
 0x8d8   :  { %v6027_v40 = vunpack.i.h.bf16 %v6025_v38  ;;  %v6026_v29 = vunpack.i.l.bf16 %v6025_v38 }
 0x8da   :  { %v1650_v44 = vsel %vm308_vm2, %v6543_v28, %v6027_v40  ;;  %v1649_v45 = vsel %vm308_vm2, %v6540_v23, %v6026_v29  ;;  %v5412_v40 = vld [vmem:[%s7275_s14] ss:$0 sm:$0xff]  ;;  %s7329_s14 = smov 72  }
 0x8db   :  { %v6030_v39 = vpop.permute.xlu1 %6029 }
 0x8dc   :  { %v6032_v41 = vunpack.i.h.bf16 %v6030_v39  ;;  %v6031_v42 = vunpack.i.l.bf16 %v6030_v39  ;;  %v6079_v39 = vld [vmem:[%s7276_s15] sm:$0xff]  }
 0x8dd   :  { %v6131_v30 = vpop.eup %6130 }
 0x8de   :  { %v1463_v6 = vsel %vm308_vm2, %v6131_v30, 0.0  ;;  %v1653_v25 = vsel %vm1651_vm3, %v1650_v44, %v6032_v41  ;;  %v1652_v49 = vsel %vm1651_vm3, %v1649_v45, %v6031_v42  ;;  %v6081_v45 = vld [vmem:[%s7277_s16] sm:$0xff]  }
 0x8df   :  { %1464 = vadd.xlane.f32.xlu0 %v1463_v6 }
 0x8e1   :  { %v6133_v10 = vpop.eup %6132 }
 0x8e2   :  { %v1466_v12 = vsel %vm308_vm2, %v6133_v10, 0.0 }
 0x8e3   :  { %1467 = vadd.xlane.f32.xlu0 %v1466_v12 }
 0x8f9   :  { %1473 = vrot.lane.b32.xlu0 %v6466_v26, %s7304_s28  ;;  %v6074_v26 = vld [vmem:[%s7324_s7 + $0x8] sm:$0xff]   ;;  %s7325_s7 = sld [smem:[#allocation6_spill]] }
 0x8ff   :  { %v6679_v57 = vld [vmem:[%s7325_s7] sm:$0xff]  ;;  %v6692_v62 = vld [vmem:[%s7325_s7 + $0x8] sm:$0xff]  ;;  %s7328_s7 = sld [smem:[#allocation9_spill]] }
 0x900   :  { %v1897_v61 = vmul.f32 %v6679_v57, %v6679_v57  ;;  %v1898_v2 = vmul.f32 %v6692_v62, %v6692_v62 }
 0x902   :  { %v1902_v3 = vsel %vm174_vm0, %v1898_v2, 0.0  ;;  %v6784_v2 = vand.u32 127, %v98_v35 }
 0x904   :  { %vm149_vm6 = vcmp.le.s32.totalorder %v6784_v2, %v6487_v37 }
 0x968   :  { %v1465_v17 = vpop.xlane.xlu0 %1464 }
 0x969   :  { %6134 = vrcp.f32 %v1465_v17 }
 0x96c   :  { %v1468_v18 = vpop.xlane.xlu0 %1467 }
 0x96d   :  { %6136 = vrcp.f32 %v1468_v18 }
 0x970   :  { %v1474_v19 = vpop.permute.xlu0 %1473 }
 0x971   :  { %5727 = vmatpush3.msra.mxu0 %v1474_v19 }
 0x972   :  { %5736 = vmatprep.subr.bf16.mxu0 %v6258_v8 }
 0x976   :  { %v6135_v20 = vpop.eup %6134 }
 0x977   :  { %v1471_v21 = vmul.f32 %v6135_v20, %v6131_v30 }
 0x979   :  { %5729 = vmatmul.mubr.msk.f32.vlgmr.msra.gmra.mxu0 %vm308_vm2, %v1471_v21 }
 0x97a   :  { %v6137_v22 = vpop.eup %6136  ;;  %5740 = vmatprep.mubr.msk.bf16.mxu0 %vm6259_vm1, %v6258_v8  ;;  %5737 = vmatpush3.bf16.msra.mxu0 %v6074_v26 }
 0x97b   :  { %v1472_v24 = vmul.f32 %v6137_v22, %v6133_v10  ;;  %5738 = vmatprep.subr.bf16.mxu0 %v6258_v8 }
 0x97d   :  { %5734 = vmatmul.mubr.msk.f32.vlgmr.msra.gmra.mxu1 %vm308_vm2, %v1472_v24  ;;  %v5403_v24 = vld [vmem:[%s7327_s10] ss:$0 sm:$0xff] }
 0x97e   :  { %5748 = vmatprep.mubr.msk.bf16.mxu1 %vm6259_vm1, %v6258_v8  ;;  %5739 = vmatpush3.bf16.msra.mxu0 %v6075_v27 }
 0x97f   :  { %5752 = vmatprep.subr.bf16.mxu0 %v6258_v8 }
 0xa39   :  { %v1545_v31 = vpop.f32.mrf.mxu0 }
 0xa3b   :  { %v5730_v32 = vpop.f32.mrf.mxu0 }
 0xa3d   :  { %v1621_v33 = vpop.f32.mrf.mxu1 }
 0xa3e   :  { %v6033_v34 = vpack.i.bf16 %v1621_v33, %v1545_v31  ;;  %v6078_v33 = vld [vmem:[%s7276_s15 + $0x8] sm:$0xff]  }
 0xa3f   :  { %v5735_v36 = vpop.f32.mrf.mxu1 }
 0xa40   :  { %6034 = vrot.lane.b32.xlu0 %v6033_v34, %s7298_s5  ;;  %s7326_s5 = sld [smem:[#allocation16_spill]] }
 0xa46   :  { %v6076_v4 = vld [vmem:[%s7326_s5 + $0x8] sm:$0xff]   ;;  %v6077_v5 = vld [vmem:[%s7326_s5] sm:$0xff]   ;;  %s7330_s5 = smov 8  }
 0xa47   :  { %5745 = vmatpush3.bf16.msra.mxu1 %v6076_v4 }
 0xa48   :  { %5746 = vmatprep.subr.bf16.mxu1 %v6258_v8 }
 0xa4b   :  { %5747 = vmatpush3.bf16.msra.mxu1 %v6077_v5 }
 0xa4c   :  { %5764 = vmatprep.subr.bf16.mxu1 %v6258_v8 }
 0xab2   :  { %v6035_v43 = vpop.permute.xlu0 %6034 }
 0xab3   :  { %v6037_v46 = vunpack.i.h.bf16 %v6035_v43  ;;  %v6036_v48 = vunpack.i.l.bf16 %v6035_v43  ;;  %v6080_v43 = vld [vmem:[%s7277_s16 + $0x8] sm:$0xff]   ;;  %s7331_s16 = smov 16  }
 0xab5   :  { %v1656_v50 = vsel %vm1654_vm4, %v1653_v25, %v6037_v46  ;;  %v1655_v52 = vsel %vm1654_vm4, %v1652_v49, %v6036_v48  ;;  %v6084_v46 = vld [vmem:[%s7273_s12 + $0x8] sm:$0xff]   ;;  %v6085_v48 = vld [vmem:[%s7273_s12] sm:$0xff]  }
 0xab6   :  { %v1657_v53 = vpack.c.bf16 %v1656_v50, %v1655_v52 }
 0xab8   :  { %5741 = vmatmul.mubr.msk.bf16.vlgmr.msra.gmra.mxu0 %vm174_vm0, %v1657_v53 }
 0xab9   :  { %5760 = vmatprep.mubr.msk.bf16.mxu0 %vm6259_vm1, %v6258_v8  ;;  %5753 = vmatpush3.bf16.msra.mxu0 %v6082_v7  ;;  %v6271_v7 = vmov -1e+09  }
 0xaba   :  { %5754 = vmatprep.subr.bf16.mxu0 %v6258_v8 }
 0xabd   :  { %5755 = vmatpush3.bf16.msra.mxu0 %v6083_v9  ;;  %v6792_v9 = vsel %vm149_vm6, 0.0, %v6271_v7 }
 0xabe   :  { %5756 = vmatprep.subr.bf16.mxu0 %v6258_v8 }
 0xac1   :  { %5757 = vmatpush3.bf16.msra.mxu0 %v6084_v46 }
 0xac2   :  { %5758 = vmatprep.subr.bf16.mxu0 %v6258_v8 }
 0xac5   :  { %5759 = vmatpush3.bf16.msra.mxu0 %v6085_v48 }
 0xac6   :  { %5780 = vmatprep.subr.mxu0 %v6258_v8 }
 0xb78   :  { %v1707_v28 = vpop.f32.mrf.mxu0 }
 0xb79   :  { %v6672_v54 = vadd.f32 %v1707_v28, %v6418_v0 }
 0xb7a   :  { %v5742_v23 = vpop.f32.mrf.mxu0 }
 0xb7b   :  { %v1729_v55 = vmul.f32 %v6672_v54, %v6672_v54 }
 0xb7c   :  { %v1710_v56 = vpop.f32.mrf.mxu0 }
 0xb7d   :  { %v6682_v58 = vadd.f32 %v1710_v56, %v6423_v1  ;;  %v1731_v59 = vsel %vm174_vm0, %v1729_v55, 0.0  ;;  %v1899_v1 = vsel %vm174_vm0, %v1897_v61, 0.0 }
 0xb7e   :  { %1732 = vadd.xlane.f32.xlu1 %v1731_v59  ;;  %v5743_v60 = vpop.f32.mrf.mxu0 }
 0xb7f   :  { %v1730_v0 = vmul.f32 %v6682_v58, %v6682_v58 }
 0xb81   :  { %v1734_v63 = vsel %vm174_vm0, %v1730_v0, 0.0 }
 0xb82   :  { %1735 = vadd.xlane.f32.xlu0 %v1734_v63 }
 0xb86   :  { %1900 = vadd.xlane.f32.xlu0 %v1899_v1 }
 0xb8a   :  { %1903 = vadd.xlane.f32.xlu0 %v1902_v3 }
 0xc07   :  { %v1733_v11 = vpop.xlane.xlu1 %1732 }
 0xc08   :  { %v1737_v13 = vmul.f32 0.03125, %v1733_v11  ;;  %v151_v11 = vld [vmem:[%s7328_s7] sm:$0xff] }
 0xc0a   :  { %v1739_v14 = vadd.f32 1e-06, %v1737_v13 }
 0xc0b   :  { %v1736_v15 = vpop.xlane.xlu0 %1735 }
 0xc0c   :  { %6138 = vrsqrt.f32 %v1739_v14  ;;  %v1738_v16 = vmul.f32 0.03125, %v1736_v15  ;;  %v155_v14 = vadd.f32 %v151_v11, %v6792_v9 }
 0xc0e   :  { %v1740_v30 = vadd.f32 1e-06, %v1738_v16 }
 0xc0f   :  { %v1901_v6 = vpop.xlane.xlu0 %1900 }
 0xc10   :  { %6140 = vrsqrt.f32 %v1740_v30  ;;  %v1905_v10 = vmul.f32 0.03125, %v1901_v6 }
 0xc12   :  { %v1907_v12 = vadd.f32 1e-06, %v1905_v10 }
 0xc13   :  { %v1904_v17 = vpop.xlane.xlu0 %1903 }
 0xc14   :  { %6142 = vrsqrt.f32 %v1907_v12  ;;  %v1906_v18 = vmul.f32 0.03125, %v1904_v17 }
 0xc16   :  { %v1908_v19 = vadd.f32 1e-06, %v1906_v18 }
 0xc18   :  { %6144 = vrsqrt.f32 %v1908_v19 }
 0xc19   :  { %v6139_v20 = vpop.eup %6138 }
 0xc1a   :  { %v1743_v21 = vmul.f32 %v6139_v20, %v6672_v54 }
 0xc1c   :  { %v1751_v27 = vmul.f32 %v5403_v24, %v1743_v21 }
 0xc1d   :  { %v6141_v22 = vpop.eup %6140 }
 0xc1e   :  { %v1744_v26 = vmul.f32 %v6141_v22, %v6682_v58 }
 0xc20   :  { %v1752_v31 = vmul.f32 %v5403_v24, %v1744_v26 }
 0xc21   :  { %v6143_v32 = vpop.eup %6142 }
 0xc22   :  { %v1753_v34 = vpack.c.bf16 %v1752_v31, %v1751_v27  ;;  %v1911_v36 = vmul.f32 %v6143_v32, %v6679_v57 }
 0xc24   :  { %5749 = vmatmul.mubr.msk.bf16.vlgmr.msra.gmra.mxu1 %vm174_vm0, %v1753_v34  ;;  %v1919_v41 = vmul.f32 %v5412_v40, %v1911_v36 }
 0xc25   :  { %v6145_v38 = vpop.eup %6144  ;;  %5765 = vmatpush3.bf16.msra.mxu1 %v6078_v33  ;;  %5768 = vmatprep.mubr.msk.bf16.mxu1 %vm6259_vm1, %v6258_v8 }
 0xc26   :  { %v1912_v29 = vmul.f32 %v6145_v38, %v6692_v62  ;;  %5766 = vmatprep.subr.bf16.mxu1 %v6258_v8 }
 0xc28   :  { %v1920_v42 = vmul.f32 %v5412_v40, %v1912_v29 }
 0xc29   :  { %5767 = vmatpush3.bf16.msra.mxu1 %v6079_v39 }
 0xc2a   :  { %v1921_v44 = vpack.c.bf16 %v1920_v42, %v1919_v41  ;;  %5772 = vmatprep.subr.bf16.mxu1 %v6258_v8 }
 0xc2c   :  { %5769 = vmatmul.mubr.msk.bf16.vlgmr.msra.gmra.mxu1 %vm174_vm0, %v1921_v44 }
 0xc2d   :  { %5773 = vmatpush3.bf16.msra.mxu1 %v6080_v43  ;;  %5776 = vmatprep.mubr.msk.bf16.mxu1 %vm6259_vm1, %v6258_v8 }
 0xc2e   :  { %5774 = vmatprep.subr.bf16.mxu1 %v6258_v8 }
 0xc31   :  { %5775 = vmatpush3.bf16.msra.mxu1 %v6081_v45  ;;  %v152_v45 = vld [vmem:[%s7328_s7 + $0x8] sm:$0xff] }
 0xc32   :  { %5785 = vmatprep.subr.mxu1 %v6258_v8  ;;  %v156_v48 = vadd.f32 %v152_v45, %v6792_v9 }
 0xc34   :  { %5777 = vmatmul.mubr.msk.bf16.vlgmr.msra.gmra.mxu1 %vm174_vm0, %v1921_v44 }
 0xc35   :  { %5787 = vmatprep.mubr.msk.f32.mxu1 %vm6259_vm1, %v6258_v8 }
 0xce4   :  { %v1803_v25 = vpop.f32.mrf.mxu1 }
 0xce5   :  { %v1810_v52 = vmax.f32 %v1803_v25, 0.0 }
 0xce6   :  { %v5750_v49 = vpop.f32.mrf.mxu1 }
 0xce8   :  { %v1806_v50 = vpop.f32.mrf.mxu1 }
 0xce9   :  { %v1811_v53 = vmax.f32 %v1806_v50, 0.0 }
 0xcea   :  { %v5751_v28 = vpop.f32.mrf.mxu1 }
 0xceb   :  { %v1812_v23 = vpack.c.bf16 %v1811_v53, %v1810_v52 }
 0xcec   :  { %v6758_v55 = vpop.f32.mrf.mxu1 }
 0xced   :  { %5761 = vmatmul.mubr.msk.bf16.vlgmr.msra.gmra.mxu0 %vm1837_vm5, %v1812_v23 }
 0xcee   :  { %v5770_v56 = vpop.f32.mrf.mxu1  ;;  %5782 = vmatprep.mubr.msk.f32.mxu0 %vm6259_vm1, %v6258_v8 }
 0xcf0   :  { %v6763_v59 = vpop.f32.mrf.mxu1 }
 0xcf2   :  { %v5771_v60 = vpop.f32.mrf.mxu1 }
 0xcf4   :  { %v6765_v0 = vpop.f32.mrf.mxu1 }
 0xcf5   :  { %5781 = vmatpush3.xpose.msk.msra.mxu0 %vm308_vm2, %v6765_v0 }
 0xcf6   :  { %v5778_v61 = vpop.f32.mrf.mxu1  ;;  %5790 = vmatprep.subr.mxu0 %v6258_v8 }
 0xcf8   :  { %v6770_v63 = vpop.f32.mrf.mxu1  ;;  %5783 = vmatmul.mubr.msk.f32.vlgmr.msra.gmra.mxu0 %vm308_vm2, %v6758_v55 }
 0xcf9   :  { %5786 = vmatpush3.xpose.msk.msra.mxu1 %vm308_vm2, %v6770_v63  ;;  %5792 = vmatprep.mubr.msk.f32.mxu0 %vm6259_vm1, %v6258_v8 }
 0xcfa   :  { %v5779_v1 = vpop.f32.mrf.mxu1  ;;  %5795 = vmatprep.subr.mxu1 %v6258_v8 }
 0xcfc   :  { %5788 = vmatmul.mubr.msk.f32.vlgmr.msra.gmra.mxu1 %vm308_vm2, %v6763_v59 }
 0xcfd   :  { %5797 = vmatprep.mubr.msk.f32.mxu1 %vm6259_vm1, %v6258_v8 }
 0xdad   :  { %v6786_v3 = vpop.f32.mrf.mxu0 }
 0xdaf   :  { %v5762_v4 = vpop.f32.mrf.mxu0 }
 0xdb1   :  { %v6790_v5 = vpop.f32.mrf.mxu0 }
 0xdb3   :  { %v5763_v13 = vpop.f32.mrf.mxu0 }
 0xdb8   :  { %v2103_v35 = vpop.f32.mrf.mxu0 }
 0xdb9   :  { %v2104_v15 = vadd.f32 %v2103_v35, %v155_v14 }
 0xdba   :  { %v5784_v16 = vpop.f32.mrf.mxu0 }
 0xdbb   :  { %v2183_v30 = vsel %vm308_vm2, %v2104_v15, -inf }
 0xdbc   :  { %v2179_v6 = vpop.f32.mrf.mxu1  ;;  %2184 = vmax.xlane.f32.xlu1 %v2183_v30 }
 0xdbd   :  { %v2180_v37 = vadd.f32 %v2179_v6, %v155_v14 }
 0xdbe   :  { %v5789_v10 = vpop.f32.mrf.mxu1 }
 0xdbf   :  { %v2186_v12 = vsel %vm308_vm2, %v2180_v37, -inf }
 0xdc0   :  { %2187 = vmax.xlane.f32.xlu0 %v2186_v12 }
 0xdcd   :  { %2205 = vrot.lane.b32.xlu1 %v6765_v0, %s6261_s29 }
 0xe45   :  { %v2185_v17 = vpop.xlane.xlu1 %2184 }
 0xe46   :  { %v2189_v18 = vsub.f32 %v2104_v15, %v2185_v17 }
 0xe48   :  { %v2191_v19 = vmul.f32 1.442695, %v2189_v18 }
 0xe49   :  { %v2188_v20 = vpop.xlane.xlu0 %2187  ;;  %v2206_v21 = vpop.permute.xlu1 %2205 }
 0xe4a   :  { %6146 = vpow2.f32 %v2191_v19  ;;  %v2190_v22 = vsub.f32 %v2180_v37, %v2188_v20  ;;  %5791 = vmatpush3.msra.mxu0 %v2206_v21 }
 0xe4b   :  { %5800 = vmatprep.subr.mxu0 %v6258_v8 }
 0xe4c   :  { %v2193_v24 = vmul.f32 1.442695, %v2190_v22 }
 0xe4e   :  { %6148 = vpow2.f32 %v2193_v24 }
 0xe57   :  { %v6147_v26 = vpop.eup %6146 }
 0xe58   :  { %v2195_v27 = vsel %vm308_vm2, %v6147_v26, 0.0 }
 0xe59   :  { %2196 = vadd.xlane.f32.xlu1 %v2195_v27 }
 0xe5b   :  { %v6149_v31 = vpop.eup %6148 }
 0xe5c   :  { %v2198_v32 = vsel %vm308_vm2, %v6149_v31, 0.0 }
 0xe5d   :  { %2199 = vadd.xlane.f32.xlu0 %v2198_v32 }
 0xe6a   :  { %2359 = vrot.lane.b32.xlu1 %v6765_v0, %s6262_s1 }
 0xe6e   :  { %2437 = vrot.lane.b32.xlu1 %v6770_v63, %s6262_s1 }
 0xe72   :  { %2357 = vrot.lane.b32.xlu1 %v6758_v55, %s6262_s1 }
 0xe73   :  { %2281 = vrot.lane.b32.xlu0 %v6770_v63, %s6261_s29 }
 0xe77   :  { %2435 = vrot.lane.b32.xlu0 %v6763_v59, %s6262_s1 }
 0xee2   :  { %v2197_v33 = vpop.xlane.xlu1 %2196 }
 0xee3   :  { %6150 = vrcp.f32 %v2197_v33 }
 0xee6   :  { %v2200_v34 = vpop.xlane.xlu0 %2199  ;;  %v2360_v36 = vpop.permute.xlu1 %2359 }
 0xee7   :  { %6152 = vrcp.f32 %v2200_v34 }
 0xeea   :  { %v2282_v38 = vpop.permute.xlu0 %2281  ;;  %v2438_v40 = vpop.permute.xlu1 %2437 }
 0xeeb   :  { %5796 = vmatpush3.msra.mxu1 %v2282_v38 }
 0xeec   :  { %5805 = vmatprep.subr.mxu1 %v6258_v8 }
 0xeee   :  { %v2358_v43 = vpop.permute.xlu1 %2357  ;;  %v2436_v44 = vpop.permute.xlu0 %2435 }
 0xef0   :  { %v6151_v39 = vpop.eup %6150 }
 0xef1   :  { %v2203_v29 = vmul.f32 %v6151_v39, %v6147_v26 }
 0xef3   :  { %5793 = vmatmul.mubr.msk.f32.vlgmr.msra.gmra.mxu0 %vm308_vm2, %v2203_v29 }
 0xef4   :  { %v6153_v41 = vpop.eup %6152  ;;  %5801 = vmatpush3.xpose.msk.msra.mxu0 %vm308_vm2, %v2360_v36  ;;  %5802 = vmatprep.mubr.msk.f32.mxu0 %vm6259_vm1, %v6258_v8 }
 0xef5   :  { %v2204_v42 = vmul.f32 %v6153_v41, %v6149_v31  ;;  %5810 = vmatprep.subr.mxu0 %v6258_v8  ;;  %v153_v31 = vld [vmem:[%s7328_s7 + $0x10] sm:$0xff] }
 0xef6   :  { %v157_v33 = vadd.f32 %v153_v31, %v6792_v9 }
 0xef7   :  { %5798 = vmatmul.mubr.msk.f32.vlgmr.msra.gmra.mxu1 %vm308_vm2, %v2204_v42  ;;  %5803 = vmatmul.mubr.msk.f32.vlgmr.msra.gmra.mxu0 %vm308_vm2, %v2358_v43 }
 0xef8   :  { %5806 = vmatpush3.xpose.msk.msra.mxu1 %vm308_vm2, %v2438_v40  ;;  %5807 = vmatprep.mubr.msk.f32.mxu1 %vm6259_vm1, %v6258_v8 }
 0xef9   :  { %5815 = vmatprep.subr.mxu1 %v6258_v8  ;;  %5812 = vmatprep.mubr.msk.f32.mxu0 %vm6259_vm1, %v6258_v8 }
 0xefb   :  { %5808 = vmatmul.mubr.msk.f32.vlgmr.msra.gmra.mxu1 %vm308_vm2, %v2436_v44 }
 0xefc   :  { %5817 = vmatprep.mubr.msk.f32.mxu1 %vm6259_vm1, %v6258_v8 }
 0xfb3   :  { %v6835_v46 = vpop.f32.mrf.mxu0 }
 0xfb5   :  { %v5794_v25 = vpop.f32.mrf.mxu0 }
 0xfb7   :  { %v6838_v49 = vpop.f32.mrf.mxu1  ;;  %v2431_v50 = vpop.f32.mrf.mxu0 }
 0xfb8   :  { %v2432_v52 = vadd.f32 %v2431_v50, %v156_v48 }
 0xfb9   :  { %v5799_v53 = vpop.f32.mrf.mxu1  ;;  %v5804_v28 = vpop.f32.mrf.mxu0 }
 0xfba   :  { %v2513_v23 = vsel %vm308_vm2, %v2432_v52, -inf }
 0xfbb   :  { %v2509_v56 = vpop.f32.mrf.mxu1  ;;  %2514 = vmax.xlane.f32.xlu1 %v2513_v23 }
 0xfbc   :  { %v2510_v60 = vadd.f32 %v2509_v56, %v156_v48 }
 0xfbd   :  { %v5809_v61 = vpop.f32.mrf.mxu1 }
 0xfbe   :  { %v2516_v1 = vsel %vm308_vm2, %v2510_v60, -inf }
 0xfbf   :  { %2517 = vmax.xlane.f32.xlu0 %v2516_v1 }
 0xfcc   :  { %2535 = vrot.lane.b32.xlu1 %v6765_v0, %s6263_s2 }
 0xfd0   :  { %2689 = vrot.lane.b32.xlu1 %v6765_v0, %s6264_s3 }
 0xfd4   :  { %2767 = vrot.lane.b32.xlu1 %v6770_v63, %s6264_s3 }
 0xfd8   :  { %2687 = vrot.lane.b32.xlu1 %v6758_v55, %s6264_s3 }
0x1044   :  { %v2515_v4 = vpop.xlane.xlu1 %2514 }
0x1045   :  { %v2519_v7 = vsub.f32 %v2432_v52, %v2515_v4 }
0x1047   :  { %v2521_v11 = vmul.f32 1.442695, %v2519_v7 }
0x1048   :  { %v2518_v13 = vpop.xlane.xlu0 %2517  ;;  %v2536_v14 = vpop.permute.xlu1 %2535 }
0x1049   :  { %6154 = vpow2.f32 %v2521_v11  ;;  %v2520_v35 = vsub.f32 %v2510_v60, %v2518_v13  ;;  %5811 = vmatpush3.msra.mxu0 %v2536_v14 }
0x104a   :  { %5820 = vmatprep.subr.mxu0 %v6258_v8 }
0x104b   :  { %v2523_v15 = vmul.f32 1.442695, %v2520_v35 }
0x104c   :  { %v2690_v17 = vpop.permute.xlu1 %2689 }
0x104d   :  { %6156 = vpow2.f32 %v2523_v15 }
0x1050   :  { %v2768_v20 = vpop.permute.xlu1 %2767 }
0x1054   :  { %v2688_v26 = vpop.permute.xlu1 %2687 }
0x1056   :  { %v6155_v16 = vpop.eup %6154 }
0x1057   :  { %v2525_v30 = vsel %vm308_vm2, %v6155_v16, 0.0 }
0x1058   :  { %2526 = vadd.xlane.f32.xlu0 %v2525_v30 }
0x105a   :  { %v6157_v6 = vpop.eup %6156 }
0x105b   :  { %v2528_v37 = vsel %vm308_vm2, %v6157_v6, 0.0 }
0x105c   :  { %2529 = vadd.xlane.f32.xlu0 %v2528_v37  ;;  %v154_v37 = vld [vmem:[%s7328_s7 + $0x18] sm:$0xff] }
0x1072   :  { %2611 = vrot.lane.b32.xlu0 %v6770_v63, %s6263_s2 }
0x1076   :  { %2765 = vrot.lane.b32.xlu0 %v6763_v59, %s6264_s3 }
0x10e1   :  { %v2527_v10 = vpop.xlane.xlu0 %2526 }
0x10e2   :  { %6158 = vrcp.f32 %v2527_v10 }
0x10e5   :  { %v2530_v12 = vpop.xlane.xlu0 %2529 }
0x10e6   :  { %6160 = vrcp.f32 %v2530_v12  ;;  %v158_v12 = vadd.f32 %v154_v37, %v6792_v9 }
0x10e9   :  { %v2612_v18 = vpop.permute.xlu0 %2611 }
0x10ea   :  { %5816 = vmatpush3.msra.mxu1 %v2612_v18 }
0x10eb   :  { %5825 = vmatprep.subr.mxu1 %v6258_v8 }
0x10ed   :  { %v2766_v27 = vpop.permute.xlu0 %2765 }
0x10ef   :  { %v6159_v19 = vpop.eup %6158 }
0x10f0   :  { %v2533_v21 = vmul.f32 %v6159_v19, %v6155_v16 }
0x10f2   :  { %5813 = vmatmul.mubr.msk.f32.vlgmr.msra.gmra.mxu0 %vm308_vm2, %v2533_v21 }
0x10f3   :  { %v6161_v22 = vpop.eup %6160  ;;  %5821 = vmatpush3.xpose.msk.msra.mxu0 %vm308_vm2, %v2690_v17  ;;  %5822 = vmatprep.mubr.msk.f32.mxu0 %vm6259_vm1, %v6258_v8 }
0x10f4   :  { %v2534_v24 = vmul.f32 %v6161_v22, %v6157_v6  ;;  %5830 = vmatprep.subr.mxu0 %v6258_v8 }
0x10f6   :  { %5818 = vmatmul.mubr.msk.f32.vlgmr.msra.gmra.mxu1 %vm308_vm2, %v2534_v24  ;;  %5823 = vmatmul.mubr.msk.f32.vlgmr.msra.gmra.mxu0 %vm308_vm2, %v2688_v26 }
0x10f7   :  { %5826 = vmatpush3.xpose.msk.msra.mxu1 %vm308_vm2, %v2768_v20  ;;  %5827 = vmatprep.mubr.msk.f32.mxu1 %vm6259_vm1, %v6258_v8 }
0x10f8   :  { %5835 = vmatprep.subr.mxu1 %v6258_v8  ;;  %5832 = vmatprep.mubr.msk.f32.mxu0 %vm6259_vm1, %v6258_v8 }
0x10fa   :  { %5828 = vmatmul.mubr.msk.f32.vlgmr.msra.gmra.mxu1 %vm308_vm2, %v2766_v27 }
0x10fb   :  { %5837 = vmatprep.mubr.msk.f32.mxu1 %vm6259_vm1, %v6258_v8 }
0x11b2   :  { %v6877_v32 = vpop.f32.mrf.mxu0 }
0x11b4   :  { %v5814_v34 = vpop.f32.mrf.mxu0 }
0x11b6   :  { %v6880_v36 = vpop.f32.mrf.mxu1  ;;  %v2761_v38 = vpop.f32.mrf.mxu0 }
0x11b7   :  { %v6038_v39 = vpack.i.bf16 %v6880_v36, %v6877_v32  ;;  %v2762_v40 = vadd.f32 %v2761_v38, %v157_v33 }
0x11b8   :  { %v5819_v29 = vpop.f32.mrf.mxu1  ;;  %v5824_v41 = vpop.f32.mrf.mxu0 }
0x11b9   :  { %v2843_v42 = vsel %vm308_vm2, %v2762_v40, -inf }
0x11ba   :  { %v2839_v43 = vpop.f32.mrf.mxu1  ;;  %2844 = vmax.xlane.f32.xlu1 %v2843_v42 }
0x11bb   :  { %v2840_v44 = vadd.f32 %v2839_v43, %v157_v33 }
0x11bc   :  { %v5829_v45 = vpop.f32.mrf.mxu1 }
0x11bd   :  { %v2846_v48 = vsel %vm308_vm2, %v2840_v44, -inf }
0x11be   :  { %2847 = vmax.xlane.f32.xlu0 %v2846_v48 }
0x11cb   :  { %2865 = vrot.lane.b32.xlu1 %v6765_v0, %s6265_s8 }
0x11cf   :  { %3019 = vrot.lane.b32.xlu1 %v6765_v0, %s6266_s30 }
0x11d3   :  { %3097 = vrot.lane.b32.xlu1 %v6770_v63, %s6266_s30 }
0x11d7   :  { %3017 = vrot.lane.b32.xlu1 %v6758_v55, %s6266_s30 }
0x1243   :  { %v2845_v25 = vpop.xlane.xlu1 %2844 }
0x1244   :  { %v2849_v50 = vsub.f32 %v2762_v40, %v2845_v25 }
0x1246   :  { %v2851_v52 = vmul.f32 1.442695, %v2849_v50 }
0x1247   :  { %v2848_v53 = vpop.xlane.xlu0 %2847  ;;  %v2866_v28 = vpop.permute.xlu1 %2865 }
0x1248   :  { %6162 = vpow2.f32 %v2851_v52  ;;  %v2850_v23 = vsub.f32 %v2840_v44, %v2848_v53  ;;  %5831 = vmatpush3.msra.mxu0 %v2866_v28  ;;  %v6086_v28 = vld [vmem:[%s7278_s17 + $0x8] sm:$0xff]  }
0x1249   :  { %5840 = vmatprep.subr.mxu0 %v6258_v8 }
0x124a   :  { %v2853_v56 = vmul.f32 1.442695, %v2850_v23  ;;  %v6087_v23 = vld [vmem:[%s7278_s17] sm:$0xff]  }
0x124b   :  { %v3020_v11 = vpop.permute.xlu1 %3019 }
0x124c   :  { %6164 = vpow2.f32 %v2853_v56 }
0x124f   :  { %v3098_v35 = vpop.permute.xlu1 %3097 }
0x1253   :  { %v3018_v30 = vpop.permute.xlu1 %3017 }
0x1255   :  { %v6163_v60 = vpop.eup %6162 }
0x1256   :  { %v2855_v61 = vsel %vm308_vm2, %v6163_v60, 0.0 }
0x1257   :  { %2856 = vadd.xlane.f32.xlu0 %v2855_v61 }
0x1259   :  { %v6165_v1 = vpop.eup %6164 }
0x125a   :  { %v2858_v4 = vsel %vm308_vm2, %v6165_v1, 0.0 }
0x125b   :  { %2859 = vadd.xlane.f32.xlu0 %v2858_v4 }
0x1271   :  { %2941 = vrot.lane.b32.xlu0 %v6770_v63, %s6265_s8 }
0x1275   :  { %3095 = vrot.lane.b32.xlu0 %v6763_v59, %s6266_s30 }
0x12e0   :  { %v2857_v55 = vpop.xlane.xlu0 %2856 }
0x12e1   :  { %6166 = vrcp.f32 %v2857_v55  ;;  %v1883_v55 = vadd.f32 %v6790_v5, %v6682_v58 }
0x12e4   :  { %v2860_v7 = vpop.xlane.xlu0 %2859 }
0x12e5   :  { %6168 = vrcp.f32 %v2860_v7  ;;  %v3476_v7 = vmul.f32 %v1883_v55, %v1883_v55 }
0x12e8   :  { %v2942_v13 = vpop.permute.xlu0 %2941 }
0x12e9   :  { %5836 = vmatpush3.msra.mxu1 %v2942_v13 }
0x12ea   :  { %5845 = vmatprep.subr.mxu1 %v6258_v8 }
0x12ec   :  { %v3096_v6 = vpop.permute.xlu0 %3095 }
0x12ee   :  { %v6167_v14 = vpop.eup %6166 }
0x12ef   :  { %v2863_v15 = vmul.f32 %v6167_v14, %v6163_v60 }
0x12f1   :  { %5833 = vmatmul.mubr.msk.f32.vlgmr.msra.gmra.mxu0 %vm308_vm2, %v2863_v15 }
0x12f2   :  { %v6169_v16 = vpop.eup %6168  ;;  %5841 = vmatpush3.xpose.msk.msra.mxu0 %vm308_vm2, %v3020_v11  ;;  %5842 = vmatprep.mubr.msk.f32.mxu0 %vm6259_vm1, %v6258_v8  ;;  %v3480_v11 = vsel %vm174_vm0, %v3476_v7, 0.0 }
0x12f3   :  { %v2864_v59 = vmul.f32 %v6169_v16, %v6165_v1  ;;  %5850 = vmatprep.subr.mxu0 %v6258_v8 }
0x12f5   :  { %5838 = vmatmul.mubr.msk.f32.vlgmr.msra.gmra.mxu1 %vm308_vm2, %v2864_v59  ;;  %5843 = vmatmul.mubr.msk.f32.vlgmr.msra.gmra.mxu0 %vm308_vm2, %v3018_v30 }
0x12f6   :  { %5846 = vmatpush3.xpose.msk.msra.mxu1 %vm308_vm2, %v3098_v35  ;;  %5847 = vmatprep.mubr.msk.f32.mxu1 %vm6259_vm1, %v6258_v8 }
0x12f7   :  { %5855 = vmatprep.subr.mxu1 %v6258_v8  ;;  %5852 = vmatprep.mubr.msk.f32.mxu0 %vm6259_vm1, %v6258_v8 }
0x12f9   :  { %5848 = vmatmul.mubr.msk.f32.vlgmr.msra.gmra.mxu1 %vm308_vm2, %v3096_v6 }
0x12fa   :  { %5857 = vmatprep.mubr.msk.f32.mxu1 %vm6259_vm1, %v6258_v8 }
0x13b1   :  { %v2937_v10 = vpop.f32.mrf.mxu0 }
0x13b3   :  { %v5834_v17 = vpop.f32.mrf.mxu0 }
0x13b5   :  { %v3013_v18 = vpop.f32.mrf.mxu1  ;;  %v3091_v19 = vpop.f32.mrf.mxu0 }
0x13b6   :  { %v3092_v20 = vadd.f32 %v3091_v19, %v158_v12  ;;  %v6043_v9 = vpack.i.bf16 %v3013_v18, %v2937_v10  ;;  %v6088_v19 = vld [vmem:[%s7281_s20 + $0x8] sm:$0xff]  }
0x13b7   :  { %v5839_v21 = vpop.f32.mrf.mxu1  ;;  %v5844_v22 = vpop.f32.mrf.mxu0 }
0x13b8   :  { %v3173_v24 = vsel %vm308_vm2, %v3092_v20, -inf }
0x13b9   :  { %v3169_v26 = vpop.f32.mrf.mxu1  ;;  %3174 = vmax.xlane.f32.xlu1 %v3173_v24 }
0x13ba   :  { %v3170_v27 = vadd.f32 %v3169_v26, %v158_v12 }
0x13bb   :  { %v5849_v31 = vpop.f32.mrf.mxu1 }
0x13bc   :  { %v3176_v33 = vsel %vm308_vm2, %v3170_v27, -inf }
0x13bd   :  { %3177 = vmax.xlane.f32.xlu0 %v3176_v33 }
0x13ca   :  { %3195 = vrot.lane.b32.xlu1 %v6765_v0, %s7329_s14 }
0x13ce   :  { %6039 = vrot.lane.b32.xlu1 %v6038_v39, %s7330_s5  ;;  %v6938_v39 = vadd.f32 %v6786_v3, %v6672_v54 }
0x13d0   :  { %v3475_v45 = vmul.f32 %v6938_v39, %v6938_v39 }
0x13d2   :  { %6044 = vrot.lane.b32.xlu1 %v6043_v9, %s7331_s16  ;;  %v3477_v48 = vsel %vm174_vm0, %v3475_v45, 0.0 }
0x1442   :  { %v3175_v34 = vpop.xlane.xlu1 %3174 }
0x1443   :  { %v3179_v38 = vsub.f32 %v3092_v20, %v3175_v34  ;;  %v5447_v34 = vld [vmem:[%s7274_s13] ss:$0 sm:$0xff] }
0x1445   :  { %v3181_v40 = vmul.f32 1.442695, %v3179_v38 }
0x1446   :  { %v3178_v29 = vpop.xlane.xlu0 %3177  ;;  %v3196_v41 = vpop.permute.xlu1 %3195 }
0x1447   :  { %6170 = vpow2.f32 %v3181_v40  ;;  %v3180_v42 = vsub.f32 %v3170_v27, %v3178_v29  ;;  %5851 = vmatpush3.msra.mxu0 %v3196_v41 }
0x1448   :  { %5860 = vmatprep.subr.bf16.mxu0 %v6258_v8 }
0x1449   :  { %v3183_v43 = vmul.f32 1.442695, %v3180_v42 }
0x144a   :  { %v6040_v13 = vpop.permute.xlu1 %6039 }
0x144b   :  { %6172 = vpow2.f32 %v3183_v43  ;;  %v6042_v35 = vunpack.i.h.bf16 %v6040_v13  ;;  %v6041_v15 = vunpack.i.l.bf16 %v6040_v13 }
0x144d   :  { %v3372_v6 = vsel %vm308_vm2, %v6838_v49, %v6042_v35  ;;  %v3371_v37 = vsel %vm308_vm2, %v6835_v46, %v6041_v15  ;;  %v6089_v46 = vld [vmem:[%s7281_s20] sm:$0xff]  }
0x144e   :  { %v6045_v14 = vpop.permute.xlu1 %6044 }
0x144f   :  { %v6047_v16 = vunpack.i.h.bf16 %v6045_v14  ;;  %v6046_v59 = vunpack.i.l.bf16 %v6045_v14 }
0x1451   :  { %v3373_v58 = vsel %vm1651_vm3, %v3371_v37, %v6046_v59  ;;  %v3374_v5 = vsel %vm1651_vm3, %v3372_v6, %v6047_v16 }
0x1454   :  { %v6171_v0 = vpop.eup %6170 }
0x1455   :  { %v3185_v44 = vsel %vm308_vm2, %v6171_v0, 0.0 }
0x1456   :  { %3186 = vadd.xlane.f32.xlu0 %v3185_v44 }
0x1458   :  { %v6173_v32 = vpop.eup %6172 }
0x1459   :  { %v3188_v36 = vsel %vm308_vm2, %v6173_v32, 0.0 }
0x145a   :  { %3189 = vadd.xlane.f32.xlu0 %v3188_v36 }
0x1470   :  { %3271 = vrot.lane.b32.xlu0 %v6770_v63, %s7329_s14 }
0x148f   :  { %3478 = vadd.xlane.f32.xlu0 %v3477_v48 }
0x14df   :  { %v3187_v25 = vpop.xlane.xlu0 %3186 }
0x14e0   :  { %6174 = vrcp.f32 %v3187_v25 }
0x14e3   :  { %v3190_v50 = vpop.xlane.xlu0 %3189 }
0x14e4   :  { %6176 = vrcp.f32 %v3190_v50 }
0x14e7   :  { %v3272_v52 = vpop.permute.xlu0 %3271 }
0x14e8   :  { %5856 = vmatpush3.msra.mxu1 %v3272_v52 }
0x14e9   :  { %5868 = vmatprep.subr.bf16.mxu1 %v6258_v8 }
0x14ed   :  { %v6175_v53 = vpop.eup %6174 }
0x14ee   :  { %v3193_v63 = vmul.f32 %v6175_v53, %v6171_v0 }
0x14f0   :  { %5853 = vmatmul.mubr.msk.f32.vlgmr.msra.gmra.mxu0 %vm308_vm2, %v3193_v63 }
0x14f1   :  { %v6177_v54 = vpop.eup %6176  ;;  %5864 = vmatprep.mubr.msk.bf16.mxu0 %vm6259_vm1, %v6258_v8  ;;  %5861 = vmatpush3.bf16.msra.mxu0 %v6086_v28 }
0x14f2   :  { %v3194_v3 = vmul.f32 %v6177_v54, %v6173_v32  ;;  %5862 = vmatprep.subr.bf16.mxu0 %v6258_v8 }
0x14f4   :  { %5858 = vmatmul.mubr.msk.f32.vlgmr.msra.gmra.mxu1 %vm308_vm2, %v3194_v3 }
0x14f5   :  { %5872 = vmatprep.mubr.msk.bf16.mxu1 %vm6259_vm1, %v6258_v8  ;;  %5863 = vmatpush3.bf16.msra.mxu0 %v6087_v23 }
0x14f6   :  { %5876 = vmatprep.subr.bf16.mxu0 %v6258_v8 }
0x1518   :  { %v3479_v49 = vpop.xlane.xlu0 %3478 }
0x1519   :  { %v3483_v21 = vmul.f32 0.03125, %v3479_v49 }
0x151b   :  { %v3485_v22 = vadd.f32 1e-06, %v3483_v21 }
0x151d   :  { %6178 = vrsqrt.f32 %v3485_v22 }
0x152a   :  { %v6179_v31 = vpop.eup %6178 }
0x152b   :  { %v3489_v33 = vmul.f32 %v6179_v31, %v6938_v39 }
0x152d   :  { %v3497_v40 = vmul.f32 %v5447_v34, %v3489_v33 }
0x15b0   :  { %v3267_v56 = vpop.f32.mrf.mxu0 }
0x15b2   :  { %v5854_v60 = vpop.f32.mrf.mxu0 }
0x15b4   :  { %v3343_v61 = vpop.f32.mrf.mxu1 }
0x15b5   :  { %v6048_v1 = vpack.i.bf16 %v3343_v61, %v3267_v56 }
0x15b6   :  { %v5859_v4 = vpop.f32.mrf.mxu1 }
0x15b7   :  { %6049 = vrot.lane.b32.xlu1 %v6048_v1, %s7332_s4 }
0x15db   :  { %3481 = vadd.xlane.f32.xlu1 %v3480_v11 }
0x1629   :  { %v6050_v30 = vpop.permute.xlu1 %6049 }
0x162a   :  { %v6052_v10 = vunpack.i.h.bf16 %v6050_v30  ;;  %v6051_v12 = vunpack.i.l.bf16 %v6050_v30 }
0x162c   :  { %v3376_v17 = vsel %vm1654_vm4, %v3374_v5, %v6052_v10  ;;  %v3375_v18 = vsel %vm1654_vm4, %v3373_v58, %v6051_v12 }
0x162d   :  { %v3377_v20 = vpack.c.bf16 %v3376_v17, %v3375_v18 }
0x162f   :  { %5865 = vmatmul.mubr.msk.bf16.vlgmr.msra.gmra.mxu0 %vm174_vm0, %v3377_v20 }
0x1630   :  { %5877 = vmatpush3.bf16.msra.mxu0 %v6088_v19  ;;  %5880 = vmatprep.mubr.msk.bf16.mxu0 %vm6259_vm1, %v6258_v8 }
0x1631   :  { %5878 = vmatprep.subr.bf16.mxu0 %v6258_v8 }
0x1634   :  { %5879 = vmatpush3.bf16.msra.mxu0 %v6089_v46 }
0x1635   :  { %5894 = vmatprep.subr.mxu0 %v6258_v8 }
0x1664   :  { %v3482_v24 = vpop.xlane.xlu1 %3481 }
0x1665   :  { %v3484_v26 = vmul.f32 0.03125, %v3482_v24 }
0x1667   :  { %v3486_v27 = vadd.f32 1e-06, %v3484_v26 }
0x1669   :  { %6180 = vrsqrt.f32 %v3486_v27 }
0x1676   :  { %v6181_v9 = vpop.eup %6180 }
0x1677   :  { %v3490_v38 = vmul.f32 %v6181_v9, %v1883_v55  ;;  %v5446_v55 = vld [vmem:[%s7279_s18] ss:$0 sm:$0xff] }
0x1679   :  { %v3498_v29 = vmul.f32 %v5447_v34, %v3490_v38 }
0x167b   :  { %v3499_v41 = vpack.c.bf16 %v3498_v29, %v3497_v40 }
0x167d   :  { %5881 = vmatmul.mubr.msk.bf16.vlgmr.msra.gmra.mxu0 %vm174_vm0, %v3499_v41 }
0x167e   :  { %5896 = vmatprep.mubr.msk.f32.mxu0 %vm6259_vm1, %v6258_v8 }
0x16ef   :  { %v3427_v42 = vpop.f32.mrf.mxu0 }
0x16f0   :  { %v6989_v43 = vadd.f32 %v3427_v42, %v6679_v57  ;;  %v6090_v57 = vld [vmem:[%s7280_s19 + $0x8] sm:$0xff]  }
0x16f1   :  { %v5866_v0 = vpop.f32.mrf.mxu0  ;;  %5869 = vmatpush3.bf16.msra.mxu1 %v6090_v57 }
0x16f2   :  { %v3450_v44 = vmul.f32 %v6989_v43, %v6989_v43  ;;  %5870 = vmatprep.subr.bf16.mxu1 %v6258_v8 }
0x16f3   :  { %v3430_v32 = vpop.f32.mrf.mxu0 }
0x16f4   :  { %v6994_v36 = vadd.f32 %v3430_v32, %v6692_v62  ;;  %v3452_v39 = vsel %vm174_vm0, %v3450_v44, 0.0  ;;  %v6091_v62 = vld [vmem:[%s7280_s19] sm:$0xff]  }
0x16f5   :  { %3453 = vadd.xlane.f32.xlu0 %v3452_v39  ;;  %v5867_v45 = vpop.f32.mrf.mxu0  ;;  %5871 = vmatpush3.bf16.msra.mxu1 %v6091_v62 }
0x16f6   :  { %v3451_v48 = vmul.f32 %v6994_v36, %v6994_v36  ;;  %5884 = vmatprep.subr.mxu1 %v6258_v8 }
0x16f8   :  { %v3455_v25 = vsel %vm174_vm0, %v3451_v48, 0.0 }
0x16f9   :  { %3456 = vadd.xlane.f32.xlu0 %v3455_v25 }
0x173d   :  { %v7008_v50 = vpop.f32.mrf.mxu0 }
0x173f   :  { %v5882_v52 = vpop.f32.mrf.mxu0 }
0x1741   :  { %v7010_v53 = vpop.f32.mrf.mxu0 }
0x1743   :  { %v5883_v63 = vpop.f32.mrf.mxu0 }
0x177e   :  { %v3454_v54 = vpop.xlane.xlu0 %3453 }
0x177f   :  { %v3458_v3 = vmul.f32 0.03125, %v3454_v54 }
0x1781   :  { %v3460_v28 = vadd.f32 1e-06, %v3458_v3 }
0x1782   :  { %v3457_v23 = vpop.xlane.xlu0 %3456 }
0x1783   :  { %6182 = vrsqrt.f32 %v3460_v28  ;;  %v3459_v56 = vmul.f32 0.03125, %v3457_v23 }
0x1785   :  { %v3461_v60 = vadd.f32 1e-06, %v3459_v56 }
0x1787   :  { %6184 = vrsqrt.f32 %v3461_v60 }
0x1790   :  { %v6183_v61 = vpop.eup %6182 }
0x1791   :  { %v3464_v1 = vmul.f32 %v6183_v61, %v6989_v43 }
0x1793   :  { %v3472_v11 = vmul.f32 %v5446_v55, %v3464_v1 }
0x1794   :  { %v6185_v4 = vpop.eup %6184 }
0x1795   :  { %v3465_v7 = vmul.f32 %v6185_v4, %v6994_v36 }
0x1797   :  { %v3473_v13 = vmul.f32 %v5446_v55, %v3465_v7 }
0x1799   :  { %v3474_v14 = vpack.c.bf16 %v3473_v13, %v3472_v11 }
0x179b   :  { %5873 = vmatmul.mubr.msk.bf16.vlgmr.msra.gmra.mxu1 %vm174_vm0, %v3474_v14 }
0x179c   :  { %5885 = vmatpush3.xpose.msk.msra.mxu1 %vm308_vm2, %v7008_v50  ;;  %5886 = vmatprep.mubr.msk.f32.mxu1 %vm6259_vm1, %v6258_v8 }
0x179d   :  { %5889 = vmatprep.subr.mxu1 %v6258_v8 }
0x185b   :  { %v7023_v35 = vpop.f32.mrf.mxu1 }
0x185c   :  { %5887 = vmatmul.mubr.msk.f32.vlgmr.msra.gmra.mxu1 %vm308_vm2, %v7023_v35 }
0x185d   :  { %5890 = vmatpush3.xpose.msk.msra.mxu1 %vm308_vm2, %v7010_v53  ;;  %v5874_v15 = vpop.f32.mrf.mxu1  ;;  %5891 = vmatprep.mubr.msk.f32.mxu1 %vm6259_vm1, %v6258_v8 }
0x185e   :  { %5899 = vmatprep.subr.mxu1 %v6258_v8 }
0x185f   :  { %v7032_v16 = vpop.f32.mrf.mxu1 }
0x1860   :  { %5892 = vmatmul.mubr.msk.f32.vlgmr.msra.gmra.mxu1 %vm308_vm2, %v7032_v16 }
0x1861   :  { %v5875_v59 = vpop.f32.mrf.mxu1  ;;  %5901 = vmatprep.mubr.msk.f32.mxu1 %vm6259_vm1, %v6258_v8 }
0x191c   :  { %v3684_v30 = vpop.f32.mrf.mxu1 }
0x191d   :  { %v3685_v6 = vadd.f32 %v3684_v30, %v6494_v47 }
0x191e   :  { %v5888_v37 = vpop.f32.mrf.mxu1 }
0x191f   :  { %v3764_v10 = vsel %vm308_vm2, %v3685_v6, -inf }
0x1920   :  { %3765 = vmax.xlane.f32.xlu0 %v3764_v10  ;;  %v3760_v12 = vpop.f32.mrf.mxu1 }
0x1921   :  { %v3761_v58 = vadd.f32 %v3760_v12, %v6500_v51 }
0x1922   :  { %v5893_v5 = vpop.f32.mrf.mxu1 }
0x1923   :  { %v3767_v17 = vsel %vm308_vm2, %v3761_v58, -inf }
0x1924   :  { %3768 = vmax.xlane.f32.xlu1 %v3767_v17 }
0x1935   :  { %3862 = vrot.lane.b32.xlu1 %v7010_v53, %s6261_s29 }
0x1939   :  { %3940 = vrot.lane.b32.xlu1 %v7008_v50, %s6262_s1 }
0x193d   :  { %4018 = vrot.lane.b32.xlu1 %v7010_v53, %s6262_s1 }
0x19a9   :  { %v3766_v18 = vpop.xlane.xlu0 %3765 }
0x19aa   :  { %v3770_v19 = vsub.f32 %v3685_v6, %v3766_v18 }
0x19ac   :  { %v3772_v20 = vmul.f32 1.442695, %v3770_v19 }
0x19ad   :  { %v3769_v46 = vpop.xlane.xlu1 %3768 }
0x19ae   :  { %6186 = vpow2.f32 %v3772_v20  ;;  %v3771_v49 = vsub.f32 %v3761_v58, %v3769_v46 }
0x19b0   :  { %v3774_v21 = vmul.f32 1.442695, %v3771_v49 }
0x19b1   :  { %v3863_v22 = vpop.permute.xlu1 %3862 }
0x19b2   :  { %6188 = vpow2.f32 %v3774_v21  ;;  %5900 = vmatpush3.msra.mxu1 %v3863_v22 }
0x19b3   :  { %5909 = vmatprep.subr.mxu1 %v6258_v8 }
0x19b5   :  { %v3941_v33 = vpop.permute.xlu1 %3940 }
0x19b9   :  { %v4019_v9 = vpop.permute.xlu1 %4018 }
0x19bb   :  { %v6187_v24 = vpop.eup %6186 }
0x19bc   :  { %v3776_v26 = vsel %vm308_vm2, %v6187_v24, 0.0 }
0x19bd   :  { %3777 = vadd.xlane.f32.xlu0 %v3776_v26 }
0x19bf   :  { %v6189_v27 = vpop.eup %6188 }
0x19c0   :  { %v3779_v31 = vsel %vm308_vm2, %v6189_v27, 0.0 }
0x19c1   :  { %3780 = vadd.xlane.f32.xlu1 %v3779_v31 }
0x19d2   :  { %4016 = vrot.lane.b32.xlu1 %v7032_v16, %s6262_s1 }
0x19d3   :  { %3786 = vrot.lane.b32.xlu0 %v7008_v50, %s6261_s29  ;;  %s6273_s29 = smov 1.0  }
0x19d7   :  { %3938 = vrot.lane.b32.xlu0 %v7023_v35, %s6262_s1 }
0x1a46   :  { %v3778_v34 = vpop.xlane.xlu0 %3777 }
0x1a47   :  { %6190 = vrcp.f32 %v3778_v34 }
0x1a4a   :  { %v3787_v38 = vpop.permute.xlu0 %3786  ;;  %v3781_v40 = vpop.xlane.xlu1 %3780 }
0x1a4b   :  { %6192 = vrcp.f32 %v3781_v40  ;;  %5895 = vmatpush3.msra.mxu0 %v3787_v38 }
0x1a4c   :  { %5904 = vmatprep.subr.mxu0 %v6258_v8 }
0x1a4e   :  { %v3939_v44 = vpop.permute.xlu0 %3938  ;;  %v4017_v32 = vpop.permute.xlu1 %4016 }
0x1a54   :  { %v6191_v29 = vpop.eup %6190 }
0x1a55   :  { %v3784_v41 = vmul.f32 %v6191_v29, %v6187_v24 }
0x1a57   :  { %5897 = vmatmul.mubr.msk.f32.vlgmr.msra.gmra.mxu0 %vm308_vm2, %v3784_v41 }
0x1a58   :  { %v6193_v42 = vpop.eup %6192  ;;  %5905 = vmatpush3.xpose.msk.msra.mxu0 %vm308_vm2, %v3941_v33  ;;  %5906 = vmatprep.mubr.msk.f32.mxu0 %vm6259_vm1, %v6258_v8 }
0x1a59   :  { %v3785_v0 = vmul.f32 %v6193_v42, %v6189_v27  ;;  %5914 = vmatprep.subr.mxu0 %v6258_v8 }
0x1a5b   :  { %5902 = vmatmul.mubr.msk.f32.vlgmr.msra.gmra.mxu1 %vm308_vm2, %v3785_v0  ;;  %5907 = vmatmul.mubr.msk.f32.vlgmr.msra.gmra.mxu0 %vm308_vm2, %v3939_v44 }
0x1a5c   :  { %5910 = vmatpush3.xpose.msk.msra.mxu1 %vm308_vm2, %v4019_v9  ;;  %5911 = vmatprep.mubr.msk.f32.mxu1 %vm6259_vm1, %v6258_v8 }
0x1a5d   :  { %5919 = vmatprep.subr.mxu1 %v6258_v8  ;;  %5916 = vmatprep.mubr.msk.f32.mxu0 %vm6259_vm1, %v6258_v8 }
0x1a5f   :  { %5912 = vmatmul.mubr.msk.f32.vlgmr.msra.gmra.mxu1 %vm308_vm2, %v4017_v32 }
0x1a60   :  { %5921 = vmatprep.mubr.msk.f32.mxu1 %vm6259_vm1, %v6258_v8 }
0x1b17   :  { %v7074_v39 = vpop.f32.mrf.mxu0 }
0x1b19   :  { %v5898_v45 = vpop.f32.mrf.mxu0 }
0x1b1b   :  { %v7076_v48 = vpop.f32.mrf.mxu1  ;;  %v4012_v25 = vpop.f32.mrf.mxu0 }
0x1b1c   :  { %v4013_v57 = vadd.f32 %v4012_v25, %v6494_v47 }
0x1b1d   :  { %v5903_v62 = vpop.f32.mrf.mxu1  ;;  %v5908_v52 = vpop.f32.mrf.mxu0 }
0x1b1e   :  { %v4094_v63 = vsel %vm308_vm2, %v4013_v57, -inf }
0x1b1f   :  { %v4090_v54 = vpop.f32.mrf.mxu1  ;;  %4095 = vmax.xlane.f32.xlu0 %v4094_v63 }
0x1b20   :  { %v4091_v3 = vadd.f32 %v4090_v54, %v6500_v51 }
0x1b21   :  { %v5913_v28 = vpop.f32.mrf.mxu1 }
0x1b22   :  { %v4097_v23 = vsel %vm308_vm2, %v4091_v3, -inf }
0x1b23   :  { %4098 = vmax.xlane.f32.xlu1 %v4097_v23 }
0x1b34   :  { %4192 = vrot.lane.b32.xlu1 %v7010_v53, %s6263_s2 }
0x1b38   :  { %4270 = vrot.lane.b32.xlu1 %v7008_v50, %s6264_s3 }
0x1b3c   :  { %4348 = vrot.lane.b32.xlu1 %v7010_v53, %s6264_s3 }
0x1b40   :  { %4346 = vrot.lane.b32.xlu1 %v7032_v16, %s6264_s3 }
0x1ba8   :  { %v4096_v56 = vpop.xlane.xlu0 %4095 }
0x1ba9   :  { %v4100_v60 = vsub.f32 %v4013_v57, %v4096_v56 }
0x1bab   :  { %v4102_v61 = vmul.f32 1.442695, %v4100_v60 }
0x1bac   :  { %v4099_v1 = vpop.xlane.xlu1 %4098 }
0x1bad   :  { %6194 = vpow2.f32 %v4102_v61  ;;  %v4101_v4 = vsub.f32 %v4091_v3, %v4099_v1 }
0x1baf   :  { %v4104_v55 = vmul.f32 1.442695, %v4101_v4 }
0x1bb0   :  { %v4193_v7 = vpop.permute.xlu1 %4192 }
0x1bb1   :  { %6196 = vpow2.f32 %v4104_v55  ;;  %5920 = vmatpush3.msra.mxu1 %v4193_v7 }
0x1bb2   :  { %5929 = vmatprep.subr.mxu1 %v6258_v8 }
0x1bb4   :  { %v4271_v37 = vpop.permute.xlu1 %4270 }
0x1bb8   :  { %v4349_v5 = vpop.permute.xlu1 %4348 }
0x1bba   :  { %v6195_v11 = vpop.eup %6194 }
0x1bbb   :  { %v4106_v13 = vsel %vm308_vm2, %v6195_v11, 0.0 }
0x1bbc   :  { %4107 = vadd.xlane.f32.xlu0 %v4106_v13  ;;  %v4347_v19 = vpop.permute.xlu1 %4346 }
0x1bbe   :  { %v6197_v14 = vpop.eup %6196 }
0x1bbf   :  { %v4109_v15 = vsel %vm308_vm2, %v6197_v14, 0.0 }
0x1bc0   :  { %4110 = vadd.xlane.f32.xlu0 %v4109_v15 }
0x1bd6   :  { %4116 = vrot.lane.b32.xlu0 %v7008_v50, %s6263_s2  ;;  %s6274_s2 = smov [#allocation2]  }
0x1bda   :  { %4268 = vrot.lane.b32.xlu0 %v7023_v35, %s6264_s3 }
0x1c45   :  { %v4108_v59 = vpop.xlane.xlu0 %4107 }
0x1c46   :  { %6198 = vrcp.f32 %v4108_v59 }
0x1c49   :  { %v4111_v30 = vpop.xlane.xlu0 %4110 }
0x1c4a   :  { %6200 = vrcp.f32 %v4111_v30 }
0x1c4d   :  { %v4117_v6 = vpop.permute.xlu0 %4116 }
0x1c4e   :  { %5915 = vmatpush3.msra.mxu0 %v4117_v6 }
0x1c4f   :  { %5924 = vmatprep.subr.mxu0 %v6258_v8 }
0x1c51   :  { %v4269_v18 = vpop.permute.xlu0 %4268 }
0x1c53   :  { %v6199_v10 = vpop.eup %6198 }
0x1c54   :  { %v4114_v12 = vmul.f32 %v6199_v10, %v6195_v11 }
0x1c56   :  { %5917 = vmatmul.mubr.msk.f32.vlgmr.msra.gmra.mxu0 %vm308_vm2, %v4114_v12 }
0x1c57   :  { %v6201_v58 = vpop.eup %6200  ;;  %5925 = vmatpush3.xpose.msk.msra.mxu0 %vm308_vm2, %v4271_v37  ;;  %5926 = vmatprep.mubr.msk.f32.mxu0 %vm6259_vm1, %v6258_v8 }
0x1c58   :  { %v4115_v17 = vmul.f32 %v6201_v58, %v6197_v14  ;;  %5934 = vmatprep.subr.mxu0 %v6258_v8 }
0x1c5a   :  { %5922 = vmatmul.mubr.msk.f32.vlgmr.msra.gmra.mxu1 %vm308_vm2, %v4115_v17  ;;  %5927 = vmatmul.mubr.msk.f32.vlgmr.msra.gmra.mxu0 %vm308_vm2, %v4269_v18 }
0x1c5b   :  { %5930 = vmatpush3.xpose.msk.msra.mxu1 %vm308_vm2, %v4349_v5  ;;  %5931 = vmatprep.mubr.msk.f32.mxu1 %vm6259_vm1, %v6258_v8 }
0x1c5c   :  { %5939 = vmatprep.subr.mxu1 %v6258_v8  ;;  %5936 = vmatprep.mubr.msk.f32.mxu0 %vm6259_vm1, %v6258_v8 }
0x1c5e   :  { %5932 = vmatmul.mubr.msk.f32.vlgmr.msra.gmra.mxu1 %vm308_vm2, %v4347_v19 }
0x1c5f   :  { %5941 = vmatprep.mubr.msk.f32.mxu1 %vm6259_vm1, %v6258_v8 }
0x1d16   :  { %v7114_v20 = vpop.f32.mrf.mxu0 }
0x1d18   :  { %v5918_v46 = vpop.f32.mrf.mxu0 }
0x1d1a   :  { %v7116_v49 = vpop.f32.mrf.mxu1  ;;  %v4342_v21 = vpop.f32.mrf.mxu0 }
0x1d1b   :  { %v6053_v22 = vpack.i.bf16 %v7116_v49, %v7114_v20  ;;  %v4343_v24 = vadd.f32 %v4342_v21, %v6494_v47 }
0x1d1c   :  { %v5923_v26 = vpop.f32.mrf.mxu1  ;;  %v5928_v27 = vpop.f32.mrf.mxu0 }
0x1d1d   :  { %v4424_v31 = vsel %vm308_vm2, %v4343_v24, -inf }
0x1d1e   :  { %v4420_v33 = vpop.f32.mrf.mxu1  ;;  %4425 = vmax.xlane.f32.xlu0 %v4424_v31 }
0x1d1f   :  { %v4421_v9 = vadd.f32 %v4420_v33, %v6500_v51  ;;  %v6093_v33 = vld [vmem:[%s7282_s21] sm:$0xff]  }
0x1d20   :  { %v5933_v34 = vpop.f32.mrf.mxu1 }
0x1d21   :  { %v4427_v38 = vsel %vm308_vm2, %v4421_v9, -inf }
0x1d22   :  { %4428 = vmax.xlane.f32.xlu1 %v4427_v38 }
0x1d33   :  { %4522 = vrot.lane.b32.xlu1 %v7010_v53, %s6265_s8 }
0x1d37   :  { %4600 = vrot.lane.b32.xlu1 %v7008_v50, %s6266_s30 }
0x1d3b   :  { %4678 = vrot.lane.b32.xlu1 %v7010_v53, %s6266_s30 }
0x1d3f   :  { %4676 = vrot.lane.b32.xlu1 %v7032_v16, %s6266_s30 }
0x1da7   :  { %v4426_v40 = vpop.xlane.xlu0 %4425 }
0x1da8   :  { %v4430_v29 = vsub.f32 %v4343_v24, %v4426_v40 }
0x1daa   :  { %v4432_v41 = vmul.f32 1.442695, %v4430_v29 }
0x1dab   :  { %v4429_v42 = vpop.xlane.xlu1 %4428 }
0x1dac   :  { %6202 = vpow2.f32 %v4432_v41  ;;  %v4431_v0 = vsub.f32 %v4421_v9, %v4429_v42 }
0x1dae   :  { %v4434_v44 = vmul.f32 1.442695, %v4431_v0 }
0x1daf   :  { %v4523_v32 = vpop.permute.xlu1 %4522 }
0x1db0   :  { %6204 = vpow2.f32 %v4434_v44  ;;  %5940 = vmatpush3.msra.mxu1 %v4523_v32 }
0x1db1   :  { %5949 = vmatprep.subr.mxu1 %v6258_v8 }
0x1db3   :  { %v4601_v54 = vpop.permute.xlu1 %4600 }
0x1db7   :  { %v4679_v56 = vpop.permute.xlu1 %4678 }
0x1db9   :  { %v6203_v45 = vpop.eup %6202 }
0x1dba   :  { %v4436_v25 = vsel %vm308_vm2, %v6203_v45, 0.0 }
0x1dbb   :  { %4437 = vadd.xlane.f32.xlu0 %v4436_v25  ;;  %v4677_v61 = vpop.permute.xlu1 %4676 }
0x1dbd   :  { %v6205_v57 = vpop.eup %6204 }
0x1dbe   :  { %v4439_v62 = vsel %vm308_vm2, %v6205_v57, 0.0 }
0x1dbf   :  { %4440 = vadd.xlane.f32.xlu0 %v4439_v62 }
0x1dd5   :  { %4446 = vrot.lane.b32.xlu0 %v7008_v50, %s6265_s8 }
0x1dd9   :  { %4598 = vrot.lane.b32.xlu0 %v7023_v35, %s6266_s30 }
0x1e44   :  { %v4438_v16 = vpop.xlane.xlu0 %4437 }
0x1e45   :  { %6206 = vrcp.f32 %v4438_v16 }
0x1e48   :  { %v4441_v52 = vpop.xlane.xlu0 %4440 }
0x1e49   :  { %6208 = vrcp.f32 %v4441_v52 }
0x1e4c   :  { %v4447_v63 = vpop.permute.xlu0 %4446 }
0x1e4d   :  { %5935 = vmatpush3.msra.mxu0 %v4447_v63 }
0x1e4e   :  { %5944 = vmatprep.subr.mxu0 %v6258_v8 }
0x1e50   :  { %v4599_v60 = vpop.permute.xlu0 %4598 }
0x1e52   :  { %v6207_v3 = vpop.eup %6206 }
0x1e53   :  { %v4444_v28 = vmul.f32 %v6207_v3, %v6203_v45 }
0x1e55   :  { %5937 = vmatmul.mubr.msk.f32.vlgmr.msra.gmra.mxu0 %vm308_vm2, %v4444_v28 }
0x1e56   :  { %v6209_v23 = vpop.eup %6208  ;;  %5945 = vmatpush3.xpose.msk.msra.mxu0 %vm308_vm2, %v4601_v54  ;;  %5946 = vmatprep.mubr.msk.f32.mxu0 %vm6259_vm1, %v6258_v8 }
0x1e57   :  { %v4445_v35 = vmul.f32 %v6209_v23, %v6205_v57  ;;  %5954 = vmatprep.subr.mxu0 %v6258_v8 }
0x1e59   :  { %5942 = vmatmul.mubr.msk.f32.vlgmr.msra.gmra.mxu1 %vm308_vm2, %v4445_v35  ;;  %5947 = vmatmul.mubr.msk.f32.vlgmr.msra.gmra.mxu0 %vm308_vm2, %v4599_v60 }
0x1e5a   :  { %5950 = vmatpush3.xpose.msk.msra.mxu1 %vm308_vm2, %v4679_v56  ;;  %5951 = vmatprep.mubr.msk.f32.mxu1 %vm6259_vm1, %v6258_v8 }
0x1e5b   :  { %5959 = vmatprep.subr.mxu1 %v6258_v8  ;;  %5956 = vmatprep.mubr.msk.f32.mxu0 %vm6259_vm1, %v6258_v8 }
0x1e5d   :  { %5952 = vmatmul.mubr.msk.f32.vlgmr.msra.gmra.mxu1 %vm308_vm2, %v4677_v61 }
0x1e5e   :  { %5961 = vmatprep.mubr.msk.f32.mxu1 %vm6259_vm1, %v6258_v8 }
0x1f15   :  { %v4518_v1 = vpop.f32.mrf.mxu0 }
0x1f17   :  { %v5938_v4 = vpop.f32.mrf.mxu0 }
0x1f19   :  { %v4594_v55 = vpop.f32.mrf.mxu1  ;;  %v4672_v7 = vpop.f32.mrf.mxu0 }
0x1f1a   :  { %v4673_v11 = vadd.f32 %v4672_v7, %v6494_v47  ;;  %v6058_v47 = vpack.i.bf16 %v4594_v55, %v4518_v1 }
0x1f1b   :  { %v5943_v13 = vpop.f32.mrf.mxu1  ;;  %v5948_v14 = vpop.f32.mrf.mxu0 }
0x1f1c   :  { %v4754_v15 = vsel %vm308_vm2, %v4673_v11, -inf  ;;  %v6097_v13 = vld [vmem:[%s7285_s24 + $0x10] sm:$0xff]  }
0x1f1d   :  { %v4750_v59 = vpop.f32.mrf.mxu1  ;;  %4755 = vmax.xlane.f32.xlu0 %v4754_v15 }
0x1f1e   :  { %v4751_v30 = vadd.f32 %v4750_v59, %v6500_v51 }
0x1f1f   :  { %v5953_v6 = vpop.f32.mrf.mxu1 }
0x1f20   :  { %v4757_v37 = vsel %vm308_vm2, %v4751_v30, -inf }
0x1f21   :  { %4758 = vmax.xlane.f32.xlu1 %v4757_v37 }
0x1f32   :  { %4852 = vrot.lane.b32.xlu1 %v7010_v53, %s7329_s14 }
0x1f36   :  { %6054 = vrot.lane.b32.xlu1 %v6053_v22, %s7330_s5 }
0x1f3a   :  { %6059 = vrot.lane.b32.xlu1 %v6058_v47, %s7331_s16 }
0x1fa6   :  { %v4756_v10 = vpop.xlane.xlu0 %4755 }
0x1fa7   :  { %v4760_v12 = vsub.f32 %v4673_v11, %v4756_v10  ;;  %v6094_v11 = vld [vmem:[%s7284_s23 + $0x8] sm:$0xff]  }
0x1fa9   :  { %v4762_v58 = vmul.f32 1.442695, %v4760_v12 }
0x1faa   :  { %v4759_v5 = vpop.xlane.xlu1 %4758 }
0x1fab   :  { %6210 = vpow2.f32 %v4762_v58  ;;  %v4761_v51 = vsub.f32 %v4751_v30, %v4759_v5  ;;  %v5481_v58 = vld [vmem:[%s7283_s22] ss:$0 sm:$0xff] }
0x1fad   :  { %v4764_v17 = vmul.f32 1.442695, %v4761_v51 }
0x1fae   :  { %v4853_v18 = vpop.permute.xlu1 %4852 }
0x1faf   :  { %6212 = vpow2.f32 %v4764_v17  ;;  %5960 = vmatpush3.msra.mxu1 %v4853_v18 }
0x1fb0   :  { %5972 = vmatprep.subr.bf16.mxu1 %v6258_v8 }
0x1fb2   :  { %v6055_v41 = vpop.permute.xlu1 %6054 }
0x1fb3   :  { %v6057_v0 = vunpack.i.h.bf16 %v6055_v41  ;;  %v6056_v44 = vunpack.i.l.bf16 %v6055_v41 }
0x1fb5   :  { %v4953_v57 = vsel %vm308_vm2, %v7076_v48, %v6057_v0  ;;  %v4952_v62 = vsel %vm308_vm2, %v7074_v39, %v6056_v44  ;;  %v6101_v0 = vld [vmem:[%s7287_s26] sm:$0xff]  }
0x1fb6   :  { %v6060_v42 = vpop.permute.xlu1 %6059 }
0x1fb7   :  { %v6062_v32 = vunpack.i.h.bf16 %v6060_v42  ;;  %v6061_v45 = vunpack.i.l.bf16 %v6060_v42  ;;  %v6100_v42 = vld [vmem:[%s7287_s26 + $0x8] sm:$0xff]  }
0x1fb8   :  { %v6211_v53 = vpop.eup %6210 }
0x1fb9   :  { %v4766_v19 = vsel %vm308_vm2, %v6211_v53, 0.0  ;;  %v4955_v63 = vsel %vm1651_vm3, %v4953_v57, %v6062_v32  ;;  %v4954_v54 = vsel %vm1651_vm3, %v4952_v62, %v6061_v45 }
0x1fba   :  { %4767 = vadd.xlane.f32.xlu0 %v4766_v19  ;;  %v6099_v19 = vld [vmem:[%s7285_s24] sm:$0xff]  }
0x1fbc   :  { %v6213_v20 = vpop.eup %6212 }
0x1fbd   :  { %v4769_v46 = vsel %vm308_vm2, %v6213_v20, 0.0 }
0x1fbe   :  { %4770 = vadd.xlane.f32.xlu0 %v4769_v46 }
0x1fd4   :  { %4776 = vrot.lane.b32.xlu0 %v7008_v50, %s7329_s14  ;;  %v6092_v50 = vld [vmem:[%s7282_s21 + $0x8] sm:$0xff]   ;;  %s5361_s21 = sshll.u32 %s6274_s2, 4  ;;  %s5362_s21 = int_to_ptr.vmem [resolvable:$true] %s5361_s21 }
0x1fd5   :  { %s6236_s30 = scalar_lea.vmem %s5362_s21, 16  ;;  %s6240_s14 = scalar_lea.vmem %s5362_s21, 32 }
0x1fd6   :  { %p6237_p0 = scmp.ne.s32.totalorder %s5362_s21, %s6236_s30  ;;  %p6241_p1 = scmp.lt.s32.totalorder %s5362_s21, %s5362_s21 }
0x1fd7   :  { %p6242_p2 = scmp.lt.s32.totalorder %s6240_s14, %s6236_s30 }
0x1fd9   :  { %p6243_p3 = por %p6242_p2, %p6241_p1 }
0x1fdb   :  { %p6244_p4 = pnand %p6243_p3, %p6237_p0 }
0x2043   :  { %v4768_v49 = vpop.xlane.xlu0 %4767 }
0x2044   :  { %6214 = vrcp.f32 %v4768_v49 }
0x2047   :  { %v4771_v21 = vpop.xlane.xlu0 %4770 }
0x2048   :  { %6216 = vrcp.f32 %v4771_v21 }
0x204b   :  { %v4777_v22 = vpop.permute.xlu0 %4776 }
0x204c   :  { %5955 = vmatpush3.msra.mxu0 %v4777_v22 }
0x204d   :  { %5964 = vmatprep.subr.bf16.mxu0 %v6258_v8 }
0x2051   :  { %v6215_v24 = vpop.eup %6214 }
0x2052   :  { %v4774_v26 = vmul.f32 %v6215_v24, %v6211_v53  ;;  %v6098_v53 = vld [vmem:[%s7285_s24 + $0x8] sm:$0xff]  }
0x2054   :  { %5957 = vmatmul.mubr.msk.f32.vlgmr.msra.gmra.mxu0 %vm308_vm2, %v4774_v26 }
0x2055   :  { %v6217_v27 = vpop.eup %6216  ;;  %5968 = vmatprep.mubr.msk.bf16.mxu0 %vm6259_vm1, %v6258_v8  ;;  %5965 = vmatpush3.bf16.msra.mxu0 %v6092_v50 }
0x2056   :  { %v4775_v31 = vmul.f32 %v6217_v27, %v6213_v20  ;;  %5966 = vmatprep.subr.bf16.mxu0 %v6258_v8 }
0x2058   :  { %5962 = vmatmul.mubr.msk.f32.vlgmr.msra.gmra.mxu1 %vm308_vm2, %v4775_v31 }
0x2059   :  { %5976 = vmatprep.mubr.msk.bf16.mxu1 %vm6259_vm1, %v6258_v8  ;;  %5967 = vmatpush3.bf16.msra.mxu0 %v6093_v33 }
0x205a   :  { %5980 = vmatprep.subr.bf16.mxu0 %v6258_v8  ;;  %5973 = vmatpush3.bf16.msra.mxu1 %v6094_v11 }
0x205b   :  { %5974 = vmatprep.subr.bf16.mxu1 %v6258_v8 }
0x2114   :  { %v4848_v9 = vpop.f32.mrf.mxu0 }
0x2116   :  { %v5958_v34 = vpop.f32.mrf.mxu0 }
0x2118   :  { %v4924_v38 = vpop.f32.mrf.mxu1 }
0x2119   :  { %v6063_v40 = vpack.i.bf16 %v4924_v38, %v4848_v9 }
0x211a   :  { %v5963_v29 = vpop.f32.mrf.mxu1 }
0x211b   :  { %6064 = vrot.lane.b32.xlu0 %v6063_v40, %s7332_s4 }
0x218d   :  { %v6065_v25 = vpop.permute.xlu0 %6064 }
0x218e   :  { %v6067_v16 = vunpack.i.h.bf16 %v6065_v25  ;;  %v6066_v52 = vunpack.i.l.bf16 %v6065_v25 }
0x2190   :  { %v4957_v3 = vsel %vm1654_vm4, %v4955_v63, %v6067_v16  ;;  %v4956_v28 = vsel %vm1654_vm4, %v4954_v54, %v6066_v52  ;;  %v5490_v63 = vld [vmem:[%s7286_s25] ss:$0 sm:$0xff] }
0x2191   :  { %v4958_v23 = vpack.c.bf16 %v4957_v3, %v4956_v28 }
0x2193   :  { %5969 = vmatmul.mubr.msk.bf16.vlgmr.msra.gmra.mxu0 %vm174_vm0, %v4958_v23 }
0x2194   :  { %5988 = vmatprep.mubr.msk.bf16.mxu0 %vm6259_vm1, %v6258_v8 }
0x2253   :  { %v5008_v48 = vpop.f32.mrf.mxu0 }
0x2254   :  { %v5015_v56 = vadd.f32 %v5008_v48, %v6989_v43  ;;  %v6095_v43 = vld [vmem:[%s7284_s23] sm:$0xff]  }
0x2255   :  { %v5970_v39 = vpop.f32.mrf.mxu0  ;;  %5975 = vmatpush3.bf16.msra.mxu1 %v6095_v43 }
0x2256   :  { %v5030_v35 = vmul.f32 %v5015_v56, %v5015_v56  ;;  %5992 = vmatprep.subr.bf16.mxu1 %v6258_v8 }
0x2257   :  { %v5011_v60 = vpop.f32.mrf.mxu0 }
0x2258   :  { %v5016_v61 = vadd.f32 %v5011_v60, %v6994_v36  ;;  %v5032_v1 = vsel %vm174_vm0, %v5030_v35, 0.0  ;;  %v6096_v36 = vld [vmem:[%s7285_s24 + $0x18] sm:$0xff]   ;;  %v6272_v35 = vmov 0  }
0x2259   :  { %5033 = vadd.xlane.f32.xlu1 %v5032_v1  ;;  %v5971_v4 = vpop.f32.mrf.mxu0  ;;  %5981 = vmatpush3.bf16.msra.mxu0 %v6096_v36 }
0x225a   :  { %v5031_v55 = vmul.f32 %v5016_v61, %v5016_v61  ;;  %5982 = vmatprep.subr.bf16.mxu0 %v6258_v8  ;;  %6068 = vset.pattern.permute.xlu1 %v6272_v35 }
0x225b   :  { %6069 = vset.pattern.permute.xlu0 %v6272_v35 }
0x225c   :  { %v5035_v7 = vsel %vm174_vm0, %v5031_v55, 0.0  ;;  %v5272_v55 = vld [vmem:[%s7333_s6] sm:$0xff] }
0x225d   :  { %5036 = vadd.xlane.f32.xlu0 %v5035_v7  ;;  %5983 = vmatpush3.bf16.msra.mxu0 %v6097_v13  ;;  %v5273_v7 = vld [vmem:[%s7333_s6 + $0x8] sm:$0xff]  ;;  %vm5312_vm9 = vcmp.ne.s32.totalorder %v5272_v55, 4294967196 }
0x225e   :  { %5984 = vmatprep.subr.bf16.mxu0 %v6258_v8  ;;  %vm5313_vm10 = vcmp.ne.s32.totalorder %v5273_v7, 4294967196 }
0x2261   :  { %5985 = vmatpush3.bf16.msra.mxu0 %v6098_v53 }
0x2262   :  { %5986 = vmatprep.subr.bf16.mxu0 %v6258_v8 }
0x2265   :  { %5987 = vmatpush3.bf16.msra.mxu0 %v6099_v19 }
0x22e2   :  { %v5034_v14 = vpop.xlane.xlu1 %5033 }
0x22e3   :  { %v5038_v15 = vmul.f32 0.03125, %v5034_v14 }
0x22e5   :  { %v5040_v59 = vadd.f32 1e-06, %v5038_v15 }
0x22e6   :  { %v5037_v30 = vpop.xlane.xlu0 %5036 }
0x22e7   :  { %6218 = vrsqrt.f32 %v5040_v59  ;;  %v5039_v6 = vmul.f32 0.03125, %v5037_v30 }
0x22e9   :  { %v5041_v37 = vadd.f32 1e-06, %v5039_v6 }
0x22eb   :  { %6220 = vrsqrt.f32 %v5041_v37 }
0x22f4   :  { %v6219_v47 = vpop.eup %6218 }
0x22f5   :  { %v5044_v10 = vmul.f32 %v6219_v47, %v5015_v56 }
0x22f7   :  { %v5052_v51 = vmul.f32 %v5481_v58, %v5044_v10 }
0x22f8   :  { %v6221_v12 = vpop.eup %6220 }
0x22f9   :  { %v5045_v5 = vmul.f32 %v6221_v12, %v5016_v61 }
0x22fb   :  { %v5053_v17 = vmul.f32 %v5481_v58, %v5045_v5 }
0x22fd   :  { %v5054_v18 = vpack.c.bf16 %v5053_v17, %v5052_v51 }
0x22ff   :  { %5977 = vmatmul.mubr.msk.bf16.vlgmr.msra.gmra.mxu1 %vm174_vm0, %v5054_v18 }
0x2300   :  { %5996 = vmatprep.mubr.msk.bf16.mxu1 %vm6259_vm1, %v6258_v8  ;;  %5993 = vmatpush3.bf16.msra.mxu1 %v6100_v42 }
0x2301   :  { %5994 = vmatprep.subr.bf16.mxu1 %v6258_v8 }
0x2304   :  { %5995 = vmatpush3.bf16.msra.mxu1 %v6101_v0 }
0x23bf   :  { %v5104_v20 = vpop.f32.mrf.mxu1 }
0x23c0   :  { %v5111_v21 = vmax.f32 %v5104_v20, 0.0 }
0x23c1   :  { %v5978_v46 = vpop.f32.mrf.mxu1 }
0x23c3   :  { %v5107_v49 = vpop.f32.mrf.mxu1 }
0x23c4   :  { %v5112_v22 = vmax.f32 %v5107_v49, 0.0  ;;  %v5496_v49 = vsel %vm5312_vm9, 1.0, %v6258_v8 }
0x23c5   :  { %v5979_v24 = vpop.f32.mrf.mxu1 }
0x23c6   :  { %v5113_v26 = vpack.c.bf16 %v5112_v22, %v5111_v21  ;;  %v5497_v22 = vsel %vm5313_vm10, 1.0, %v6258_v8 }
0x23c8   :  { %5989 = vmatmul.mubr.msk.bf16.vlgmr.msra.gmra.mxu0 %vm1837_vm5, %v5113_v26 }
0x2488   :  { %v5175_v27 = vpop.f32.mrf.mxu0 }
0x2489   :  { %v5182_v31 = vadd.f32 %v5175_v27, %v5015_v56 }
0x248a   :  { %v5990_v50 = vpop.f32.mrf.mxu0 }
0x248b   :  { %v5185_v33 = vmul.f32 %v5182_v31, %v5182_v31  ;;  %v5335_v50 = vsel %vm5322_vm11, %v5496_v49, 0.0 }
0x248c   :  { %v5178_v9 = vpop.f32.mrf.mxu0 }
0x248d   :  { %v5183_v34 = vadd.f32 %v5178_v9, %v5016_v61  ;;  %v5187_v38 = vsel %vm174_vm0, %v5185_v33, 0.0  ;;  %v5336_v9 = vsel %vm5322_vm11, %v5497_v22, 0.0 }
0x248e   :  { %5188 = vadd.xlane.f32.xlu0 %v5187_v38  ;;  %v5991_v40 = vpop.f32.mrf.mxu0 }
0x248f   :  { %v5186_v29 = vmul.f32 %v5183_v34, %v5183_v34  ;;  %v5337_v40 = vadd.f32 %v5336_v9, %v5335_v50 }
0x2491   :  { %v5190_v41 = vsel %vm174_vm0, %v5186_v29, 0.0 }
0x2492   :  { %5191 = vadd.xlane.f32.xlu0 %v5190_v41 }
0x2517   :  { %v5189_v44 = vpop.xlane.xlu0 %5188 }
0x2518   :  { %v5193_v32 = vmul.f32 0.03125, %v5189_v44 }
0x251a   :  { %v5195_v45 = vadd.f32 1e-06, %v5193_v32 }
0x251b   :  { %v5192_v25 = vpop.xlane.xlu0 %5191 }
0x251c   :  { %6222 = vrsqrt.f32 %v5195_v45  ;;  %v5194_v57 = vmul.f32 0.03125, %v5192_v25 }
0x251e   :  { %v5196_v62 = vadd.f32 1e-06, %v5194_v57 }
0x2520   :  { %6224 = vrsqrt.f32 %v5196_v62 }
0x2529   :  { %v6223_v16 = vpop.eup %6222 }
0x252a   :  { %v5199_v52 = vmul.f32 %v6223_v16, %v5182_v31 }
0x252c   :  { %v5207_v28 = vmul.f32 %v5490_v63, %v5199_v52 }
0x252d   :  { %v6225_v54 = vpop.eup %6224 }
0x252e   :  { %v5200_v3 = vmul.f32 %v6225_v54, %v5183_v34  ;;  %v5209_v48 = vmul.f32 0.17677669, %v5207_v28 }
0x2530   :  { %v5208_v23 = vmul.f32 %v5490_v63, %v5200_v3 }
0x2532   :  { %v5210_v56 = vmul.f32 0.17677669, %v5208_v23 }
0x2534   :  { %v5211_v39 = vpack.c.bf16 %v5210_v56, %v5209_v48 }
0x2536   :  { %5997 = vmatmul.mubr.msk.bf16.vlgmr.msra.gmra.mxu1 %vm174_vm0, %v5211_v39 }
0x25f6   :  { %v5265_v60 = vpop.f32.mrf.mxu1 }
0x25f7   :  { %5274 = vmax.xlane.f32.xlu1 %v5265_v60 }
0x25f8   :  { %v5998_v61 = vpop.f32.mrf.mxu1 }
0x25fa   :  { %v5268_v1 = vpop.f32.mrf.mxu1 }
0x25fb   :  { %5276 = vmax.xlane.f32.xlu0 %v5268_v1 }
0x25fc   :  { %v5999_v4 = vpop.f32.mrf.mxu1 }
0x2608   :  { %5295 = vperm.xlu1 %6068, %v5272_v55  }
0x2611   :  { %5298 = vperm.xlu0 %6069, %v5273_v7  }
0x2680   :  { %v5275_v11 = vpop.xlane.xlu1 %5274 }
0x2681   :  { %v5278_v43 = vsub.f32 %v5265_v60, %v5275_v11 }
0x2683   :  { %v5280_v36 = vmul.f32 1.442695, %v5278_v43 }
0x2684   :  { %v5277_v13 = vpop.xlane.xlu0 %5276  ;;  %v5296_v59 = vpop.permute.xlu1 %5295 }
0x2685   :  { %6226 = vpow2.f32 %v5280_v36  ;;  %v5279_v14 = vsub.f32 %v5268_v1, %v5277_v13  ;;  %vm5300_vm7 = vcmp.eq.s32.totalorder %v6784_v2, %v5296_v59 }
0x2686   :  { %v5494_v37 = vsel %vm5300_vm7, 1.0, %v6258_v8 }
0x2687   :  { %v5282_v15 = vmul.f32 1.442695, %v5279_v14  ;;  %v5306_v47 = vmul.f32 %v5494_v37, %v5265_v60 }
0x2689   :  { %6228 = vpow2.f32 %v5282_v15 }
0x268c   :  { %v5299_v30 = vpop.permute.xlu0 %5298 }
0x268d   :  { %vm5301_vm8 = vcmp.eq.s32.totalorder %v6784_v2, %v5299_v30 }
0x268e   :  { %v5495_v12 = vsel %vm5301_vm8, 1.0, %v6258_v8 }
0x268f   :  { %v5307_v58 = vmul.f32 %v5495_v12, %v5268_v1 }
0x2692   :  { %v6227_v6 = vpop.eup %6226 }
0x2693   :  { %5284 = vadd.xlane.f32.xlu1 %v6227_v6 }
0x2696   :  { %v6229_v10 = vpop.eup %6228 }
0x2697   :  { %5308 = vadd.xlane.f32.xlu1 %v5306_v47  ;;  %5286 = vadd.xlane.f32.xlu0 %v6229_v10 }
0x269b   :  { %5310 = vadd.xlane.f32.xlu1 %v5307_v58 }
0x271c   :  { %v5285_v5 = vpop.xlane.xlu1 %5284 }
0x271d   :  { %6230 = vlog2.f32 %v5285_v5 }
0x2720   :  { %v5287_v51 = vpop.xlane.xlu0 %5286  ;;  %v5309_v53 = vpop.xlane.xlu1 %5308 }
0x2721   :  { %6232 = vlog2.f32 %v5287_v51 }
0x2724   :  { %v5311_v24 = vpop.xlane.xlu1 %5310 }
0x272a   :  { %v6231_v17 = vpop.eup %6230 }
0x272b   :  { %v5289_v18 = vmul.f32 0.6931472, %v6231_v17 }
0x272d   :  { %v5292_v19 = vadd.f32 %v5289_v18, %v5275_v11 }
0x272e   :  { %v6233_v20 = vpop.eup %6232 }
0x272f   :  { %v5318_v2 = vsub.f32 %v5292_v19, %v5309_v53  ;;  %v5291_v46 = vmul.f32 0.6931472, %v6233_v20 }
0x2731   :  { %v5293_v21 = vadd.f32 %v5291_v46, %v5277_v13  ;;  %v5320_v26 = vmul.f32 %v5496_v49, %v5318_v2 }
0x2733   :  { %v5319_v27 = vsub.f32 %v5293_v21, %v5311_v24  ;;  %v5323_v33 = vsel %vm5322_vm11, %v5320_v26, 0.0 }
0x2735   :  { %v5321_v31 = vmul.f32 %v5497_v22, %v5319_v27 }
0x2737   :  { %v5324_v34 = vsel %vm5322_vm11, %v5321_v31, 0.0 }
0x2738   :  { %v5325_v38 = vadd.f32 %v5324_v34, %v5323_v33 }
0x273a   :  { %5326 = vadd.xlane.f32.xlu1 %v5325_v38 }
0x273e   :  { %5338 = vadd.xlane.f32.xlu1 %v5337_v40 }
0x27c3   :  { %v5327_v29 = vpop.xlane.xlu1 %5326 }
0x27c4   :  { %v5328_v41 = vrot.slane %v5327_v29, 4 }
0x27c6   :  { %v5329_v42 = vadd.f32 %v5328_v41, %v5327_v29 }
0x27c7   :  { %v5339_v0 = vpop.xlane.xlu1 %5338 }
0x27c8   :  { %v5330_v44 = vrot.slane %v5329_v42, 2  ;;  %v5340_v32 = vrot.slane %v5339_v0, 4 }
0x27ca   :  { %v5341_v8 = vadd.f32 %v5340_v32, %v5339_v0  ;;  %v5331_v45 = vadd.f32 %v5330_v44, %v5329_v42 }
0x27cc   :  { %v5342_v25 = vrot.slane %v5341_v8, 2  ;;  %v5332_v57 = vrot.slane %v5331_v45, 1 }
0x27ce   :  { %v5343_v62 = vadd.f32 %v5342_v25, %v5341_v8  ;;  %v5333_v16 = vadd.f32 %v5332_v57, %v5331_v45 }
0x27d0   :  { %6000 = vpush %v5333_v16  ;;  %v5344_v52 = vrot.slane %v5343_v62, 1 }
0x27d2   :  { %v5345_v63 = vadd.f32 %v5344_v52, %v5343_v62 }
0x27d4   :  { %6002 = vpush %v5345_v63 }
0x2801   :  { %s6001_s11 = spop %6000 }
0x2805   :  { %s6003_s18 = spop %6002 }
0x2806   :  { %s5347_s1 = smax.f32 %s6273_s29, %s6003_s18 }
0x2807   :  { %v5348_v54 = vstv %s5347_s1 }
0x2808   :  { %6234 = vrcp.f32 %v5348_v54 }
0x2815   :  { %v6235_v3 = vpop.eup %6234 }
0x2816   :  { %6004 = vpush %v6235_v3 }
0x2847   :  { %s6005_s3 = spop %6004 }
0x2848   :  { %s5351_s8 = smul.f32 %s6005_s3, %s6001_s11 }
0x284a   :  { %v5352_v28 = vstv %s5351_s8 }
0x284b   :  { %5354 = vst.msk [vmem:[#allocation2] sm:$0x1] %vm5353_vm12, %v5352_v28 }
0x284c   :  { %6247 = shalt.err (!%p6244_p4)
}
0x284d   :  { %5364 = dma.vmem_to_hbm [thread:$0]  %s5362_s21, 16, %s7288_s27, [#allocation3]  }
0x284e   :  { %6256 = dma.done.wait [#allocation3], 16  }
0x284f   :  { %6257 = vsyncadd [#allocation3], 4294967280 }
0x2850   :  { %5368 = vsyncpa [#allocation3], 1 }

</bundles_post_ra>
